<compile_context>
chip_gen: v7x
topology: tpu7x:2x2x1
jax: 0.10.0
libtpu: 0.0.40
codegen_flags: <defaults>
</compile_context>

<pallas_src>
import functools

import jax
import jax.numpy as jnp
from jax.experimental import pallas as pl
from jax.experimental.pallas import tpu as pltpu


def _round_up(n, m):
    return ((n + m - 1) // m) * m


def _mlp_kernel(x_ref, w0_ref, b0_ref, w1_ref, b1_ref, y_ref, *, precision):
    # x: (bm, d_in)  w0: (d_in, d_h)  b0: (1, d_h)  w1: (d_h, d_in)  b1: (1, d_in)
    # Cast x to the compute dtype on VMEM-resident data (no extra HBM pass).
    x = x_ref[...].astype(w0_ref.dtype)
    h = jnp.dot(x, w0_ref[...], preferred_element_type=jnp.float32,
                precision=precision)
    h = h + b0_ref[...]
    # F.leaky_relu with default negative_slope = 0.01, on the f32 accumulator.
    h = jnp.where(h > 0, h, 0.01 * h)
    y = jnp.dot(h.astype(w1_ref.dtype), w1_ref[...],
                preferred_element_type=jnp.float32, precision=precision)
    y = y + b1_ref[...]
    y_ref[...] = y.astype(y_ref.dtype)


def _block_diag(w, p):
    """p copies of w on the diagonal: kron(I_p, w)."""
    if p == 1:
        return w
    return jnp.kron(jnp.eye(p, dtype=w.dtype), w)


def prepare_mol_opt_params(params, *, compute_dtype=jnp.bfloat16):
    """Hoisted, once-per-model weight preprocessing (block-diag pack + dtype cast).

    params: {"w0": [pc_hidden, n_hidden], "b0": [n_hidden],
             "w1": [n_hidden, pc_hidden], "b1": [pc_hidden]}   (weights stored [in, out])
    """
    w0, b0, w1, b1 = params["w0"], params["b0"], params["w1"], params["b1"]
    pc_hidden, n_hidden = w0.shape
    # Lane packing: view `pack` consecutive atom rows as one 128-wide row so stores
    # are lane-dense (unmasked vst) and the MXU tile is filled.
    if pc_hidden < 128 and 128 % pc_hidden == 0:
        pack = 128 // pc_hidden
    else:
        pack = 1   # <128-lane output block: correct, masked-store perf cliff.

    compute_dtype = jnp.dtype(compute_dtype)
    return {
        "pc_hidden": pc_hidden,
        "n_hidden": n_hidden,
        "pack": pack,
        "compute_dtype": compute_dtype,
        # Plain weights (used by the tiny-batch XLA fallback).
        "w0": w0.astype(compute_dtype),
        "b0": b0.astype(jnp.float32),
        "w1": w1.astype(compute_dtype),
        "b1": b1.astype(jnp.float32),
        # Lane-packed block-diagonal weights used by the Pallas kernel.
        "w0_bd": _block_diag(w0, pack).astype(compute_dtype),
        "b0_p": jnp.tile(b0.astype(jnp.float32), pack).reshape(1, pack * n_hidden),
        "w1_bd": _block_diag(w1, pack).astype(compute_dtype),
        "b1_p": jnp.tile(b1.astype(jnp.float32), pack).reshape(1, pack * pc_hidden),
    }


# Packed-row tile alignment (safe for f32 / bf16 / int8 sublane packing).
_ROW_ALIGN = 32
# Force an even number of grid steps (v7x 2-TC balance) once there is this much work.
_FORCE_EVEN_MIN_ROWS = 512
# Keep double-buffered in/out tiles under this budget (v5e scoped-VMEM default: 16 MiB).
_TILE_VMEM_BUDGET = 8 * 1024 * 1024


def mol_opt_optimize(x, prepared, *, tm=8192, out_dtype=None):
    """Fused opt1(leaky_relu(opt0(x))) on TPU via Pallas.

    x:         [N, pc_hidden] node embeddings (any N; at most pack-1 rows padded)
    prepared:  output of prepare_mol_opt_params()
    tm:        maximum row tile in (original) atom rows
    out_dtype: output dtype (default: x.dtype)
    """
    N, pc_hidden = x.shape
    assert pc_hidden == prepared["pc_hidden"]
    pack = prepared["pack"]
    n_hidden = prepared["n_hidden"]
    d_in = pack * pc_hidden
    d_h = pack * n_hidden
    out_dtype = jnp.dtype(x.dtype if out_dtype is None else out_dtype)

    # Pad only for the packed reshape (<= pack-1 rows). When N % pack == 0 the
    # [N, pc_hidden] -> [N/pack, d_in] reshape is a metadata-only reinterpret.
    n_pad = _round_up(N, pack)
    x_p = x if n_pad == N else jnp.pad(x, ((0, n_pad - N), (0, 0)))
    n_rows = n_pad // pack
    x_p = x_p.reshape(n_rows, d_in)

    # Tile size: as large as the VMEM budget / caller cap allows; step count rounded
    # up to a multiple of 2 for v7x's two TensorCores; last block is ragged (masked).
    in_b = x.dtype.itemsize
    out_b = out_dtype.itemsize
    bm_cap = _TILE_VMEM_BUDGET // (2 * d_in * (in_b + out_b))
    bm_cap = min(tm // pack, bm_cap)
    bm_cap = max(_ROW_ALIGN, bm_cap // _ROW_ALIGN * _ROW_ALIGN)
    steps = pl.cdiv(n_rows, bm_cap)
    if steps % 2 == 1 and n_rows >= _FORCE_EVEN_MIN_ROWS:
        steps += 1
    bm = min(bm_cap, _round_up(pl.cdiv(n_rows, steps), _ROW_ALIGN))
    grid = pl.cdiv(n_rows, bm)

    precision = (jax.lax.Precision.HIGHEST
                 if prepared["compute_dtype"] == jnp.float32
                 else jax.lax.Precision.DEFAULT)
    kernel = functools.partial(_mlp_kernel, precision=precision)

    y_p = pl.pallas_call(
        kernel,
        out_shape=jax.ShapeDtypeStruct((n_rows, d_in), out_dtype),
        grid_spec=pl.GridSpec(
            grid=(grid,),
            in_specs=[
                pl.BlockSpec((bm, d_in), lambda i: (i, 0)),
                pl.BlockSpec((d_in, d_h), lambda i: (0, 0)),
                pl.BlockSpec((1, d_h), lambda i: (0, 0)),
                pl.BlockSpec((d_h, d_in), lambda i: (0, 0)),
                pl.BlockSpec((1, d_in), lambda i: (0, 0)),
            ],
            out_specs=pl.BlockSpec((bm, d_in), lambda i: (i, 0)),
        ),
        compiler_params=pltpu.CompilerParams(
            dimension_semantics=("parallel",),
        ),
    )(x_p, prepared["w0_bd"], prepared["b0_p"], prepared["w1_bd"], prepared["b1_p"])

    y = y_p.reshape(n_pad, pc_hidden)
    if n_pad != N:
        y = y[:N]
    return y


def mol_opt_forward(x_encoding, params=None, *, prepared=None,
                    compute_dtype=jnp.bfloat16, min_pallas_rows=1024,
                    tm=8192, out_dtype=None):
    """MolOpt.forward for model_type='pointwise': returns (x_encoding, x_embedding)."""
    if prepared is None:
        prepared = prepare_mol_opt_params(params, compute_dtype=compute_dtype)
    N = x_encoding.shape[0]
    out_dtype = jnp.dtype(x_encoding.dtype if out_dtype is None else out_dtype)
    if N < min_pallas_rows:
        # Tiny batches: fixed pallas_call cost dominates; plain XLA is as fast.
        precision = (jax.lax.Precision.HIGHEST
                     if prepared["compute_dtype"] == jnp.float32
                     else jax.lax.Precision.DEFAULT)
        xc = x_encoding.astype(prepared["compute_dtype"])
        h = jnp.dot(xc, prepared["w0"], preferred_element_type=jnp.float32,
                    precision=precision) + prepared["b0"]
        h = jnp.where(h > 0, h, 0.01 * h)
        y = jnp.dot(h.astype(prepared["compute_dtype"]), prepared["w1"],
                    preferred_element_type=jnp.float32,
                    precision=precision) + prepared["b1"]
        x_embedding = y.astype(out_dtype)
    else:
        x_embedding = mol_opt_optimize(x_encoding, prepared, tm=tm,
                                       out_dtype=out_dtype)
    return x_encoding, x_embedding


def _reference(x, params):
    h = jnp.dot(x, params["w0"], precision=jax.lax.Precision.HIGHEST) + params["b0"]
    h = jnp.where(h > 0, h, 0.01 * h)
    return jnp.dot(h, params["w1"], precision=jax.lax.Precision.HIGHEST) + params["b1"]


if __name__ == "__main__":
    # Shapes implied by the module: pc_hidden, n_hidden; N = total atoms in the batch.
    # N deliberately NOT a multiple of the packing or tile -> exercises the tiny
    # pack-alignment pad and the ragged (masked) last grid block.
    N = 2051        # total number of atoms in the mini-batch (ragged)
    pc_hidden = 32  # args.pc_hidden
    n_hidden = 64   # args.n_hidden

    key = jax.random.PRNGKey(0)
    kx, k0, kb0, k1, kb1 = jax.random.split(key, 5)

    # Deterministic synthetic "GCN node embeddings" (stand-in for GCN(batch)[0]).
    x_encoding = jax.random.normal(kx, (N, pc_hidden), dtype=jnp.float32)

    # Deterministic Linear params (nn.Linear-like scale), stored as [in, out].
    params = {
        "w0": jax.random.normal(k0, (pc_hidden, n_hidden), dtype=jnp.float32)
        * (1.0 / jnp.sqrt(pc_hidden)),
        "b0": jax.random.normal(kb0, (n_hidden,), dtype=jnp.float32) * 0.01,
        "w1": jax.random.normal(k1, (n_hidden, pc_hidden), dtype=jnp.float32)
        * (1.0 / jnp.sqrt(n_hidden)),
        "b1": jax.random.normal(kb1, (pc_hidden,), dtype=jnp.float32) * 0.01,
    }
    ref = _reference(x_encoding, params)

    # Weight preprocessing hoisted: done once per model, not once per forward call.
    prepared_f32 = prepare_mol_opt_params(params, compute_dtype=jnp.float32)
    prepared_bf16 = prepare_mol_opt_params(params)          # bf16 streaming (default)

    # 1) f32 weight path (precision=HIGHEST in-kernel), small tm -> 2 grid steps,
    #    ragged last block handled by Pallas block masking.
    x_enc_out, x_emb_f32 = mol_opt_forward(x_encoding, prepared=prepared_f32, tm=2048)
    jax.block_until_ready(x_emb_f32)
    assert x_emb_f32.shape == (N, pc_hidden)
    assert jnp.allclose(x_emb_f32, ref, atol=2e-3, rtol=2e-3)
    assert jnp.array_equal(x_enc_out, x_encoding)

    # 2) Default path: bf16 weight streaming, f32 x streamed as-is (cast in-kernel),
    #    f32 accumulation, default (large) tile sizing.
    _, x_emb_bf16w = mol_opt_forward(x_encoding, prepared=prepared_bf16)
    jax.block_until_ready(x_emb_bf16w)
    rel = jnp.max(jnp.abs(x_emb_bf16w - ref)) / (jnp.max(jnp.abs(ref)) + 1e-6)
    assert rel < 5e-2

    # 3) Fully-bf16 stream: producer already emits bf16 x, consumer takes bf16 out
    #    (halves HBM read+write bytes; no wrapper-side cast copies).
    x_bf16 = x_encoding.astype(jnp.bfloat16)
    _, x_emb_bf16 = mol_opt_forward(x_bf16, prepared=prepared_bf16,
                                    out_dtype=jnp.bfloat16)
    jax.block_until_ready(x_emb_bf16)
    assert x_emb_bf16.dtype == jnp.bfloat16
    rel = (jnp.max(jnp.abs(x_emb_bf16.astype(jnp.float32) - ref))
           / (jnp.max(jnp.abs(ref)) + 1e-6))
    assert rel < 7.5e-2

    # 4) Tiny-batch fallback (plain XLA, no kernel launch).
    x_small = x_encoding[:16]
    _, y_small = mol_opt_forward(x_small, prepared=prepared_f32)
    jax.block_until_ready(y_small)
    assert jnp.allclose(y_small, _reference(x_small, params), atol=2e-3, rtol=2e-3)

    print("KERNEL_OK")
</pallas_src>

<mosaic_0001>
module attributes {stable_mosaic.version = 11 : i64} {
  func.func @_mlp_kernel(%arg0: i32, %arg1: memref<288x128xf32, #tpu.memory_space<vmem>>, %arg2: memref<128x256xf32, #tpu.memory_space<vmem>>, %arg3: memref<1x256xf32, #tpu.memory_space<vmem>>, %arg4: memref<256x128xf32, #tpu.memory_space<vmem>>, %arg5: memref<1x128xf32, #tpu.memory_space<vmem>>, %arg6: memref<288x128xf32, #tpu.memory_space<vmem>>) attributes {dimension_semantics = [#tpu.dimension_semantics<parallel>], iteration_bounds = array<i64: 2>, scalar_prefetch = 0 : i64, scratch_operands = 0 : i64, tpu.core_type = #tpu.core_type<tc>, window_params = [{transform_indices = @transform_0, window_bounds = array<i64: 288, 128>}, {pipeline_mode = #tpu.pipeline_mode<synchronous>, transform_indices = @transform_1, window_bounds = array<i64: 128, 256>}, {pipeline_mode = #tpu.pipeline_mode<synchronous>, transform_indices = @transform_2, window_bounds = array<i64: 1, 256>}, {pipeline_mode = #tpu.pipeline_mode<synchronous>, transform_indices = @transform_3, window_bounds = array<i64: 256, 128>}, {pipeline_mode = #tpu.pipeline_mode<synchronous>, transform_indices = @transform_4, window_bounds = array<i64: 1, 128>}, {transform_indices = @transform_5, window_bounds = array<i64: 288, 128>}]} {
    %c0 = arith.constant 0 : index
    %c0_0 = arith.constant 0 : index
    %0 = vector.load %arg1[%c0, %c0_0] : memref<288x128xf32, #tpu.memory_space<vmem>>, vector<288x128xf32>
    %c0_1 = arith.constant 0 : index
    %c0_2 = arith.constant 0 : index
    %1 = vector.load %arg2[%c0_1, %c0_2] : memref<128x256xf32, #tpu.memory_space<vmem>>, vector<128x256xf32>
    %cst = arith.constant dense<0.000000e+00> : vector<288x256xf32>
    %2 = tpu.matmul %0, %1, %cst {dimension_numbers = #tpu.dot_dimension_numbers<[1], [0], [0], [1], [0, 0, 1, 1], [], []>, precision = #tpu.contract_precision<fp32>} : vector<288x128xf32>, vector<128x256xf32>, vector<288x256xf32> -> vector<288x256xf32>
    %c0_3 = arith.constant 0 : index
    %c0_4 = arith.constant 0 : index
    %3 = vector.load %arg3[%c0_3, %c0_4] : memref<1x256xf32, #tpu.memory_space<vmem>>, vector<1x256xf32>
    %4 = vector.broadcast %3 : vector<1x256xf32> to vector<288x256xf32>
    %5 = arith.addf %2, %4 : vector<288x256xf32>
    %cst_5 = arith.constant 0.000000e+00 : f32
    %6 = vector.broadcast %cst_5 : f32 to vector<288x256xf32>
    %7 = arith.cmpf ogt, %5, %6 : vector<288x256xf32>
    %cst_6 = arith.constant 0.00999999977 : f32
    %8 = vector.broadcast %cst_6 : f32 to vector<288x256xf32>
    %9 = arith.mulf %8, %5 : vector<288x256xf32>
    %10 = arith.select %7, %5, %9 : vector<288x256xi1>, vector<288x256xf32>
    %c0_7 = arith.constant 0 : index
    %c0_8 = arith.constant 0 : index
    %11 = vector.load %arg4[%c0_7, %c0_8] : memref<256x128xf32, #tpu.memory_space<vmem>>, vector<256x128xf32>
    %cst_9 = arith.constant dense<0.000000e+00> : vector<288x128xf32>
    %12 = tpu.matmul %10, %11, %cst_9 {dimension_numbers = #tpu.dot_dimension_numbers<[1], [0], [0], [1], [0, 0, 1, 1], [], []>, precision = #tpu.contract_precision<fp32>} : vector<288x256xf32>, vector<256x128xf32>, vector<288x128xf32> -> vector<288x128xf32>
    %c0_10 = arith.constant 0 : index
    %c0_11 = arith.constant 0 : index
    %13 = vector.load %arg5[%c0_10, %c0_11] : memref<1x128xf32, #tpu.memory_space<vmem>>, vector<1x128xf32>
    %14 = vector.broadcast %13 : vector<1x128xf32> to vector<288x128xf32>
    %15 = arith.addf %12, %14 : vector<288x128xf32>
    %c0_12 = arith.constant 0 : index
    %c0_13 = arith.constant 0 : index
    %16 = vector.load %arg6[%c0_12, %c0_13] : memref<288x128xf32, #tpu.memory_space<vmem>>, vector<288x128xf32>
    tpu.vector_store %arg6[%c0_12, %c0_13], %15 {strides = array<i32>} : memref<288x128xf32, #tpu.memory_space<vmem>>, vector<288x128xf32>,
    return
  }
  func.func @transform_0(%arg0: i32) -> (i32, i32) {
    %c0_i32 = arith.constant 0 : i32
    %c0_i32_0 = arith.constant 0 : i32
    return %arg0, %c0_i32 : i32, i32
  }
  func.func @transform_1(%arg0: i32) -> (i32, i32) {
    %c0_i32 = arith.constant 0 : i32
    %c0_i32_0 = arith.constant 0 : i32
    %c0_i32_1 = arith.constant 0 : i32
    return %c0_i32, %c0_i32_0 : i32, i32
  }
  func.func @transform_2(%arg0: i32) -> (i32, i32) {
    %c0_i32 = arith.constant 0 : i32
    %c0_i32_0 = arith.constant 0 : i32
    %c0_i32_1 = arith.constant 0 : i32
    return %c0_i32, %c0_i32_0 : i32, i32
  }
  func.func @transform_3(%arg0: i32) -> (i32, i32) {
    %c0_i32 = arith.constant 0 : i32
    %c0_i32_0 = arith.constant 0 : i32
    %c0_i32_1 = arith.constant 0 : i32
    return %c0_i32, %c0_i32_0 : i32, i32
  }
  func.func @transform_4(%arg0: i32) -> (i32, i32) {
    %c0_i32 = arith.constant 0 : i32
    %c0_i32_0 = arith.constant 0 : i32
    %c0_i32_1 = arith.constant 0 : i32
    return %c0_i32, %c0_i32_0 : i32, i32
  }
  func.func @transform_5(%arg0: i32) -> (i32, i32) {
    %c0_i32 = arith.constant 0 : i32
    %c0_i32_0 = arith.constant 0 : i32
    return %arg0, %c0_i32 : i32, i32
  }
}

</mosaic_0001>

<bundles_post_ra>
// kernel: tpu_custom_call.1
= control target key start
LH: loop header
LB: loop body
LE: loop exit
PB: predicated region body
PF: predicated region fallthrough
CT: control target
= control target key end

     0   :  { %10 = vsyncpa [#allocation3], 0  ;;  %s11394_s0 = inlined_call_operand.hbm [shape: f32[513,128], index: 0, kind: input, shape index: {}]   ;;  %s11395_s1 = inlined_call_operand.hbm [shape: f32[128,256], index: 1, kind: input, shape index: {}]   ;;  %s11396_s2 = inlined_call_operand.vmem [shape: f32[1,256], index: 2, kind: input, shape index: {}]   ;;  %s11397_s3 = inlined_call_operand.hbm [shape: f32[256,128], index: 3, kind: input, shape index: {}]   ;;  %s11398_s4 = inlined_call_operand.vmem [shape: f32[1,128], index: 4, kind: input, shape index: {}]   ;;  %s11399_s5 = inlined_call_operand.hbm [shape: f32[513,128], index: 5, kind: output, shape index: {}]  }
   0x1   :  { %12 = vsyncpa [#allocation3 + $0x1], 0 }
   0x2   :  { %13 = vsyncpa [#allocation6], 0 }
   0x3   :  { %14 = vsyncpa [#allocation4], 0 }
   0x4   :  { %16 = vsyncpa [#allocation4 + $0x1], 0  ;;  %s7794_s18 = smov 0   ;;  %s7796_s19 = smov 0  }
   0x5   :  { %s7798_s20 = smov 0   ;;  %s7800_s21 = smov 0  }
   0x6 LB: > { %s7815_s22 = sadd.s32 4294967295, %s7748_s21   ;;  %s6163_s23 = sadd.s32 4294967294, %s7748_s21   ;;  %s7748_s21 = sphi %s7800_s21, %s13092_s21   ;;  %s7744_s20 = sphi %s7798_s20, %s13091_s20   ;;  %s7740_s19 = sphi %s7796_s19, %s13090_s19   ;;  %s7736_s18 = sphi %s7794_s18, %s13089_s18  }
   0x7   : > { %s7819_s24 = sadd.s32 1, %s7748_s21   ;;  %s29_s25 = sadd.s32 1, %s7744_s20 }
   0x8   : > { %s26_s26 = ssub.s32 %s7748_s21, %s7819_s24  ;;  %p36_p0 = scmp.ne.s32.totalorder %s7744_s20, %s7740_s19 }
   0x9   : > { %p27_p1 = scmp.eq.s32.totalorder %s26_s26, 0  ;;  %p37_p2 = scmp.eq.s32.totalorder %s7748_s21, 0 }
   0xa   : > { %p42_p3 = scmp.ne.s32.totalorder %s7740_s19, %s7736_s18  ;;  %p11400_p4 = scmp.eq.s32.totalorder %s7815_s22, 0 }
   0xb   : > { %s7831_s27 = scalar_select %p27_p1, %s7744_s20, %s29_s25  }
   0xc   : > { %p7833_p5 = por %p37_p2, %p36_p0  ;;  %p7839_p6 = por %p11400_p4, %p42_p3 }
   0xd   : > { %12108 = sst [smem:[#allocation12_spill]] %s7831_s27  ;;  %p150_p7 = scmp.eq.s32.totalorder %s7815_s22, 1 }
   0xe   : > { %s12109_s28 = scalar_select %p7833_p5, 1, 0 }
   0xf   : > { %s12110_s29 = scalar_select %p7839_p6, 1, 0 }
  0x10   : > { %p156_p8 = scmp.eq.s32.totalorder %s6163_s23, 1  ;;  %p6164_p9 = scmp.ge.s32.totalorder %s7748_s21, 1 }
  0x11   : > { %p163_p10 = scmp.lt.s32.totalorder %s7748_s21, 3  ;;  %p7846_p11 = por %p150_p7, %p36_p0 }
  0x12   : > { %p7850_p12 = por %p156_p8, %p42_p3  ;;  %s7750_s8 = smov [#allocation5]  }
  0x13   : > { %s12111_s30 = scalar_select %p7846_p11, 1, 0 }
  0x14   : > { %s12112_s6 = scalar_select %p7850_p12, 1, 0 }
  0x15   : > { %p7854_p13 = pnand %p6164_p9, %p163_p10  ;;  %s175_s9 = sshll.u32 %s7750_s8, 4  ;;  %s176_s9 = int_to_ptr.vmem [resolvable:$true] %s175_s9 }
  0x16   : > { %s7751_s11 = smov [#allocation7]   ;;  %s7594_s15 = scalar_lea.hbm %s11395_s1, 4096 }
  0x17   : > { %s12113_s7 = scalar_select %p7854_p13, 1, 0 }
  0x18   : > { %p7534_p1 = pneg %p7854_p13  ;;  %s191_s12 = sshll.u32 %s7751_s11, 4  ;;  %s7866_s12 = int_to_ptr.vmem [resolvable:$true] %s191_s12 }
  0x19   : > { %p7595_p0 = scmp.ne.s32.totalorder %s11395_s1, %s7594_s15  ;;  %p7601_p9 = scmp.lt.u32.totalorder %s7594_s15, %s11395_s1 }
  0x1a   : > { %p7862_p2 = pnand %p7534_p1, %p11400_p4 }
  0x1c   : > { %p7596_p3 = pneg %p7862_p2 }
  0x1e   : > { %p7597_p7 = pnand %p7596_p3, %p7595_p0 }
  0x20   : > { %p7598_p8 = pneg %p7597_p7 }
  0x22   : > { %p7603_p10 = pnand %p7601_p9, %p7598_p8 }
  0x24   : > { %7606 = shalt.err (!%p7603_p10)
}
  0x25   : > { %s7607_s26 = scalar_lea.vmem %s176_s9, 4096  ;;  %p7615_p11 = scmp.lt.s32.totalorder %s176_s9, %s176_s9 }
  0x26   : > { %p7608_p1 = scmp.ne.s32.totalorder %s176_s9, %s7607_s26  ;;  %p7616_p6 = scmp.lt.s32.totalorder %s7607_s26, %s7607_s26 }
  0x28   : > { %p7610_p4 = pnand %p7608_p1, %p7596_p3  ;;  %p7617_p13 = por %p7616_p6, %p7615_p11 }
  0x2a   : > { %p7611_p12 = pneg %p7610_p4 }
  0x2c   : > { %p7618_p5 = pnand %p7617_p13, %p7611_p12 }
  0x2e   : > { %7621 = shalt.err (!%p7618_p5)
}
  0x2f   : > { %s7752_s8 = smov 256   ;;  %s7753_s11 = smov 16  }
  0x30   : > { %7537 = dma.hbm_to_vmem [thread:$0]  (!%p7862_p2), %s11395_s1, 4096, %s176_s9, [#allocation6], %s7752_s8, %s7752_s8, %s7753_s11  }
  0x31   : > { %s7622_s17 = scalar_lea.hbm %s11397_s3, 4096 }
  0x32   : > { %p7623_p4 = scmp.ne.s32.totalorder %s11397_s3, %s7622_s17  ;;  %p7629_p11 = scmp.lt.u32.totalorder %s7622_s17, %s11397_s3 }
  0x34   : > { %p7625_p5 = pnand %p7623_p4, %p7596_p3 }
  0x36   : > { %p7626_p6 = pneg %p7625_p5 }
  0x38   : > { %p7631_p12 = pnand %p7629_p11, %p7626_p6 }
  0x3a   : > { %7634 = shalt.err (!%p7631_p12)
}
  0x3b   : > { %s7635_s9 = scalar_lea.vmem %s7866_s12, 4096  ;;  %p7643_p8 = scmp.lt.s32.totalorder %s7866_s12, %s7866_s12 }
  0x3c   : > { %p7636_p13 = scmp.ne.s32.totalorder %s7866_s12, %s7635_s9  ;;  %p7644_p9 = scmp.lt.s32.totalorder %s7635_s9, %s7635_s9 }
  0x3e   : > { %p7638_p0 = pnand %p7636_p13, %p7596_p3  ;;  %p7645_p10 = por %p7644_p9, %p7643_p8 }
  0x40   : > { %p7639_p7 = pneg %p7638_p0 }
  0x42   : > { %p7646_p1 = pnand %p7645_p10, %p7639_p7 }
  0x44   : > { %7649 = shalt.err (!%p7646_p1)
}
  0x45   : > { %s7754_s27 = smov 128   ;;  %s7755_s8 = smov 8  }
  0x46   : > { %7540 = dma.hbm_to_vmem [thread:$0]  (!%p7862_p2), %s11397_s3, 4096, %s7866_s12, [#allocation6], %s7754_s27, %s7754_s27, %s7755_s8  }
  0x47   : > { %p6167_p4 = scmp.ge.s32.totalorder %s7748_s21, 2 }
  0x48   : > { %p12115_p3 = scmp.ne.s32.totalorder (!%p6167_p4), %s12109_s28, 0 }
  0x49   : > { %204 = sbr.rel (%p6167_p4) target bundleno = 115 (0x73), region = 32 }
  0x50   : > { %207 = sbr.rel (!%p12115_p3) target bundleno = 115 (0x73), region = 36  ;;  %s208_s14 = sand.u32 (%p12115_p3), 1, %s7744_s20  }
  0x51   : > { %s213_s15 = smul.u32 (%p12115_p3), 36, %s7748_s21  ;;  %s7925_s23 = scalar_lea.sflag (%p12115_p3), [#allocation3], %s208_s14 }
  0x52   : > { %s7522_s16 = smul.u32 (%p12115_p3), 288, %s208_s14 }
  0x53   : > { %s214_s17 = ssub.s32 (%p12115_p3), 65, %s213_s15 }
  0x54   : > { %p215_p5 = scmp.lt.s32.totalorder (%p12115_p3), %s214_s17, 36  ;;  %s212_s25 = scalar_lea.vmem (%p12115_p3), [#allocation2], %s7522_s16 }
  0x57   : > { %s13094_s17 = smov (!%p215_p5, %s214_s17), 36 }
  0x58   : > { %s7922_s10 = sshll.u32 %s13094_s17, 7 }
  0x59   : > { %s219_s12 = ssub.s32 4608, %s7922_s10 }
  0x5a   : > { %220 = vsyncadd %s7925_s23, %s219_s12  ;;  %p6169_p2 = scmp.ne.s32.totalorder %s7922_s10, 0  ;;  %s6184_s28 = smul.u32 4608, %s7748_s21 }
  0x5b   : > { %s225_s26 = sshll.u32 %s212_s25, 4  ;;  %s7654_s15 = scalar_lea.hbm %s11394_s0, 8320  ;;  %s7935_s26 = int_to_ptr.vmem [resolvable:$true] %s225_s26 }
  0x5c   : > { %s7933_s8 = scalar_lea.hbm %s11394_s0, %s6184_s28 }
  0x5d   : > { %s7650_s11 = scalar_lea.hbm %s7933_s8, %s7922_s10  ;;  %p7655_p13 = scmp.lt.u32.totalorder %s7933_s8, %s11394_s0 }
  0x5e   : > { %p7651_p6 = scmp.ne.s32.totalorder %s7933_s8, %s7650_s11  ;;  %p7656_p0 = scmp.lt.u32.totalorder %s7654_s15, %s7650_s11 }
  0x5f   : > { %p7658_p8 = scmp.lt.u32.totalorder %s7650_s11, %s7933_s8 }
  0x60   : > { %p7652_p11 = pnand %p7651_p6, %p6169_p2  ;;  %p7657_p7 = por %p7656_p0, %p7655_p13 }
  0x62   : > { %p7653_p12 = pneg %p7652_p11  ;;  %p7659_p9 = por %p7658_p8, %p7657_p7 }
  0x64   : > { %p7660_p10 = pnand %p7659_p9, %p7653_p12 }
  0x66   : > { %7663 = shalt.err (!%p7660_p10)
}
  0x67   : > { %s7664_s12 = scalar_lea.vmem %s7935_s26, %s7922_s10  ;;  %s7756_s25 = smov [#allocation2]  }
  0x68   : > { %p7665_p1 = scmp.ne.s32.totalorder %s7935_s26, %s7664_s12  ;;  %s7668_s28 = sshll.u32 %s7756_s25, 4  ;;  %s7669_s28 = int_to_ptr.vmem [resolvable:$false] %s7668_s28 }
  0x69   : > { %s7670_s9 = scalar_lea.vmem %s7669_s28, 9216  ;;  %p7671_p6 = scmp.lt.s32.totalorder %s7935_s26, %s7669_s28 }
  0x6a   : > { %p7666_p3 = pnand %p7665_p1, %p6169_p2  ;;  %p7672_p11 = scmp.lt.s32.totalorder %s7670_s9, %s7664_s12 }
  0x6c   : > { %p7667_p5 = pneg %p7666_p3  ;;  %p7673_p13 = por %p7672_p11, %p7671_p6 }
  0x6e   : > { %p7674_p0 = pnand %p7673_p13, %p7667_p5 }
  0x70   : > { %7677 = shalt.err (!%p7674_p0)
}
  0x71   : > { %s7757_s27 = smov 128   ;;  %s7758_s11 = smov 8  }
  0x72   : > { %231 = dma.hbm_to_vmem [thread:$0]  (%p6169_p2), %s7933_s8, %s7922_s10, %s7935_s26, %s7925_s23, %s7757_s27, %s7757_s27, %s7758_s11  }
  0x73 PF: > { %p12116_p12 = scmp.ne.s32.totalorder %s12113_s7, 0 }
  0x75   : > { %237 = sbr.rel (%p12116_p12) target bundleno = 2249 (0x8c9), region = 40 }
  0x7c   : > { %s7965_s13 = sand.u32 1, %s7740_s19   ;;  %p12117_p7 = scmp.ne.s32.totalorder %s12110_s29, 0 }
  0x7d   : > { %s7523_s14 = smul.u32 288, %s7965_s13  ;;  %s240_s15 = scalar_lea.sflag [#allocation3], %s7965_s13 }
  0x7f   : > { %s7971_s16 = scalar_lea.vmem [#allocation2], %s7523_s14 }
  0x80   : > { %7723 = dma.done.wait (%p12117_p7), %s240_s15, 4608  }
  0x81   : > { %7725 = vsyncadd (%p12117_p7), %s240_s15, 4294962688  ;;  %p12118_p2 = scmp.eq.s32.totalorder %s7815_s22, 0 }
  0x83   : > { %7727 = dma.done.wait (%p12118_p2), [#allocation6], 8192   ;;  %p12119_p8 = pmov %p12118_p2 }
  0x84   : > { %v11413_v0 = vmov 0.0   ;;  %v7982_v1 = vld [vmem:[#allocation5 + $0x8] sm:$0xff]  ;;  %v7984_v2 = vld [vmem:[#allocation5 + $0x18] sm:$0xff]  ;;  %v7986_v3 = vld [vmem:[#allocation5] sm:$0xff]  ;;  %s11257_s26 = scalar_lea.vmem [#allocation8], %s7523_s14  ;;  %s6052_s8 = scalar_lea.sflag [#allocation4], %s7965_s13 }
  0x85   : > { %7729 = vsyncadd (%p12119_p8), [#allocation6], 4294959104  ;;  %464 = vmatprep.mubr.f32.mxu0 %v11413_v0  ;;  %v368_v4 = vand.u32 4294901760, %v7982_v1  ;;  %v372_v5 = vand.u32 4294901760, %v7984_v2  ;;  %v7990_v6 = vld [vmem:[#allocation5 + $0x10] sm:$0xff]  ;;  %v370_v7 = vand.u32 4294901760, %v7986_v3 }
  0x86   : > { %v7993_v8 = vld [vmem:[#allocation5 + $0x28] sm:$0xff]  ;;  %v7995_v9 = vld [vmem:[#allocation5 + $0x38] sm:$0xff]  ;;  %v374_v10 = vand.u32 4294901760, %v7990_v6  ;;  %v8000_v13 = vld [vmem:[#allocation5 + $0x20] sm:$0xff]  ;;  %p13086_p9 = scmp.ne.s32.totalorder %s12111_s30, 0 }
  0x87   : > { %v376_v11 = vand.u32 4294901760, %v7993_v8  ;;  %v380_v12 = vand.u32 4294901760, %v7995_v9  ;;  %v8002_v14 = vld [vmem:[#allocation5 + $0x30] sm:$0xff]  ;;  %v8004_v15 = vld [vmem:[#allocation5 + $0x48] sm:$0xff]  ;;  %v8006_v16 = vpack.c.bf16 %v372_v5, %v368_v4  ;;  %v8008_v17 = vld [vmem:[#allocation5 + $0x58] sm:$0xff]  ;;  %v378_v23 = vand.u32 4294901760, %v8000_v13 }
  0x88   : > { %v8010_v18 = vld [vmem:[#allocation5 + $0x40] sm:$0xff]  ;;  %v8012_v19 = vld [vmem:[#allocation5 + $0x50] sm:$0xff]  ;;  %v8018_v20 = vpack.c.bf16 %v374_v10, %v370_v7  ;;  %v8026_v22 = vld [vmem:[#allocation5 + $0x68] sm:$0xff]  ;;  %v382_v24 = vand.u32 4294901760, %v8002_v14  ;;  %v11422_v25 = vand.u32 4294901760, %v8004_v15  ;;  %v11421_v26 = vand.u32 4294901760, %v8008_v17 }
  0x89   : > { %12120 = vst [vmem:[#allocation13_spill] sm:$0xff] %v8006_v16  ;;  %v8024_v21 = vpack.c.bf16 %v380_v12, %v376_v11  ;;  %6187 = vmatprep.subr.bf16.mxu0 %v8006_v16  ;;  %v11420_v27 = vand.u32 4294901760, %v8010_v18  ;;  %v11417_v28 = vand.u32 4294901760, %v8012_v19  ;;  %v8036_v29 = vld [vmem:[#allocation5 + $0x78] sm:$0xff]  ;;  %v11412_v31 = vand.u32 4294901760, %v8026_v22  ;;  %v8046_v32 = vld [vmem:[#allocation5 + $0x60] sm:$0xff] }
  0x8a   : > { %12121 = vst [vmem:[#allocation14_spill] sm:$0xff] %v8018_v20  ;;  %6189 = vmatpush1.bf16.msra.mxu0 %v8018_v20  ;;  %v8043_v30 = vpack.c.bf16 %v382_v24, %v378_v23  ;;  %v8048_v33 = vld [vmem:[#allocation5 + $0x70] sm:$0xff]  ;;  %v8054_v34 = vpack.c.bf16 %v11421_v26, %v11422_v25  ;;  %v8056_v35 = vld [vmem:[#allocation5 + $0x88] sm:$0xff]  ;;  %v8058_v36 = vld [vmem:[#allocation5 + $0x98] sm:$0xff]  ;;  %v11411_v37 = vand.u32 4294901760, %v8036_v29  ;;  %v11408_v39 = vand.u32 4294901760, %v8046_v32 }
  0x8b   : > { %12122 = vst [vmem:[#allocation15_spill] sm:$0xff] %v8024_v21  ;;  %6191 = vmatprep.subr.bf16.mxu0 %v8024_v21  ;;  %v8066_v38 = vpack.c.bf16 %v11417_v28, %v11420_v27  ;;  %v11407_v40 = vand.u32 4294901760, %v8048_v33  ;;  %v11404_v42 = vand.u32 4294901760, %v8056_v35  ;;  %v11403_v43 = vand.u32 4294901760, %v8058_v36  ;;  %v8079_v44 = vld [vmem:[#allocation5 + $0x80] sm:$0xff]  ;;  %v8081_v45 = vld [vmem:[#allocation5 + $0x90] sm:$0xff] }
  0x8c   : > { %12123 = vst [vmem:[#allocation16_spill] sm:$0xff] %v8043_v30  ;;  %12124 = vst [vmem:[#allocation17_spill] sm:$0xff] %v8054_v34  ;;  %v8075_v41 = vpack.c.bf16 %v11411_v37, %v11412_v31  ;;  %v8083_v46 = vld [vmem:[#allocation5 + $0xa8] sm:$0xff]  ;;  %v8085_v47 = vld [vmem:[#allocation5 + $0xb8] sm:$0xff]  ;;  %v11406_v50 = vand.u32 4294901760, %v8079_v44  ;;  %v11405_v51 = vand.u32 4294901760, %v8081_v45  ;;  %v8114_v58 = vsub.f32 %v7982_v1, %v368_v4 }
  0x8d   : > { %12125 = vst [vmem:[#allocation18_spill] sm:$0xff] %v8066_v38  ;;  %v8087_v48 = vld [vmem:[#allocation5 + $0xa0] sm:$0xff]  ;;  %v8094_v49 = vpack.c.bf16 %v11407_v40, %v11408_v39  ;;  %v8098_v52 = vld [vmem:[#allocation5 + $0xb0] sm:$0xff]  ;;  %v8100_v53 = vld [vmem:[#allocation5 + $0xc8] sm:$0xff]  ;;  %v8109_v55 = vpack.c.bf16 %v11403_v43, %v11404_v42  ;;  %v11410_v56 = vand.u32 4294901760, %v8083_v46  ;;  %v11409_v57 = vand.u32 4294901760, %v8085_v47 }
  0x8e   : > { %6193 = vmatpush1.bf16.msra.mxu0 %v8043_v30  ;;  %12126 = vst [vmem:[#allocation19_spill] sm:$0xff] %v8075_v41  ;;  %v8102_v54 = vld [vmem:[#allocation5 + $0xd8] sm:$0xff]  ;;  %12129 = vst [vmem:[#allocation22_spill] sm:$0xff] %v8114_v58  ;;  %v8117_v59 = vsub.f32 %v7984_v2, %v372_v5  ;;  %v11416_v60 = vand.u32 4294901760, %v8087_v48  ;;  %v11415_v61 = vand.u32 4294901760, %v8098_v52  ;;  %v11419_v62 = vand.u32 4294901760, %v8100_v53 }
  0x8f   : > { %6195 = vmatprep.subr.bf16.mxu0 %v8054_v34  ;;  %12127 = vst [vmem:[#allocation20_spill] sm:$0xff] %v8094_v49  ;;  %12128 = vst [vmem:[#allocation21_spill] sm:$0xff] %v8109_v55  ;;  %v11418_v63 = vand.u32 4294901760, %v8102_v54  ;;  %v288_v43 = vld [vmem:[%s7971_s16] sm:$0xff]  ;;  %v8127_v42 = vsub.f32 %v7986_v3, %v370_v7  ;;  %v8134_v1 = vpack.c.bf16 %v11405_v51, %v11406_v50  ;;  %v8138_v4 = vld [vmem:[#allocation5 + $0xd0] sm:$0xff]  ;;  %v12158_v30 = vand.u32 4294901760, %v8010_v18 }
  0x90   : > { %12130 = vst [vmem:[#allocation23_spill] sm:$0xff] %v8117_v59  ;;  %v8136_v2 = vld [vmem:[#allocation5 + $0xc0] sm:$0xff]  ;;  %v8143_v5 = vsub.f32 %v7990_v6, %v374_v10  ;;  %v8150_v3 = vpack.c.bf16 %v11409_v57, %v11410_v56  ;;  %v8152_v7 = vld [vmem:[#allocation5 + $0xe8] sm:$0xff]  ;;  %v8154_v51 = vld [vmem:[#allocation5 + $0xf8] sm:$0xff]  ;;  %v8159_v50 = vsub.f32 %v7993_v8, %v376_v11  ;;  %v8161_v6 = vand.u32 4294901760, %v288_v43  ;;  %s6059_s17 = smul.u32 (%p13086_p9), 36, %s7815_s22 }
  0x91   : > { %12131 = vst [vmem:[#allocation24_spill] sm:$0xff] %v8134_v1  ;;  %v11424_v10 = vand.u32 4294901760, %v8114_v58  ;;  %v11423_v40 = vand.u32 4294901760, %v8117_v59  ;;  %v289_v39 = vld [vmem:[%s7971_s16 + $0x8] sm:$0xff]  ;;  %v8170_v57 = vpack.c.bf16 %v11415_v61, %v11416_v60  ;;  %v8176_v56 = vpack.c.bf16 %v11418_v63, %v11419_v62  ;;  %v8180_v37 = vld [vmem:[#allocation5 + $0xe0] sm:$0xff]  ;;  %v8182_v31 = vld [vmem:[#allocation5 + $0xf0] sm:$0xff] }
  0x92   : > { %6197 = vmatpush1.bf16.msra.mxu0 %v8066_v38  ;;  %12132 = vst [vmem:[#allocation25_spill] sm:$0xff] %v8150_v3  ;;  %12133 = vst [vmem:[#allocation26_spill] sm:$0xff] %v8161_v6  ;;  %v11427_v8 = vand.u32 4294901760, %v8136_v2  ;;  %v290_v0 = vld [vmem:[%s7971_s16 + $0x10] sm:$0xff]  ;;  %v8189_v28 = vsub.f32 %v288_v43, %v8161_v6  ;;  %v8200_v25 = vand.u32 4294901760, %v289_v39  ;;  %v291_v60 = vld [vmem:[%s7971_s16 + $0x18] sm:$0xff]  ;;  %v8206_v43 = vsub.f32 %v7995_v9, %v380_v12 }
  0x93   : > { %6199 = vmatprep.subr.bf16.mxu0 %v8075_v41  ;;  %12134 = vst [vmem:[#allocation27_spill] sm:$0xff] %v8170_v57  ;;  %12135 = vst [vmem:[#allocation28_spill] sm:$0xff] %v8176_v56  ;;  %v864_v62 = vsub.f32 %v8114_v58, %v11424_v10  ;;  %v876_v27 = vsub.f32 %v8117_v59, %v11423_v40  ;;  %v8210_v11 = vand.u32 4294901760, %v290_v0  ;;  %v12140_v12 = vand.u32 4294901760, %v8138_v4  ;;  %v297_v20 = vld [vmem:[%s7971_s16 + $0x48] sm:$0xff]  ;;  %s6060_s12 = ssub.s32 (%p13086_p9), 65, %s6059_s17 }
  0x94   : > { %12136 = vst [vmem:[#allocation29_spill] sm:$0xff] %v8189_v28  ;;  %12137 = vst [vmem:[#allocation30_spill] sm:$0xff] %v8200_v25  ;;  %v8215_v40 = vsub.f32 %v8000_v13, %v378_v23  ;;  %v8220_v10 = vsub.f32 %v8002_v14, %v382_v24  ;;  %v8224_v9 = vsub.f32 %v289_v39, %v8200_v25  ;;  %v12142_v13 = vand.u32 4294901760, %v8127_v42  ;;  %p6061_p10 = scmp.lt.s32.totalorder (%p13086_p9), %s6060_s12, 36 }
  0x95   : > { %12138 = vst [vmem:[#allocation31_spill] sm:$0xff] %v8210_v11  ;;  %v8231_v63 = vpack.c.bf16 %v12140_v12, %v11427_v8  ;;  %v12143_v14 = vand.u32 4294901760, %v8143_v5  ;;  %v8239_v26 = vand.u32 4294901760, %v291_v60  ;;  %v12145_v39 = vand.u32 4294901760, %v8152_v7 }
  0x96   : > { %6201 = vmatpush1.bf16.msra.mxu0 %v8094_v49  ;;  %12139 = vst [vmem:[#allocation32_spill] sm:$0xff] %v8224_v9  ;;  %v870_v23 = vsub.f32 %v8127_v42, %v12142_v13  ;;  %v12146_v61 = vand.u32 4294901760, %v8154_v51  ;;  %v865_v12 = vand.u32 4294901760, %v864_v62  ;;  %v877_v8 = vand.u32 4294901760, %v876_v27 }
  0x97   : > { %6203 = vmatprep.subr.bf16.mxu0 %v8109_v55  ;;  %12141 = vst [vmem:[#allocation33_spill] sm:$0xff] %v8231_v63  ;;  %v882_v24 = vsub.f32 %v8143_v5, %v12143_v14  ;;  %12144 = vst [vmem:[#allocation34_spill] sm:$0xff] %v8239_v26  ;;  %v12148_v13 = vand.u32 4294901760, %v8004_v15  ;;  %v12149_v14 = vand.u32 4294901760, %v8180_v37  ;;  %v12150_v55 = vand.u32 4294901760, %v8182_v31 }
  0x98   : > { %v8261_v49 = vsub.f32 %v290_v0, %v8210_v11  ;;  %v8274_v0 = vsub.f32 %v291_v60, %v8239_v26  ;;  %v11454_v41 = vand.u32 4294901760, %v8215_v40  ;;  %v11455_v38 = vand.u32 4294901760, %v8220_v10  ;;  %v293_v60 = vld [vmem:[%s7971_s16 + $0x28] sm:$0xff] }
  0x99   : > { %v8304_v21 = vsub.f32 %v8010_v18, %v12158_v30  ;;  %v12162_v30 = vand.u32 4294901760, %v8012_v19 }
  0x9a   : > { %6205 = vmatpush1.bf16.msra.mxu0 %v8134_v1  ;;  %v8252_v1 = vsub.f32 %v8004_v15, %v12148_v13  ;;  %12152 = vst [vmem:[#allocation37_spill] sm:$0xff] %v8261_v49  ;;  %v11445_v13 = vand.u32 4294901760, %v8206_v43  ;;  %12154 = vst [vmem:[#allocation38_spill] sm:$0xff] %v8274_v0  ;;  %v906_v34 = vsub.f32 %v8220_v10, %v11455_v38 }
  0x9b   : > { %6207 = vmatprep.subr.bf16.mxu0 %v8150_v3  ;;  %v11440_v3 = vand.u32 4294901760, %v8159_v50 }
  0x9d   : > { %v888_v15 = vsub.f32 %v8159_v50, %v11440_v3  ;;  %v900_v3 = vsub.f32 %v8206_v43, %v11445_v13 }
  0x9e   : > { %6209 = vmatpush1.bf16.msra.mxu0 %v8170_v57  ;;  %v8246_v57 = vpack.c.bf16 %v12146_v61, %v12145_v39  ;;  %v12153_v61 = vand.u32 4294901760, %v8189_v28  ;;  %v292_v39 = vld [vmem:[%s7971_s16 + $0x20] sm:$0xff] }
  0x9f   : > { %6211 = vmatprep.subr.bf16.mxu0 %v8176_v56  ;;  %v8258_v56 = vpack.c.bf16 %v12150_v55, %v12149_v14  ;;  %v871_v55 = vand.u32 4294901760, %v870_v23  ;;  %v883_v14 = vand.u32 4294901760, %v882_v24  ;;  %v889_v62 = vand.u32 4294901760, %v888_v15 }
  0xa0   : > { %12147 = vst [vmem:[#allocation35_spill] sm:$0xff] %v8246_v57  ;;  %v468_v27 = vsub.f32 %v8189_v28, %v12153_v61  ;;  %v6218_v61 = vpack.c.bf16 %v877_v8, %v865_v12  ;;  %v8288_v24 = vand.u32 4294901760, %v292_v39  ;;  %v894_v8 = vsub.f32 %v8215_v40, %v11454_v41 }
  0xa1   : > { %12151 = vst [vmem:[#allocation36_spill] sm:$0xff] %v8258_v56  ;;  %v12157_v15 = vand.u32 4294901760, %v8224_v9  ;;  %v12159_v41 = vand.u32 4294901760, %v8261_v49 }
  0xa2   : > { %6213 = vmatpush1.bf16.msra.mxu0 %v8231_v63  ;;  %v12155_v63 = vand.u32 4294901760, %v8008_v17  ;;  %12156 = vst [vmem:[#allocation39_spill] sm:$0xff] %v8288_v24  ;;  %v469_v12 = vand.u32 4294901760, %v468_v27  ;;  %v11458_v27 = vand.u32 4294901760, %v8274_v0 }
  0xa3   : > { %6215 = vmatprep.subr.bf16.mxu0 %v8246_v57  ;;  %v479_v13 = vsub.f32 %v8224_v9, %v12157_v15  ;;  %v901_v57 = vand.u32 4294901760, %v900_v3  ;;  %v907_v3 = vand.u32 4294901760, %v906_v34  ;;  %v490_v38 = vsub.f32 %v8261_v49, %v12159_v41  ;;  %v296_v49 = vld [vmem:[%s7971_s16 + $0x40] sm:$0xff] }
  0xa4   : > { %v8285_v23 = vsub.f32 %v8008_v17, %v12155_v63  ;;  %v6220_v17 = vpack.c.bf16 %v883_v14, %v871_v55  ;;  %v895_v63 = vand.u32 4294901760, %v894_v8  ;;  %v11459_v55 = vand.u32 4294901760, %v8252_v1 }
  0xa5   : > { %v6222_v15 = vpack.c.bf16 %v901_v57, %v889_v62  ;;  %v480_v14 = vand.u32 4294901760, %v479_v13  ;;  %v8314_v8 = vand.u32 4294901760, %v293_v60  ;;  %v8320_v57 = vsub.f32 %v8012_v19, %v12162_v30  ;;  %v294_v62 = vld [vmem:[%s7971_s16 + $0x30] sm:$0xff] }
  0xa6   : > { %6217 = vmatpush1.bf16.msra.mxu0 %v8258_v56  ;;  %v8311_v56 = vsub.f32 %v292_v39, %v8288_v24  ;;  %v11460_v18 = vand.u32 4294901760, %v8285_v23  ;;  %v12163_v34 = vmov 0.0   ;;  %v6224_v41 = vpack.c.bf16 %v907_v3, %v895_v63 }
  0xa7   : > { %6219 = vmatprep.subr.bf16.mxu0 %v6218_v61  ;;  %12161 = vst [vmem:[#allocation41_spill] sm:$0xff] %v8314_v8  ;;  %v912_v39 = vsub.f32 %v8252_v1, %v11459_v55  ;;  %v12164_v13 = vand.u32 4294901760, %v8026_v22  ;;  %v501_v19 = vsub.f32 %v8274_v0, %v11458_v27  ;;  %v12165_v63 = vand.u32 4294901760, %v8036_v29  ;;  %v295_v55 = vld [vmem:[%s7971_s16 + $0x38] sm:$0xff] }
  0xa8   : > { %12160 = vst [vmem:[#allocation40_spill] sm:$0xff] %v8311_v56  ;;  %v491_v30 = vand.u32 4294901760, %v490_v38  ;;  %v8346_v27 = vsub.f32 %v293_v60, %v8314_v8 }
  0xa9   : > { %470 = vmatmul.mubr.f32.vlgmr.msra.gmra.mrb[0].mxu0 %v469_v12  ;;  %v8330_v61 = vsub.f32 %v8026_v22, %v12164_v13  ;;  %v924_v12 = vsub.f32 %v8285_v23, %v11460_v18  ;;  %v8342_v3 = vsub.f32 %v8036_v29, %v12165_v63  ;;  %v11466_v22 = vand.u32 4294901760, %v8311_v56 }
  0xaa   : > { %6221 = vmatpush1.bf16.msra.mxu0 %v6220_v17  ;;  %475 = vmatprep.mubr.f32.mxu0 %v12163_v34  ;;  %v11465_v17 = vand.u32 4294901760, %v8304_v21  ;;  %v913_v13 = vand.u32 4294901760, %v912_v39  ;;  %12166 = vst [vmem:[#allocation42_spill] sm:$0xff] %v8346_v27  ;;  %v12168_v29 = vand.u32 4294901760, %v8046_v32  ;;  %v502_v60 = vand.u32 4294901760, %v501_v19 }
  0xab   : > { %6223 = vmatprep.subr.bf16.mxu0 %v6222_v15  ;;  %v8348_v15 = vand.u32 4294901760, %v294_v62  ;;  %v925_v18 = vand.u32 4294901760, %v924_v12  ;;  %v512_v12 = vsub.f32 %v8311_v56, %v11466_v22  ;;  %v8364_v63 = vand.u32 4294901760, %v295_v55 }
  0xac   : > { %v918_v0 = vsub.f32 %v8304_v21, %v11465_v17  ;;  %v8357_v38 = vsub.f32 %v8046_v32, %v12168_v29  ;;  %v11482_v19 = vand.u32 4294901760, %v8342_v3 }
  0xad   : > { %481 = vmatmul.mubr.f32.gmra.mrb[2].mxu0 %v480_v14  ;;  %12167 = vst [vmem:[#allocation43_spill] sm:$0xff] %v8348_v15  ;;  %v11467_v14 = vand.u32 4294901760, %v8320_v57  ;;  %v6226_v39 = vpack.c.bf16 %v925_v18, %v913_v13  ;;  %12169 = vst [vmem:[#allocation44_spill] sm:$0xff] %v8364_v63  ;;  %v11472_v18 = vand.u32 4294901760, %v8330_v61  ;;  %v12171_v13 = vand.u32 4294901760, %v8048_v33 }
  0xae   : > { %486 = vmatprep.mubr.f32.mxu0 %v12163_v34  ;;  %6225 = vmatpush1.bf16.msra.mxu0 %v6224_v41  ;;  %v919_v17 = vand.u32 4294901760, %v918_v0  ;;  %v8372_v41 = vsub.f32 %v294_v62, %v8348_v15  ;;  %v513_v29 = vand.u32 4294901760, %v512_v12  ;;  %v8392_v56 = vsub.f32 %v295_v55, %v8364_v63 }
  0xaf   : > { %v930_v32 = vsub.f32 %v8320_v57, %v11467_v14  ;;  %6227 = vmatprep.subr.bf16.mxu0 %v6226_v39  ;;  %v8379_v0 = vsub.f32 %v8048_v33, %v12171_v13  ;;  %v8383_v14 = vand.u32 4294901760, %v296_v49  ;;  %v936_v62 = vsub.f32 %v8330_v61, %v11472_v18 }
  0xb0   : > { %12170 = vst [vmem:[#allocation45_spill] sm:$0xff] %v8372_v41  ;;  %v948_v39 = vsub.f32 %v8342_v3, %v11482_v19  ;;  %12173 = vst [vmem:[#allocation47_spill] sm:$0xff] %v8392_v56  ;;  %v12174_v13 = vand.u32 4294901760, %v8346_v27  ;;  %v11480_v18 = vand.u32 4294901760, %v8372_v41  ;;  %v12175_v12 = vand.u32 4294901760, %v8056_v35 }
  0xb1   : > { %492 = vmatmul.mubr.f32.gmra.mrb[4].mxu0 %v491_v30  ;;  %v931_v22 = vand.u32 4294901760, %v930_v32  ;;  %v11479_v30 = vand.u32 4294901760, %v8357_v38  ;;  %12172 = vst [vmem:[#allocation46_spill] sm:$0xff] %v8383_v14  ;;  %v937_v28 = vand.u32 4294901760, %v936_v62 }
  0xb2   : > { %497 = vmatprep.mubr.f32.mxu0 %v12163_v34  ;;  %v523_v9 = vsub.f32 %v8346_v27, %v12174_v13  ;;  %v949_v16 = vand.u32 4294901760, %v948_v39  ;;  %v8405_v55 = vsub.f32 %v8056_v35, %v12175_v12  ;;  %v8415_v13 = vsub.f32 %v296_v49, %v8383_v14 }
  0xb3   : > { %v6228_v33 = vpack.c.bf16 %v931_v22, %v919_v17  ;;  %v942_v32 = vsub.f32 %v8357_v38, %v11479_v30  ;;  %v12176_v17 = vand.u32 4294901760, %v8058_v36  ;;  %v8417_v39 = vand.u32 4294901760, %v297_v20 }
  0xb4   : > { %12177 = vst [vmem:[#allocation48_spill] sm:$0xff] %v8415_v13  ;;  %v6230_v62 = vpack.c.bf16 %v949_v16, %v937_v28  ;;  %v534_v12 = vsub.f32 %v8372_v41, %v11480_v18  ;;  %v12179_v49 = vand.u32 4294901760, %v8079_v44  ;;  %v298_v28 = vld [vmem:[%s7971_s16 + $0x50] sm:$0xff] }
  0xb5   : > { %503 = vmatmul.mubr.f32.gmra.mrb[6].mxu0 %v502_v60  ;;  %v8410_v22 = vsub.f32 %v8058_v36, %v12176_v17  ;;  %v11481_v60 = vand.u32 4294901760, %v8379_v0  ;;  %12178 = vst [vmem:[#allocation49_spill] sm:$0xff] %v8417_v39  ;;  %v943_v30 = vand.u32 4294901760, %v942_v32  ;;  %v524_v36 = vand.u32 4294901760, %v523_v9 }
  0xb6   : > { %508 = vmatprep.mubr.f32.mxu0 %v12163_v34  ;;  %6229 = vmatpush1.bf16.msra.mxu0 %v6228_v33  ;;  %v11484_v33 = vand.u32 4294901760, %v8392_v56  ;;  %v8429_v16 = vsub.f32 %v8079_v44, %v12179_v49  ;;  %v12180_v17 = vand.u32 4294901760, %v8081_v45  ;;  %v535_v19 = vand.u32 4294901760, %v534_v12 }
  0xb7   : > { %v954_v35 = vsub.f32 %v8379_v0, %v11481_v60  ;;  %6231 = vmatprep.subr.bf16.mxu0 %v6230_v62  ;;  %v11485_v9 = vand.u32 4294901760, %v8410_v22  ;;  %v8442_v60 = vsub.f32 %v297_v20, %v8417_v39  ;;  %v299_v20 = vld [vmem:[%s7971_s16 + $0x58] sm:$0xff]  ;;  %v12183_v62 = vand.u32 4294901760, %v8083_v46 }
  0xb8   : > { %v8438_v18 = vsub.f32 %v8081_v45, %v12180_v17  ;;  %v545_v45 = vsub.f32 %v8392_v56, %v11484_v33  ;;  %v8453_v17 = vand.u32 4294901760, %v298_v28  ;;  %v12184_v12 = vand.u32 4294901760, %v8085_v47 }
  0xb9   : > { %514 = vmatmul.mubr.f32.gmra.mrb[8].mxu0 %v513_v29  ;;  %v955_v32 = vand.u32 4294901760, %v954_v35  ;;  %v11483_v29 = vand.u32 4294901760, %v8405_v55  ;;  %12181 = vst [vmem:[#allocation50_spill] sm:$0xff] %v8442_v60  ;;  %v972_v35 = vsub.f32 %v8410_v22, %v11485_v9  ;;  %v12185_v9 = vand.u32 4294901760, %v8087_v48 }
  0xba   : > { %519 = vmatprep.mubr.f32.mxu0 %v12163_v34  ;;  %12182 = vst [vmem:[#allocation51_spill] sm:$0xff] %v8453_v17  ;;  %v8466_v33 = vsub.f32 %v8085_v47, %v12184_v12  ;;  %v11494_v41 = vand.u32 4294901760, %v8438_v18  ;;  %v546_v47 = vand.u32 4294901760, %v545_v45  ;;  %v8482_v12 = vsub.f32 %v298_v28, %v8453_v17 }
  0xbb   : > { %v6232_v44 = vpack.c.bf16 %v955_v32, %v943_v30  ;;  %v960_v49 = vsub.f32 %v8405_v55, %v11483_v29  ;;  %v973_v32 = vand.u32 4294901760, %v972_v35  ;;  %v8471_v56 = vsub.f32 %v8087_v48, %v12185_v9  ;;  %v300_v9 = vld [vmem:[%s7971_s16 + $0x60] sm:$0xff] }
  0xbc   : > { %v11495_v35 = vand.u32 4294901760, %v8442_v60  ;;  %12188 = vst [vmem:[#allocation52_spill] sm:$0xff] %v8482_v12  ;;  %v8484_v48 = vand.u32 4294901760, %v299_v20 }
  0xbd   : > { %525 = vmatmul.mubr.f32.gmra.mrb[10].mxu0 %v524_v36  ;;  %v961_v30 = vand.u32 4294901760, %v960_v49  ;;  %v8461_v36 = vsub.f32 %v8083_v46, %v12183_v62  ;;  %v12187_v46 = vand.u32 4294901760, %v8429_v16  ;;  %v11504_v27 = vand.u32 4294901760, %v8471_v56 }
  0xbe   : > { %530 = vmatprep.mubr.f32.mxu0 %v12163_v34  ;;  %6233 = vmatpush1.bf16.msra.mxu0 %v6232_v44  ;;  %v12186_v44 = vand.u32 4294901760, %v8415_v13  ;;  %12189 = vst [vmem:[#allocation53_spill] sm:$0xff] %v8484_v48 }
  0xbf   : > { %v6234_v29 = vpack.c.bf16 %v973_v32, %v961_v30  ;;  %v966_v62 = vsub.f32 %v8429_v16, %v12187_v46  ;;  %v978_v30 = vsub.f32 %v8438_v18, %v11494_v41  ;;  %v12190_v32 = vand.u32 4294901760, %v8098_v52 }
  0xc0   : > { %v556_v49 = vsub.f32 %v8415_v13, %v12186_v44  ;;  %v11500_v28 = vand.u32 4294901760, %v8461_v36  ;;  %v11503_v46 = vand.u32 4294901760, %v8466_v33  ;;  %v567_v13 = vsub.f32 %v8442_v60, %v11495_v35 }
  0xc1   : > { %536 = vmatmul.mubr.f32.gmra.mrb[12].mxu0 %v535_v19  ;;  %6235 = vmatprep.subr.bf16.mxu0 %v6234_v29  ;;  %v967_v44 = vand.u32 4294901760, %v966_v62  ;;  %v8494_v19 = vsub.f32 %v8098_v52, %v12190_v32  ;;  %v8501_v29 = vand.u32 4294901760, %v300_v9  ;;  %v979_v62 = vand.u32 4294901760, %v978_v30 }
  0xc2   : > { %541 = vmatprep.mubr.f32.mxu0 %v12163_v34  ;;  %v557_v45 = vand.u32 4294901760, %v556_v49  ;;  %v8506_v52 = vsub.f32 %v299_v20, %v8484_v48  ;;  %v301_v49 = vld [vmem:[%s7971_s16 + $0x68] sm:$0xff]  ;;  %v984_v32 = vsub.f32 %v8461_v36, %v11500_v28  ;;  %v996_v35 = vsub.f32 %v8466_v33, %v11503_v46 }
  0xc3   : > { %12191 = vst [vmem:[#allocation54_spill] sm:$0xff] %v8501_v29  ;;  %v6236_v30 = vpack.c.bf16 %v979_v62, %v967_v44  ;;  %v12193_v20 = vand.u32 4294901760, %v8100_v53  ;;  %v12194_v28 = vand.u32 4294901760, %v8102_v54  ;;  %v8530_v46 = vsub.f32 %v300_v9, %v8501_v29 }
  0xc4   : > { %12192 = vst [vmem:[#allocation55_spill] sm:$0xff] %v8506_v52  ;;  %v985_v60 = vand.u32 4294901760, %v984_v32  ;;  %v997_v48 = vand.u32 4294901760, %v996_v35  ;;  %v8532_v44 = vand.u32 4294901760, %v301_v49  ;;  %v11505_v62 = vand.u32 4294901760, %v8494_v19 }
  0xc5   : > { %547 = vmatmul.mubr.f32.gmra.mrb[14].mxu0 %v546_v47  ;;  %v990_v47 = vsub.f32 %v8471_v56, %v11504_v27  ;;  %v8522_v41 = vsub.f32 %v8100_v53, %v12193_v20  ;;  %v8527_v17 = vsub.f32 %v8102_v54, %v12194_v28  ;;  %12195 = vst [vmem:[#allocation56_spill] sm:$0xff] %v8530_v46  ;;  %v568_v27 = vand.u32 4294901760, %v567_v13  ;;  %v302_v54 = vld [vmem:[%s7971_s16 + $0x70] sm:$0xff] }
  0xc6   : > { %552 = vmatprep.mubr.f32.mxu0 %v12163_v34  ;;  %12196 = vst [vmem:[#allocation57_spill] sm:$0xff] %v8532_v44  ;;  %6237 = vmatpush1.bf16.msra.mxu0 %v6236_v30  ;;  %v12197_v53 = vand.u32 4294901760, %v8482_v12  ;;  %v11508_v35 = vand.u32 4294901760, %v8506_v52  ;;  %v6238_v20 = vpack.c.bf16 %v997_v48, %v985_v60  ;;  %v1002_v28 = vsub.f32 %v8494_v19, %v11505_v62 }
  0xc7   : > { %v991_v9 = vand.u32 4294901760, %v990_v47  ;;  %v12198_v30 = vand.u32 4294901760, %v8136_v2  ;;  %v11511_v48 = vand.u32 4294901760, %v8522_v41  ;;  %v12206_v29 = vand.u32 4294901760, %v8154_v51 }
  0xc8   : > { %v578_v32 = vsub.f32 %v8482_v12, %v12197_v53  ;;  %6239 = vmatprep.subr.bf16.mxu0 %v6238_v20  ;;  %v8551_v53 = vsub.f32 %v301_v49, %v8532_v44  ;;  %v1003_v60 = vand.u32 4294901760, %v1002_v28  ;;  %v589_v62 = vsub.f32 %v8506_v52, %v11508_v35  ;;  %v303_v49 = vld [vmem:[%s7971_s16 + $0x78] sm:$0xff]  ;;  %v304_v44 = vld [vmem:[%s7971_s16 + $0x80] sm:$0xff] }
  0xc9   : > { %558 = vmatmul.mubr.f32.gmra.mrb[16].mxu0 %v557_v45  ;;  %v8547_v13 = vsub.f32 %v8136_v2, %v12198_v30  ;;  %v8557_v12 = vand.u32 4294901760, %v302_v54  ;;  %v11514_v2 = vand.u32 4294901760, %v8527_v17  ;;  %v12201_v20 = vand.u32 4294901760, %v8138_v4 }
  0xca   : > { %563 = vmatprep.mubr.f32.mxu0 %v12163_v34  ;;  %12199 = vst [vmem:[#allocation58_spill] sm:$0xff] %v8551_v53  ;;  %v579_v47 = vand.u32 4294901760, %v578_v32  ;;  %v6240_v28 = vpack.c.bf16 %v1003_v60, %v991_v9  ;;  %v12202_v32 = vand.u32 4294901760, %v8152_v7  ;;  %v11522_v52 = vand.u32 4294901760, %v8551_v53 }
  0xcb   : > { %12200 = vst [vmem:[#allocation59_spill] sm:$0xff] %v8557_v12  ;;  %v8563_v30 = vsub.f32 %v8138_v4, %v12201_v20  ;;  %v1020_v45 = vsub.f32 %v8527_v17, %v11514_v2  ;;  %v12203_v4 = vand.u32 4294901760, %v8530_v46  ;;  %v11519_v60 = vand.u32 4294901760, %v8547_v13 }
  0xcc   : > { %v8573_v35 = vsub.f32 %v8152_v7, %v12202_v32  ;;  %6241 = vmatpush1.bf16.msra.mxu0 %v6240_v28  ;;  %v8584_v7 = vsub.f32 %v302_v54, %v8557_v12  ;;  %v8586_v32 = vand.u32 4294901760, %v303_v49  ;;  %v12207_v28 = vand.u32 4294901760, %v8180_v37 }
  0xcd   : > { %569 = vmatmul.mubr.f32.gmra.mrb[18].mxu0 %v568_v27  ;;  %v1008_v27 = vsub.f32 %v8522_v41, %v11511_v48  ;;  %v600_v20 = vsub.f32 %v8530_v46, %v12203_v4  ;;  %v590_v48 = vand.u32 4294901760, %v589_v62  ;;  %v1021_v2 = vand.u32 4294901760, %v1020_v45 }
  0xce   : > { %574 = vmatprep.mubr.f32.mxu0 %v12163_v34  ;;  %12204 = vst [vmem:[#allocation60_spill] sm:$0xff] %v8584_v7  ;;  %12205 = vst [vmem:[#allocation61_spill] sm:$0xff] %v8586_v32  ;;  %v8592_v4 = vsub.f32 %v8154_v51, %v12206_v29  ;;  %v1014_v62 = vsub.f32 %v8547_v13, %v11519_v60  ;;  %v11523_v54 = vand.u32 4294901760, %v8563_v30  ;;  %v8607_v51 = vand.u32 4294901760, %v304_v44  ;;  %v305_v29 = vld [vmem:[%s7971_s16 + $0x88] sm:$0xff]  ;;  %v306_v60 = vld [vmem:[%s7971_s16 + $0x90] sm:$0xff] }
  0xcf   : > { %v1009_v9 = vand.u32 4294901760, %v1008_v27  ;;  %v8597_v27 = vsub.f32 %v8180_v37, %v12207_v28  ;;  %v611_v45 = vsub.f32 %v8551_v53, %v11522_v52  ;;  %v601_v28 = vand.u32 4294901760, %v600_v20 }
  0xd0   : > { %12208 = vst [vmem:[#allocation62_spill] sm:$0xff] %v8607_v51  ;;  %v1015_v46 = vand.u32 4294901760, %v1014_v62  ;;  %v1026_v37 = vsub.f32 %v8563_v30, %v11523_v54  ;;  %v8615_v12 = vsub.f32 %v303_v49, %v8586_v32  ;;  %v11531_v54 = vand.u32 4294901760, %v8592_v4 }
  0xd1   : > { %580 = vmatmul.mubr.f32.gmra.mrb[20].mxu0 %v579_v47  ;;  %v6242_v47 = vpack.c.bf16 %v1021_v2, %v1009_v9  ;;  %v11530_v2 = vand.u32 4294901760, %v8573_v35  ;;  %v12210_v9 = vand.u32 4294901760, %v8182_v31  ;;  %v8626_v20 = vand.u32 4294901760, %v305_v29 }
  0xd2   : > { %585 = vmatprep.mubr.f32.mxu0 %v12163_v34  ;;  %12209 = vst [vmem:[#allocation63_spill] sm:$0xff] %v8615_v12  ;;  %v1027_v62 = vand.u32 4294901760, %v1026_v37  ;;  %v12213_v32 = vand.u32 4294901760, %v8584_v7 }
  0xd3   : > { %6243 = vmatprep.subr.bf16.mxu0 %v6242_v47  ;;  %v8621_v52 = vsub.f32 %v8182_v31, %v12210_v9  ;;  %12211 = vst [vmem:[#allocation64_spill] sm:$0xff] %v8626_v20  ;;  %v1032_v49 = vsub.f32 %v8573_v35, %v11530_v2  ;;  %v8632_v47 = vsub.f32 %v304_v44, %v8607_v51  ;;  %v612_v9 = vand.u32 4294901760, %v611_v45 }
  0xd4   : > { %v6244_v53 = vpack.c.bf16 %v1027_v62, %v1015_v46  ;;  %v1044_v31 = vsub.f32 %v8592_v4, %v11531_v54  ;;  %v622_v39 = vsub.f32 %v8584_v7, %v12213_v32  ;;  %v11535_v2 = vand.u32 4294901760, %v8615_v12 }
  0xd5   : > { %591 = vmatmul.mubr.f32.gmra.mrb[22].mxu0 %v590_v48  ;;  %v11532_v48 = vand.u32 4294901760, %v8597_v27  ;;  %12212 = vst [vmem:[#allocation65_spill] sm:$0xff] %v8632_v47  ;;  %v1033_v44 = vand.u32 4294901760, %v1032_v49  ;;  %v11536_v62 = vand.u32 4294901760, %v8621_v52  ;;  %v8648_v54 = vsub.f32 %v305_v29, %v8626_v20  ;;  %v307_v29 = vld [vmem:[%s7971_s16 + $0x98] sm:$0xff] }
  0xd6   : > { %596 = vmatprep.mubr.f32.mxu0 %v12163_v34  ;;  %6245 = vmatpush1.bf16.msra.mxu0 %v6244_v53  ;;  %v1045_v46 = vand.u32 4294901760, %v1044_v31  ;;  %v623_v49 = vand.u32 4294901760, %v622_v39  ;;  %v633_v53 = vsub.f32 %v8615_v12, %v11535_v2  ;;  %v12217_v39 = vand.u32 4294901760, %v8632_v47 }
  0xd7   : > { %v1038_v37 = vsub.f32 %v8597_v27, %v11532_v48  ;;  %12214 = vst [vmem:[#allocation66_spill] sm:$0xff] %v8648_v54  ;;  %v8650_v48 = vand.u32 4294901760, %v306_v60  ;;  %v1050_v32 = vsub.f32 %v8621_v52, %v11536_v62 }
  0xd9   : > { %602 = vmatmul.mubr.f32.gmra.mrb[24].mxu0 %v601_v28  ;;  %12215 = vst [vmem:[#allocation67_spill] sm:$0xff] %v8650_v48  ;;  %v6246_v28 = vpack.c.bf16 %v1045_v46, %v1033_v44  ;;  %v1039_v51 = vand.u32 4294901760, %v1038_v37  ;;  %v1051_v31 = vand.u32 4294901760, %v1050_v32  ;;  %v8662_v45 = vsub.f32 %v306_v60, %v8650_v48 }
  0xda   : > { %607 = vmatprep.mubr.f32.mxu0 %v12163_v34  ;;  %v6250_v37 = vpack.c.bf16 %v8117_v59, %v8114_v58  ;;  %v644_v44 = vsub.f32 %v8632_v47, %v12217_v39  ;;  %v11537_v46 = vand.u32 4294901760, %v8648_v54  ;;  %v634_v60 = vand.u32 4294901760, %v633_v53  ;;  %v308_v39 = vld [vmem:[%s7971_s16 + $0xa0] sm:$0xff] }
  0xdb   : > { %6247 = vmatprep.subr.bf16.mxu0 %v6246_v28  ;;  %12216 = vst [vmem:[#allocation68_spill] sm:$0xff] %v8662_v45  ;;  %v6248_v2 = vpack.c.bf16 %v1051_v31, %v1039_v51  ;;  %v8674_v32 = vand.u32 4294901760, %v307_v29  ;;  %v11540_v51 = vand.u32 4294901760, %v8662_v45  ;;  %v8689_v62 = vand.u32 4294901760, %v308_v39 }
  0xdc   : > { %v655_v53 = vsub.f32 %v8648_v54, %v11537_v46 }
  0xdd   : > { %613 = vmatmul.mubr.f32.gmra.mrb[26].mxu0 %v612_v9  ;;  %12218 = vst [vmem:[#allocation69_spill] sm:$0xff] %v8674_v32  ;;  %v8687_v31 = vsub.f32 %v307_v29, %v8674_v32  ;;  %12220 = vst [vmem:[#allocation71_spill] sm:$0xff] %v8689_v62  ;;  %v309_v9 = vld [vmem:[%s7971_s16 + $0xa8] sm:$0xff]  ;;  %v310_v29 = vld [vmem:[%s7971_s16 + $0xb0] sm:$0xff] }
  0xde   : > { %618 = vmatprep.mubr.f32.mxu0 %v12163_v34  ;;  %6249 = vmatpush1.bf16.msra.mxu0 %v6248_v2  ;;  %v666_v2 = vsub.f32 %v8662_v45, %v11540_v51  ;;  %v8700_v46 = vand.u32 4294901760, %v309_v9  ;;  %v8704_v54 = vand.u32 4294901760, %v310_v29  ;;  %v311_v45 = vld [vmem:[%s7971_s16 + $0xb8] sm:$0xff] }
  0xdf   : > { %6251 = vmatprep.subr.bf16.mxu0 %v6250_v37  ;;  %12219 = vst [vmem:[#allocation70_spill] sm:$0xff] %v8687_v31  ;;  %v656_v37 = vand.u32 4294901760, %v655_v53  ;;  %v8726_v47 = vand.u32 4294901760, %v311_v45 }
  0xe0   : > { %12222 = vst [vmem:[#allocation73_spill] sm:$0xff] %v8700_v46  ;;  %v667_v28 = vand.u32 4294901760, %v666_v2  ;;  %12223 = vst [vmem:[#allocation74_spill] sm:$0xff] %v8704_v54  ;;  %v8711_v51 = vsub.f32 %v309_v9, %v8700_v46 }
  0xe1   : > { %624 = vmatmul.mubr.f32.gmra.mrb[28].mxu0 %v623_v49  ;;  %v645_v49 = vand.u32 4294901760, %v644_v44  ;;  %v11543_v44 = vand.u32 4294901760, %v8687_v31  ;;  %12226 = vst [vmem:[#allocation77_spill] sm:$0xff] %v8726_v47 }
  0xe2   : > { %629 = vmatprep.mubr.f32.mxu0 %v12163_v34  ;;  %12224 = vst [vmem:[#allocation75_spill] sm:$0xff] %v8711_v51 }
  0xe5   : > { %635 = vmatmul.mubr.f32.gmra.mrb[30].mxu0 %v634_v60  ;;  %v8698_v60 = vsub.f32 %v308_v39, %v8689_v62  ;;  %v312_v39 = vld [vmem:[%s7971_s16 + $0xc0] sm:$0xff] }
  0xe6   : > { %640 = vmatprep.mubr.f32.mxu0 %v12163_v34 }
  0xe7   : > { %12221 = vst [vmem:[#allocation72_spill] sm:$0xff] %v8698_v60  ;;  %v11550_v53 = vand.u32 4294901760, %v8698_v60 }
  0xe9   : > { %646 = vmatmul.mubr.f32.gmra.mrb[32].mxu0 %v645_v49  ;;  %v677_v49 = vsub.f32 %v8687_v31, %v11543_v44  ;;  %v688_v9 = vsub.f32 %v8698_v60, %v11550_v53  ;;  %v11555_v31 = vand.u32 4294901760, %v8711_v51  ;;  %v313_v53 = vld [vmem:[%s7971_s16 + $0xc8] sm:$0xff] }
  0xea   : > { %651 = vmatprep.mubr.f32.mxu0 %v12163_v34 }
  0xeb   : > { %v678_v44 = vand.u32 4294901760, %v677_v49  ;;  %v689_v12 = vand.u32 4294901760, %v688_v9  ;;  %v8737_v49 = vand.u32 4294901760, %v312_v39 }
  0xed   : > { %657 = vmatmul.mubr.f32.gmra.mrb[34].mxu0 %v656_v37  ;;  %v8720_v37 = vsub.f32 %v310_v29, %v8704_v54  ;;  %v8735_v29 = vsub.f32 %v311_v45, %v8726_v47  ;;  %12228 = vst [vmem:[#allocation79_spill] sm:$0xff] %v8737_v49  ;;  %v8746_v7 = vsub.f32 %v312_v39, %v8737_v49  ;;  %v314_v45 = vld [vmem:[%s7971_s16 + $0xd0] sm:$0xff]  ;;  %v315_v39 = vld [vmem:[%s7971_s16 + $0xd8] sm:$0xff] }
  0xee   : > { %662 = vmatprep.mubr.f32.mxu0 %v12163_v34 }
  0xef   : > { %12225 = vst [vmem:[#allocation76_spill] sm:$0xff] %v8720_v37  ;;  %v11559_v2 = vand.u32 4294901760, %v8720_v37  ;;  %12227 = vst [vmem:[#allocation78_spill] sm:$0xff] %v8735_v29  ;;  %v11562_v9 = vand.u32 4294901760, %v8735_v29 }
  0xf0   : > { %12229 = vst [vmem:[#allocation80_spill] sm:$0xff] %v8746_v7 }
  0xf1   : > { %668 = vmatmul.mubr.f32.gmra.mrb[36].mxu0 %v667_v28  ;;  %v699_v28 = vsub.f32 %v8711_v51, %v11555_v31  ;;  %v710_v60 = vsub.f32 %v8720_v37, %v11559_v2  ;;  %v8748_v31 = vand.u32 4294901760, %v313_v53  ;;  %v721_v59 = vsub.f32 %v8735_v29, %v11562_v9 }
  0xf2   : > { %673 = vmatprep.mubr.f32.mxu0 %v12163_v34  ;;  %v8759_v2 = vand.u32 4294901760, %v314_v45  ;;  %v8763_v37 = vand.u32 4294901760, %v315_v39 }
  0xf3   : > { %12230 = vst [vmem:[#allocation81_spill] sm:$0xff] %v8748_v31  ;;  %v711_v51 = vand.u32 4294901760, %v710_v60  ;;  %v722_v60 = vand.u32 4294901760, %v721_v59 }
  0xf4   : > { %12232 = vst [vmem:[#allocation83_spill] sm:$0xff] %v8759_v2  ;;  %12233 = vst [vmem:[#allocation84_spill] sm:$0xff] %v8763_v37  ;;  %v8770_v29 = vsub.f32 %v314_v45, %v8759_v2  ;;  %v8775_v58 = vsub.f32 %v315_v39, %v8763_v37  ;;  %v317_v45 = vld [vmem:[%s7971_s16 + $0xe8] sm:$0xff] }
  0xf5   : > { %679 = vmatmul.mubr.f32.gmra.mrb[38].mxu0 %v678_v44  ;;  %v700_v44 = vand.u32 4294901760, %v699_v28  ;;  %v8757_v28 = vsub.f32 %v313_v53, %v8748_v31  ;;  %v316_v53 = vld [vmem:[%s7971_s16 + $0xe0] sm:$0xff] }
  0xf6   : > { %684 = vmatprep.mubr.f32.mxu0 %v12163_v34  ;;  %12234 = vst [vmem:[#allocation85_spill] sm:$0xff] %v8770_v29  ;;  %12235 = vst [vmem:[#allocation86_spill] sm:$0xff] %v8775_v58 }
  0xf7   : > { %12231 = vst [vmem:[#allocation82_spill] sm:$0xff] %v8757_v28  ;;  %v11573_v9 = vand.u32 4294901760, %v8757_v28 }
  0xf9   : > { %690 = vmatmul.mubr.f32.gmra.mrb[40].mxu0 %v689_v12  ;;  %v11568_v12 = vand.u32 4294901760, %v8746_v7  ;;  %v743_v59 = vsub.f32 %v8757_v28, %v11573_v9  ;;  %v318_v9 = vld [vmem:[%s7971_s16 + $0xf0] sm:$0xff] }
  0xfa   : > { %695 = vmatprep.mubr.f32.mxu0 %v12163_v34 }
  0xfb   : > { %v744_v2 = vand.u32 4294901760, %v743_v59 }
  0xfd   : > { %701 = vmatmul.mubr.f32.gmra.mrb[42].mxu0 %v700_v44  ;;  %v732_v44 = vsub.f32 %v8746_v7, %v11568_v12  ;;  %v8781_v12 = vand.u32 4294901760, %v316_v53  ;;  %v11583_v7 = vand.u32 4294901760, %v8775_v58 }
  0xfe   : > { %706 = vmatprep.mubr.f32.mxu0 %v12163_v34 }
  0xff   : > { %v733_v31 = vand.u32 4294901760, %v732_v44  ;;  %12236 = vst [vmem:[#allocation87_spill] sm:$0xff] %v8781_v12  ;;  %v8792_v44 = vand.u32 4294901760, %v317_v45  ;;  %v765_v28 = vsub.f32 %v8775_v58, %v11583_v7 }
 0x101   : > { %712 = vmatmul.mubr.f32.gmra.mrb[44].mxu0 %v711_v51  ;;  %v11578_v51 = vand.u32 4294901760, %v8770_v29  ;;  %12238 = vst [vmem:[#allocation89_spill] sm:$0xff] %v8792_v44  ;;  %v8801_v37 = vsub.f32 %v317_v45, %v8792_v44  ;;  %v320_v45 = vld [vmem:[%s7971_s16 + $0x100] sm:$0xff] }
 0x102   : > { %717 = vmatprep.mubr.f32.mxu0 %v12163_v34 }
 0x103   : > { %v754_v39 = vsub.f32 %v8770_v29, %v11578_v51  ;;  %12239 = vst [vmem:[#allocation90_spill] sm:$0xff] %v8801_v37  ;;  %v8803_v51 = vand.u32 4294901760, %v318_v9 }
 0x105   : > { %723 = vmatmul.mubr.f32.gmra.mrb[46].mxu0 %v722_v60  ;;  %v8790_v60 = vsub.f32 %v316_v53, %v8781_v12  ;;  %12240 = vst [vmem:[#allocation91_spill] sm:$0xff] %v8803_v51  ;;  %v319_v53 = vld [vmem:[%s7971_s16 + $0xf8] sm:$0xff]  ;;  %v766_v12 = vand.u32 4294901760, %v765_v28  ;;  %v8814_v7 = vsub.f32 %v318_v9, %v8803_v51  ;;  %v321_v9 = vld [vmem:[%s7971_s16 + $0x108] sm:$0xff] }
 0x106   : > { %728 = vmatprep.mubr.f32.mxu0 %v12163_v34  ;;  %v8807_v29 = vand.u32 4294901760, %v319_v53 }
 0x107   : > { %12237 = vst [vmem:[#allocation88_spill] sm:$0xff] %v8790_v60  ;;  %v11588_v59 = vand.u32 4294901760, %v8790_v60  ;;  %12242 = vst [vmem:[#allocation93_spill] sm:$0xff] %v8814_v7 }
 0x108   : > { %12241 = vst [vmem:[#allocation92_spill] sm:$0xff] %v8807_v29  ;;  %v8819_v58 = vsub.f32 %v319_v53, %v8807_v29 }
 0x109   : > { %734 = vmatmul.mubr.f32.gmra.mrb[48].mxu0 %v733_v31  ;;  %v755_v31 = vand.u32 4294901760, %v754_v39  ;;  %v11593_v39 = vand.u32 4294901760, %v8801_v37 }
 0x10a   : > { %739 = vmatprep.mubr.f32.mxu0 %v12163_v34  ;;  %12243 = vst [vmem:[#allocation94_spill] sm:$0xff] %v8819_v58 }
 0x10b   : > { %v787_v28 = vsub.f32 %v8801_v37, %v11593_v39  ;;  %v322_v39 = vld [vmem:[%s7971_s16 + $0x110] sm:$0xff] }
 0x10d   : > { %745 = vmatmul.mubr.f32.gmra.mrb[50].mxu0 %v744_v2  ;;  %v776_v2 = vsub.f32 %v8790_v60, %v11588_v59  ;;  %v8825_v59 = vand.u32 4294901760, %v320_v45  ;;  %v11603_v60 = vand.u32 4294901760, %v8819_v58  ;;  %v788_v51 = vand.u32 4294901760, %v787_v28 }
 0x10e   : > { %750 = vmatprep.mubr.f32.mxu0 %v12163_v34 }
 0x10f   : > { %v777_v44 = vand.u32 4294901760, %v776_v2  ;;  %12244 = vst [vmem:[#allocation95_spill] sm:$0xff] %v8825_v59  ;;  %v8834_v53 = vsub.f32 %v320_v45, %v8825_v59  ;;  %v8836_v2 = vand.u32 4294901760, %v321_v9  ;;  %v809_v37 = vsub.f32 %v8819_v58, %v11603_v60  ;;  %v323_v45 = vld [vmem:[%s7971_s16 + $0x118] sm:$0xff] }
 0x111   : > { %756 = vmatmul.mubr.f32.gmra.mrb[52].mxu0 %v755_v31  ;;  %v11598_v31 = vand.u32 4294901760, %v8814_v7  ;;  %12245 = vst [vmem:[#allocation96_spill] sm:$0xff] %v8834_v53  ;;  %12246 = vst [vmem:[#allocation97_spill] sm:$0xff] %v8836_v2  ;;  %v8845_v28 = vsub.f32 %v321_v9, %v8836_v2 }
 0x112   : > { %761 = vmatprep.mubr.f32.mxu0 %v12163_v34 }
 0x113   : > { %12247 = vst [vmem:[#allocation98_spill] sm:$0xff] %v8845_v28  ;;  %v11607_v60 = vand.u32 4294901760, %v8845_v28 }
 0x115   : > { %767 = vmatmul.mubr.f32.gmra.mrb[54].mxu0 %v766_v12  ;;  %v798_v12 = vsub.f32 %v8814_v7, %v11598_v31  ;;  %v8847_v31 = vand.u32 4294901760, %v322_v39  ;;  %v810_v7 = vand.u32 4294901760, %v809_v37  ;;  %v831_v37 = vsub.f32 %v8845_v28, %v11607_v60 }
 0x116   : > { %772 = vmatprep.mubr.f32.mxu0 %v12163_v34 }
 0x117   : > { %v799_v29 = vand.u32 4294901760, %v798_v12  ;;  %12248 = vst [vmem:[#allocation99_spill] sm:$0xff] %v8847_v31  ;;  %v8858_v12 = vand.u32 4294901760, %v323_v45 }
 0x119   : > { %778 = vmatmul.mubr.f32.gmra.mrb[56].mxu0 %v777_v44  ;;  %v11606_v44 = vand.u32 4294901760, %v8834_v53  ;;  %12250 = vst [vmem:[#allocation101_spill] sm:$0xff] %v8858_v12  ;;  %v8866_v58 = vsub.f32 %v323_v45, %v8858_v12 }
 0x11a   : > { %783 = vmatprep.mubr.f32.mxu0 %v12163_v34 }
 0x11b   : > { %v820_v59 = vsub.f32 %v8834_v53, %v11606_v44  ;;  %12251 = vst [vmem:[#allocation102_spill] sm:$0xff] %v8866_v58 }
 0x11d   : > { %789 = vmatmul.mubr.f32.gmra.mrb[58].mxu0 %v788_v51  ;;  %v8856_v51 = vsub.f32 %v322_v39, %v8847_v31  ;;  %v821_v9 = vand.u32 4294901760, %v820_v59  ;;  %v832_v39 = vand.u32 4294901760, %v831_v37  ;;  %v12254_v37 = vpack.c.bf16 %v8285_v23, %v8252_v1 }
 0x11e   : > { %794 = vmatprep.mubr.f32.mxu0 %v12163_v34 }
 0x11f   : > { %12249 = vst [vmem:[#allocation100_spill] sm:$0xff] %v8856_v51 }
 0x121   : > { %800 = vmatmul.mubr.f32.gmra.mrb[60].mxu0 %v799_v29  ;;  %v11609_v29 = vand.u32 4294901760, %v8856_v51 }
 0x122   : > { %805 = vmatprep.mubr.f32.mxu0 %v12163_v34 }
 0x123   : > { %v842_v44 = vsub.f32 %v8856_v51, %v11609_v29  ;;  %v12266_v29 = vld [vmem:[#allocation62_spill] sm:$0xff] }
 0x125   : > { %811 = vmatmul.mubr.f32.gmra.mrb[62].mxu0 %v810_v7  ;;  %v11608_v7 = vand.u32 4294901760, %v8866_v58  ;;  %v843_v59 = vand.u32 4294901760, %v842_v44  ;;  %v12252_v44 = vpack.c.bf16 %v8206_v43, %v8159_v50 }
 0x126   : > { %816 = vmatprep.mubr.f32.mxu0 %v12163_v34 }
 0x127   : > { %v853_v60 = vsub.f32 %v8866_v58, %v11608_v7  ;;  %v12265_v7 = vld [vmem:[#allocation61_spill] sm:$0xff] }
 0x129   : > { %822 = vmatmul.mubr.f32.gmra.mrb[64].mxu0 %v821_v9  ;;  %v854_v45 = vand.u32 4294901760, %v853_v60  ;;  %v6252_v9 = vpack.c.bf16 %v8143_v5, %v8127_v42  ;;  %v12253_v60 = vpack.c.bf16 %v8220_v10, %v8215_v40 }
 0x12a   : > { %827 = vmatprep.mubr.f32.mxu0 %v12163_v34 }
 0x12d   : > { %833 = vmatmul.mubr.f32.gmra.mrb[66].mxu0 %v832_v39  ;;  %v12255_v39 = vpack.c.bf16 %v8320_v57, %v8304_v21 }
 0x12e   : > { %838 = vmatprep.mubr.f32.mxu0 %v12163_v34 }
 0x131   : > { %844 = vmatmul.mubr.f32.gmra.mrb[68].mxu0 %v843_v59  ;;  %v12256_v59 = vpack.c.bf16 %v8342_v3, %v8330_v61 }
 0x132   : > { %849 = vmatprep.mubr.f32.mxu0 %v12163_v34 }
 0x135   : > { %855 = vmatmul.mubr.f32.gmra.mrb[70].mxu0 %v854_v45  ;;  %v6266_v45 = vpack.c.bf16 %v8410_v22, %v8405_v55 }
 0x136   : > { %1085 = vmatprep.mubr.f32.mxu0 %v12163_v34 }
 0x139   : > { %1087 = vmatmul.mubr.f32.vlgmr.msra.gmra.mrb[0].mxu0 %v8161_v6  ;;  %v12321_v6 = vld [vmem:[#allocation86_spill] sm:$0xff] }
 0x13a   : > { %6253 = vmatpush1.bf16.msra.mxu0 %v6252_v9  ;;  %1092 = vmatprep.mubr.f32.mxu0 %v12163_v34  ;;  %v12257_v9 = vpack.c.bf16 %v8379_v0, %v8357_v38 }
 0x13b   : > { %6255 = vmatprep.subr.bf16.mxu0 %v12252_v44  ;;  %v6268_v44 = vpack.c.bf16 %v8438_v18, %v8429_v16 }
 0x13d   : > { %1094 = vmatmul.mubr.f32.gmra.mrb[2].mxu0 %v8200_v25  ;;  %v12318_v25 = vld [vmem:[#allocation80_spill] sm:$0xff] }
 0x13e   : > { %1099 = vmatprep.mubr.f32.mxu0 %v12163_v34  ;;  %6257 = vmatpush1.bf16.msra.mxu0 %v12253_v60  ;;  %v6270_v60 = vpack.c.bf16 %v8466_v33, %v8461_v36 }
 0x13f   : > { %6259 = vmatprep.subr.bf16.mxu0 %v12254_v37  ;;  %v6272_v37 = vpack.c.bf16 %v8494_v19, %v8471_v56 }
 0x141   : > { %1101 = vmatmul.mubr.f32.gmra.mrb[4].mxu0 %v8210_v11  ;;  %v12315_v11 = vld [vmem:[#allocation75_spill] sm:$0xff] }
 0x142   : > { %1106 = vmatprep.mubr.f32.mxu0 %v12163_v34  ;;  %6261 = vmatpush1.bf16.msra.mxu0 %v12255_v39  ;;  %v6274_v39 = vpack.c.bf16 %v8527_v17, %v8522_v41 }
 0x143   : > { %6263 = vmatprep.subr.bf16.mxu0 %v12256_v59  ;;  %v6276_v59 = vpack.c.bf16 %v8563_v30, %v8547_v13 }
 0x145   : > { %1108 = vmatmul.mubr.f32.gmra.mrb[6].mxu0 %v8239_v26  ;;  %v12312_v26 = vld [vmem:[#allocation68_spill] sm:$0xff] }
 0x146   : > { %1113 = vmatprep.mubr.f32.mxu0 %v12163_v34  ;;  %6265 = vmatpush1.bf16.msra.mxu0 %v12257_v9  ;;  %v6280_v9 = vpack.c.bf16 %v8621_v52, %v8597_v27 }
 0x147   : > { %6267 = vmatprep.subr.bf16.mxu0 %v6266_v45  ;;  %v6278_v45 = vpack.c.bf16 %v8592_v4, %v8573_v35 }
 0x149   : > { %1115 = vmatmul.mubr.f32.gmra.mrb[8].mxu0 %v8288_v24 }
 0x14a   : > { %1120 = vmatprep.mubr.f32.mxu0 %v12163_v34  ;;  %6269 = vmatpush1.bf16.msra.mxu0 %v6268_v44  ;;  %v12258_v44 = vld [vmem:[#allocation13_spill] sm:$0xff] }
 0x14b   : > { %6271 = vmatprep.subr.bf16.mxu0 %v6270_v60  ;;  %v12259_v60 = vld [vmem:[#allocation49_spill] sm:$0xff] }
 0x14d   : > { %1122 = vmatmul.mubr.f32.gmra.mrb[10].mxu0 %v8314_v8 }
 0x14e   : > { %1127 = vmatprep.mubr.f32.mxu0 %v12163_v34  ;;  %6273 = vmatpush1.bf16.msra.mxu0 %v6272_v37  ;;  %v12260_v37 = vld [vmem:[#allocation51_spill] sm:$0xff] }
 0x14f   : > { %6275 = vmatprep.subr.bf16.mxu0 %v6274_v39  ;;  %v12261_v39 = vld [vmem:[#allocation53_spill] sm:$0xff] }
 0x151   : > { %1129 = vmatmul.mubr.f32.gmra.mrb[12].mxu0 %v8348_v15  ;;  %v12296_v15 = vld [vmem:[#allocation22_spill] sm:$0xff] }
 0x152   : > { %1134 = vmatprep.mubr.f32.mxu0 %v12163_v34  ;;  %6277 = vmatpush1.bf16.msra.mxu0 %v6276_v59  ;;  %v12262_v59 = vld [vmem:[#allocation54_spill] sm:$0xff]  ;;  %v12297_v8 = vand.u32 4294901760, %v12296_v15  ;;  %v12306_v15 = vld [vmem:[#allocation56_spill] sm:$0xff] }
 0x153   : > { %6279 = vmatprep.subr.bf16.mxu0 %v6278_v45  ;;  %v12263_v45 = vld [vmem:[#allocation57_spill] sm:$0xff] }
 0x155   : > { %1136 = vmatmul.mubr.f32.gmra.mrb[14].mxu0 %v8364_v63  ;;  %v12295_v63 = vld [vmem:[#allocation35_spill] sm:$0xff] }
 0x156   : > { %1141 = vmatprep.mubr.f32.mxu0 %v12163_v34  ;;  %6281 = vmatpush1.bf16.msra.mxu0 %v6280_v9  ;;  %v12264_v9 = vld [vmem:[#allocation59_spill] sm:$0xff] }
 0x157   : > { %6283 = vmatprep.subr.bf16.mxu0 %v12258_v44 }
 0x159   : > { %1143 = vmatmul.mubr.f32.gmra.mrb[16].mxu0 %v8383_v14  ;;  %v12294_v14 = vld [vmem:[#allocation33_spill] sm:$0xff] }
 0x15a   : > { %1148 = vmatprep.mubr.f32.mxu0 %v12163_v34 }
 0x15d   : > { %1150 = vmatmul.mubr.f32.gmra.mrb[18].mxu0 %v12259_v60  ;;  %v12293_v60 = vld [vmem:[#allocation45_spill] sm:$0xff] }
 0x15e   : > { %1155 = vmatprep.mubr.f32.mxu0 %v12163_v34 }
 0x161   : > { %1157 = vmatmul.mubr.f32.gmra.mrb[20].mxu0 %v12260_v37  ;;  %v12292_v37 = vld [vmem:[#allocation28_spill] sm:$0xff] }
 0x162   : > { %1162 = vmatprep.mubr.f32.mxu0 %v12163_v34 }
 0x165   : > { %1164 = vmatmul.mubr.f32.gmra.mrb[22].mxu0 %v12261_v39  ;;  %v12291_v39 = vld [vmem:[#allocation27_spill] sm:$0xff] }
 0x166   : > { %1169 = vmatprep.mubr.f32.mxu0 %v12163_v34 }
 0x169   : > { %1171 = vmatmul.mubr.f32.gmra.mrb[24].mxu0 %v12262_v59  ;;  %v12290_v59 = vld [vmem:[#allocation42_spill] sm:$0xff] }
 0x16a   : > { %1176 = vmatprep.mubr.f32.mxu0 %v12163_v34 }
 0x16d   : > { %1178 = vmatmul.mubr.f32.gmra.mrb[26].mxu0 %v12263_v45  ;;  %v12289_v45 = vld [vmem:[#allocation25_spill] sm:$0xff] }
 0x16e   : > { %1183 = vmatprep.mubr.f32.mxu0 %v12163_v34 }
 0x171   : > { %1185 = vmatmul.mubr.f32.gmra.mrb[28].mxu0 %v12264_v9  ;;  %v12288_v9 = vld [vmem:[#allocation24_spill] sm:$0xff] }
 0x172   : > { %1190 = vmatprep.mubr.f32.mxu0 %v12163_v34 }
 0x175   : > { %1192 = vmatmul.mubr.f32.gmra.mrb[30].mxu0 %v12265_v7  ;;  %v12287_v7 = vld [vmem:[#allocation40_spill] sm:$0xff] }
 0x176   : > { %1197 = vmatprep.mubr.f32.mxu0 %v12163_v34 }
 0x179   : > { %1199 = vmatmul.mubr.f32.gmra.mrb[32].mxu0 %v12266_v29  ;;  %v12286_v29 = vld [vmem:[#allocation21_spill] sm:$0xff] }
 0x17a   : > { %1204 = vmatprep.mubr.f32.mxu0 %v12163_v34 }
 0x17d   : > { %1206 = vmatmul.mubr.f32.gmra.mrb[34].mxu0 %v8626_v20  ;;  %v12285_v20 = vld [vmem:[#allocation20_spill] sm:$0xff] }
 0x17e   : > { %1211 = vmatprep.mubr.f32.mxu0 %v12163_v34 }
 0x181   : > { %1213 = vmatmul.mubr.f32.gmra.mrb[36].mxu0 %v8650_v48  ;;  %v12284_v48 = vld [vmem:[#allocation38_spill] sm:$0xff] }
 0x182   : > { %1218 = vmatprep.mubr.f32.mxu0 %v12163_v34 }
 0x185   : > { %1220 = vmatmul.mubr.f32.gmra.mrb[38].mxu0 %v8674_v32  ;;  %v12267_v32 = vld [vmem:[#allocation81_spill] sm:$0xff] }
 0x186   : > { %1225 = vmatprep.mubr.f32.mxu0 %v12163_v34 }
 0x189   : > { %1227 = vmatmul.mubr.f32.gmra.mrb[40].mxu0 %v8689_v62  ;;  %v12268_v62 = vld [vmem:[#allocation83_spill] sm:$0xff] }
 0x18a   : > { %1232 = vmatprep.mubr.f32.mxu0 %v12163_v34 }
 0x18d   : > { %1234 = vmatmul.mubr.f32.gmra.mrb[42].mxu0 %v8700_v46  ;;  %v12269_v46 = vld [vmem:[#allocation84_spill] sm:$0xff] }
 0x18e   : > { %1239 = vmatprep.mubr.f32.mxu0 %v12163_v34 }
 0x191   : > { %1241 = vmatmul.mubr.f32.gmra.mrb[44].mxu0 %v8704_v54  ;;  %v12270_v54 = vld [vmem:[#allocation87_spill] sm:$0xff] }
 0x192   : > { %1246 = vmatprep.mubr.f32.mxu0 %v12163_v34 }
 0x195   : > { %1248 = vmatmul.mubr.f32.gmra.mrb[46].mxu0 %v8726_v47  ;;  %v12271_v47 = vld [vmem:[#allocation89_spill] sm:$0xff] }
 0x196   : > { %1253 = vmatprep.mubr.f32.mxu0 %v12163_v34 }
 0x199   : > { %1255 = vmatmul.mubr.f32.gmra.mrb[48].mxu0 %v8737_v49  ;;  %v12272_v49 = vld [vmem:[#allocation91_spill] sm:$0xff] }
 0x19a   : > { %1260 = vmatprep.mubr.f32.mxu0 %v12163_v34 }
 0x19d   : > { %1262 = vmatmul.mubr.f32.gmra.mrb[50].mxu0 %v12267_v32  ;;  %v12273_v32 = vld [vmem:[#allocation92_spill] sm:$0xff] }
 0x19e   : > { %1267 = vmatprep.mubr.f32.mxu0 %v12163_v34 }
 0x1a1   : > { %1269 = vmatmul.mubr.f32.gmra.mrb[52].mxu0 %v12268_v62  ;;  %v12274_v62 = vld [vmem:[#allocation95_spill] sm:$0xff] }
 0x1a2   : > { %1274 = vmatprep.mubr.f32.mxu0 %v12163_v34 }
 0x1a5   : > { %1276 = vmatmul.mubr.f32.gmra.mrb[54].mxu0 %v12269_v46  ;;  %v12283_v46 = vld [vmem:[#allocation19_spill] sm:$0xff] }
 0x1a6   : > { %1281 = vmatprep.mubr.f32.mxu0 %v12163_v34 }
 0x1a9   : > { %1283 = vmatmul.mubr.f32.gmra.mrb[56].mxu0 %v12270_v54  ;;  %v12281_v54 = vld [vmem:[#allocation37_spill] sm:$0xff] }
 0x1aa   : > { %1288 = vmatprep.mubr.f32.mxu0 %v12163_v34 }
 0x1ad   : > { %1290 = vmatmul.mubr.f32.gmra.mrb[58].mxu0 %v12271_v47  ;;  %v12278_v47 = vld [vmem:[#allocation32_spill] sm:$0xff] }
 0x1ae   : > { %1295 = vmatprep.mubr.f32.mxu0 %v12163_v34 }
 0x1b1   : > { %1297 = vmatmul.mubr.f32.gmra.mrb[60].mxu0 %v12272_v49  ;;  %v12275_v49 = vld [vmem:[#allocation29_spill] sm:$0xff] }
 0x1b2   : > { %1302 = vmatprep.mubr.f32.mxu0 %v12163_v34 }
 0x1b5   : > { %1304 = vmatmul.mubr.f32.gmra.mrb[62].mxu0 %v12273_v32  ;;  %v12276_v32 = vld [vmem:[#allocation14_spill] sm:$0xff] }
 0x1b6   : > { %1309 = vmatprep.mubr.f32.mxu0 %v12163_v34 }
 0x1b9   : > { %1311 = vmatmul.mubr.f32.gmra.mrb[64].mxu0 %v12274_v62  ;;  %v12277_v62 = vld [vmem:[#allocation15_spill] sm:$0xff] }
 0x1ba   : > { %1316 = vmatprep.mubr.f32.mxu0 %v12163_v34 }
 0x1bd   : > { %1318 = vmatmul.mubr.f32.gmra.mrb[66].mxu0 %v8836_v2  ;;  %v12279_v2 = vld [vmem:[#allocation16_spill] sm:$0xff] }
 0x1be   : > { %1323 = vmatprep.mubr.f32.mxu0 %v12163_v34 }
 0x1c1   : > { %1325 = vmatmul.mubr.f32.gmra.mrb[68].mxu0 %v8847_v31  ;;  %v12280_v31 = vld [vmem:[#allocation17_spill] sm:$0xff] }
 0x1c2   : > { %1330 = vmatprep.mubr.f32.mxu0 %v12163_v34 }
 0x1c5   : > { %1332 = vmatmul.mubr.f32.gmra.mrb[70].mxu0 %v8858_v12  ;;  %v12282_v12 = vld [vmem:[#allocation18_spill] sm:$0xff] }
 0x1c6   : > { %1466 = vmatprep.mubr.f32.mxu0 %v12163_v34 }
 0x1c9   : > { %1469 = vmatmul.mubr.f32.vlgmr.msra.gmra.mrb[0].mxu0 %v12275_v49 }
 0x1ca   : > { %6285 = vmatpush1.bf16.msra.mxu0 %v12276_v32  ;;  %1474 = vmatprep.mubr.f32.mxu0 %v12163_v34  ;;  %v12320_v32 = vld [vmem:[#allocation85_spill] sm:$0xff] }
 0x1cb   : > { %6287 = vmatprep.subr.bf16.mxu0 %v12277_v62  ;;  %v12319_v62 = vld [vmem:[#allocation82_spill] sm:$0xff] }
 0x1cd   : > { %1477 = vmatmul.mubr.f32.gmra.mrb[2].mxu0 %v12278_v47 }
 0x1ce   : > { %1482 = vmatprep.mubr.f32.mxu0 %v12163_v34  ;;  %6289 = vmatpush1.bf16.msra.mxu0 %v12279_v2  ;;  %v12317_v2 = vld [vmem:[#allocation78_spill] sm:$0xff] }
 0x1cf   : > { %6291 = vmatprep.subr.bf16.mxu0 %v12280_v31  ;;  %v12316_v31 = vld [vmem:[#allocation76_spill] sm:$0xff] }
 0x1d1   : > { %1485 = vmatmul.mubr.f32.gmra.mrb[4].mxu0 %v12281_v54 }
 0x1d2   : > { %1490 = vmatprep.mubr.f32.mxu0 %v12163_v34  ;;  %6293 = vmatpush1.bf16.msra.mxu0 %v12282_v12  ;;  %v12314_v12 = vld [vmem:[#allocation72_spill] sm:$0xff] }
 0x1d3   : > { %6295 = vmatprep.subr.bf16.mxu0 %v12283_v46  ;;  %v12313_v46 = vld [vmem:[#allocation70_spill] sm:$0xff] }
 0x1d5   : > { %1493 = vmatmul.mubr.f32.gmra.mrb[6].mxu0 %v12284_v48 }
 0x1d6   : > { %1498 = vmatprep.mubr.f32.mxu0 %v12163_v34  ;;  %6297 = vmatpush1.bf16.msra.mxu0 %v12285_v20  ;;  %v12303_v20 = vld [vmem:[#allocation50_spill] sm:$0xff] }
 0x1d7   : > { %6299 = vmatprep.subr.bf16.mxu0 %v12286_v29  ;;  %v12300_v29 = vld [vmem:[#allocation47_spill] sm:$0xff] }
 0x1d9   : > { %1501 = vmatmul.mubr.f32.gmra.mrb[8].mxu0 %v12287_v7 }
 0x1da   : > { %1506 = vmatprep.mubr.f32.mxu0 %v12163_v34  ;;  %6301 = vmatpush1.bf16.msra.mxu0 %v12288_v9  ;;  %v12298_v9 = vld [vmem:[#allocation23_spill] sm:$0xff] }
 0x1db   : > { %6303 = vmatprep.subr.bf16.mxu0 %v12289_v45  ;;  %v12299_v45 = vand.u32 4294901760, %v12298_v9  ;;  %v12309_v9 = vld [vmem:[#allocation63_spill] sm:$0xff] }
 0x1dd   : > { %1509 = vmatmul.mubr.f32.gmra.mrb[10].mxu0 %v12290_v59  ;;  %v6314_v24 = vpack.c.bf16 %v12299_v45, %v12297_v8  ;;  %v12305_v8 = vld [vmem:[#allocation55_spill] sm:$0xff]  ;;  %v12308_v45 = vld [vmem:[#allocation60_spill] sm:$0xff] }
 0x1de   : > { %1514 = vmatprep.mubr.f32.mxu0 %v12163_v34  ;;  %6305 = vmatpush1.bf16.msra.mxu0 %v12291_v39  ;;  %v12301_v39 = vld [vmem:[#allocation36_spill] sm:$0xff] }
 0x1df   : > { %6307 = vmatprep.subr.bf16.mxu0 %v12292_v37  ;;  %v12302_v37 = vld [vmem:[#allocation48_spill] sm:$0xff] }
 0x1e1   : > { %1517 = vmatmul.mubr.f32.gmra.mrb[12].mxu0 %v12293_v60 }
 0x1e2   : > { %1522 = vmatprep.mubr.f32.mxu0 %v12163_v34  ;;  %6309 = vmatpush1.bf16.msra.mxu0 %v12294_v14  ;;  %v12311_v14 = vld [vmem:[#allocation66_spill] sm:$0xff] }
 0x1e3   : > { %6311 = vmatprep.subr.bf16.mxu0 %v12295_v63  ;;  %v12304_v63 = vld [vmem:[#allocation52_spill] sm:$0xff] }
 0x1e5   : > { %1525 = vmatmul.mubr.f32.gmra.mrb[14].mxu0 %v12300_v29 }
 0x1e6   : > { %1530 = vmatprep.mubr.f32.mxu0 %v12163_v34  ;;  %6313 = vmatpush1.bf16.msra.mxu0 %v12301_v39  ;;  %v12310_v39 = vld [vmem:[#allocation65_spill] sm:$0xff] }
 0x1e7   : > { %6315 = vmatprep.subr.bf16.mxu0 %v6314_v24  ;;  %v12307_v24 = vld [vmem:[#allocation58_spill] sm:$0xff] }
 0x1e9   : > { %1533 = vmatmul.mubr.f32.gmra.mrb[16].mxu0 %v12302_v37 }
 0x1ea   : > { %1538 = vmatprep.mubr.f32.mxu0 %v12163_v34 }
 0x1ed   : > { %1541 = vmatmul.mubr.f32.gmra.mrb[18].mxu0 %v12303_v20 }
 0x1ee   : > { %1546 = vmatprep.mubr.f32.mxu0 %v12163_v34 }
 0x1f1   : > { %1549 = vmatmul.mubr.f32.gmra.mrb[20].mxu0 %v12304_v63 }
 0x1f2   : > { %1554 = vmatprep.mubr.f32.mxu0 %v12163_v34 }
 0x1f5   : > { %1557 = vmatmul.mubr.f32.gmra.mrb[22].mxu0 %v12305_v8 }
 0x1f6   : > { %1562 = vmatprep.mubr.f32.mxu0 %v12163_v34 }
 0x1f9   : > { %1565 = vmatmul.mubr.f32.gmra.mrb[24].mxu0 %v12306_v15 }
 0x1fa   : > { %1570 = vmatprep.mubr.f32.mxu0 %v12163_v34 }
 0x1fd   : > { %1573 = vmatmul.mubr.f32.gmra.mrb[26].mxu0 %v12307_v24 }
 0x1fe   : > { %1578 = vmatprep.mubr.f32.mxu0 %v12163_v34 }
 0x201   : > { %1581 = vmatmul.mubr.f32.gmra.mrb[28].mxu0 %v12308_v45 }
 0x202   : > { %1586 = vmatprep.mubr.f32.mxu0 %v12163_v34 }
 0x205   : > { %1589 = vmatmul.mubr.f32.gmra.mrb[30].mxu0 %v12309_v9 }
 0x206   : > { %1594 = vmatprep.mubr.f32.mxu0 %v12163_v34 }
 0x209   : > { %1597 = vmatmul.mubr.f32.gmra.mrb[32].mxu0 %v12310_v39 }
 0x20a   : > { %1602 = vmatprep.mubr.f32.mxu0 %v12163_v34 }
 0x20d   : > { %1605 = vmatmul.mubr.f32.gmra.mrb[34].mxu0 %v12311_v14 }
 0x20e   : > { %1610 = vmatprep.mubr.f32.mxu0 %v12163_v34 }
 0x211   : > { %1613 = vmatmul.mubr.f32.gmra.mrb[36].mxu0 %v12312_v26 }
 0x212   : > { %1618 = vmatprep.mubr.f32.mxu0 %v12163_v34 }
 0x215   : > { %1621 = vmatmul.mubr.f32.gmra.mrb[38].mxu0 %v12313_v46 }
 0x216   : > { %1626 = vmatprep.mubr.f32.mxu0 %v12163_v34 }
 0x219   : > { %1629 = vmatmul.mubr.f32.gmra.mrb[40].mxu0 %v12314_v12 }
 0x21a   : > { %1634 = vmatprep.mubr.f32.mxu0 %v12163_v34 }
 0x21d   : > { %1637 = vmatmul.mubr.f32.gmra.mrb[42].mxu0 %v12315_v11 }
 0x21e   : > { %1642 = vmatprep.mubr.f32.mxu0 %v12163_v34 }
 0x221   : > { %1645 = vmatmul.mubr.f32.gmra.mrb[44].mxu0 %v12316_v31  ;;  %v12322_v31 = vld [vmem:[#allocation88_spill] sm:$0xff] }
 0x222   : > { %1650 = vmatprep.mubr.f32.mxu0 %v12163_v34 }
 0x225   : > { %1653 = vmatmul.mubr.f32.gmra.mrb[46].mxu0 %v12317_v2  ;;  %v12323_v2 = vld [vmem:[#allocation90_spill] sm:$0xff] }
 0x226   : > { %1658 = vmatprep.mubr.f32.mxu0 %v12163_v34 }
 0x229   : > { %1661 = vmatmul.mubr.f32.gmra.mrb[48].mxu0 %v12318_v25  ;;  %v12324_v25 = vld [vmem:[#allocation93_spill] sm:$0xff] }
 0x22a   : > { %1666 = vmatprep.mubr.f32.mxu0 %v12163_v34 }
 0x22d   : > { %1669 = vmatmul.mubr.f32.gmra.mrb[50].mxu0 %v12319_v62  ;;  %v12325_v62 = vld [vmem:[#allocation94_spill] sm:$0xff] }
 0x22e   : > { %1674 = vmatprep.mubr.f32.mxu0 %v12163_v34 }
 0x231   : > { %1677 = vmatmul.mubr.f32.gmra.mrb[52].mxu0 %v12320_v32 }
 0x232   : > { %1682 = vmatprep.mubr.f32.mxu0 %v12163_v34 }
 0x235   : > { %1685 = vmatmul.mubr.f32.gmra.mrb[54].mxu0 %v12321_v6  ;;  %v12330_v6 = vand.u32 4294901760, %v12275_v49  ;;  %v12347_v49 = vand.u32 4294901760, %v8438_v18  ;;  %v12353_v18 = vand.u32 4294901760, %v8522_v41 }
 0x236   : > { %1690 = vmatprep.mubr.f32.mxu0 %v12163_v34 }
 0x239   : > { %1693 = vmatmul.mubr.f32.gmra.mrb[56].mxu0 %v12322_v31  ;;  %v12329_v31 = vand.u32 4294901760, %v8206_v43  ;;  %v12337_v43 = vand.u32 4294901760, %v8320_v57  ;;  %v12343_v57 = vand.u32 4294901760, %v8405_v55 }
 0x23a   : > { %1698 = vmatprep.mubr.f32.mxu0 %v12163_v34 }
 0x23d   : > { %1701 = vmatmul.mubr.f32.gmra.mrb[58].mxu0 %v12323_v2 }
 0x23e   : > { %1706 = vmatprep.mubr.f32.mxu0 %v12163_v34 }
 0x241   : > { %1709 = vmatmul.mubr.f32.gmra.mrb[60].mxu0 %v12324_v25  ;;  %v12327_v25 = vand.u32 4294901760, %v8143_v5  ;;  %v12335_v5 = vand.u32 4294901760, %v12278_v47  ;;  %v12341_v47 = vand.u32 4294901760, %v8357_v38 }
 0x242   : > { %1714 = vmatprep.mubr.f32.mxu0 %v12163_v34 }
 0x245   : > { %1717 = vmatmul.mubr.f32.gmra.mrb[62].mxu0 %v12325_v62  ;;  %v12326_v62 = vand.u32 4294901760, %v8127_v42  ;;  %v12333_v42 = vand.u32 4294901760, %v8252_v1 }
 0x246   : > { %1722 = vmatprep.mubr.f32.mxu0 %v12163_v34 }
 0x247   : > { %v6316_v2 = vpack.c.bf16 %v12327_v25, %v12326_v62  ;;  %v12334_v25 = vand.u32 4294901760, %v8285_v23  ;;  %v12340_v23 = vand.u32 4294901760, %v12281_v54  ;;  %v12342_v62 = vand.u32 4294901760, %v8379_v0 }
 0x248   : > { %v12346_v54 = vand.u32 4294901760, %v8429_v16  ;;  %v12348_v0 = vand.u32 4294901760, %v8461_v36 }
 0x249   : > { %1725 = vmatmul.mubr.f32.gmra.mrb[64].mxu0 %v8834_v53  ;;  %v12328_v53 = vand.u32 4294901760, %v8159_v50  ;;  %v6322_v50 = vpack.c.bf16 %v12334_v25, %v12333_v42  ;;  %v12362_v42 = vand.u32 4294901760, %v8621_v52  ;;  %v12366_v52 = vand.u32 4294901760, %v12304_v63  ;;  %v12384_v25 = vld [vmem:[#allocation82_spill] sm:$0xff] }
 0x24a   : > { %1730 = vmatprep.mubr.f32.mxu0 %v12163_v34  ;;  %v6332_v38 = vpack.c.bf16 %v12347_v49, %v12346_v54  ;;  %v12370_v63 = vand.u32 4294901760, %v12308_v45  ;;  %v12380_v45 = vld [vmem:[#allocation78_spill] sm:$0xff]  ;;  %v12402_v54 = vld [vmem:[#allocation100_spill] sm:$0xff] }
 0x24b   : > { %v12403_v49 = vand.u32 4294901760, %v12402_v54  ;;  %v3158_v54 = vld [vmem:[#allocation7 + $0x20] sm:$0xff] }
 0x24d   : > { %1733 = vmatmul.mubr.f32.gmra.mrb[66].mxu0 %v8845_v28  ;;  %v6318_v28 = vpack.c.bf16 %v12329_v31, %v12328_v53  ;;  %v12349_v31 = vand.u32 4294901760, %v8466_v33  ;;  %v12352_v53 = vand.u32 4294901760, %v8494_v19  ;;  %v12355_v33 = vand.u32 4294901760, %v12290_v59 }
 0x24e   : > { %1738 = vmatprep.mubr.f32.mxu0 %v12163_v34  ;;  %v12358_v19 = vand.u32 4294901760, %v8573_v35  ;;  %v12361_v59 = vand.u32 4294901760, %v8597_v27  ;;  %v12364_v35 = vand.u32 4294901760, %v12302_v37  ;;  %v12367_v27 = vand.u32 4294901760, %v12305_v8 }
 0x24f   : > { %v6334_v55 = vpack.c.bf16 %v12349_v31, %v12348_v0  ;;  %v12373_v37 = vand.u32 4294901760, %v12311_v14  ;;  %v12374_v8 = vand.u32 4294901760, %v12312_v26  ;;  %v12377_v14 = vand.u32 4294901760, %v12315_v11  ;;  %v12406_v31 = vld [vmem:[#allocation26_spill] sm:$0xff] }
 0x250   : > { %v12385_v11 = vand.u32 4294901760, %v12384_v25  ;;  %v12447_v25 = vld [vmem:[#allocation83_spill] sm:$0xff] }
 0x251   : > { %1741 = vmatmul.mubr.f32.gmra.mrb[68].mxu0 %v8856_v51  ;;  %v12332_v51 = vand.u32 4294901760, %v8220_v10  ;;  %v12339_v10 = vand.u32 4294901760, %v8342_v3  ;;  %v12345_v3 = vand.u32 4294901760, %v12284_v48  ;;  %v12351_v48 = vand.u32 4294901760, %v8471_v56 }
 0x252   : > { %1746 = vmatprep.mubr.f32.mxu0 %v12163_v34 }
 0x253   : > { %v6336_v16 = vpack.c.bf16 %v12352_v53, %v12351_v48  ;;  %v12409_v48 = vld [vmem:[#allocation30_spill] sm:$0xff]  ;;  %v12410_v53 = vld [vmem:[#allocation16_spill] sm:$0xff] }
 0x255   : > { %1749 = vmatmul.mubr.f32.gmra.mrb[70].mxu0 %v8866_v58  ;;  %v12331_v58 = vand.u32 4294901760, %v8215_v40 }
 0x256   : > { %1851 = vmatprep.mubr.f32.mxu0 %v12163_v34 }
 0x257   : > { %v6320_v32 = vpack.c.bf16 %v12332_v51, %v12331_v58  ;;  %v12338_v58 = vand.u32 4294901760, %v8330_v61  ;;  %v12357_v51 = vand.u32 4294901760, %v8563_v30  ;;  %v12363_v30 = vand.u32 4294901760, %v12300_v29 }
 0x258   : > { %v12368_v29 = vand.u32 4294901760, %v12306_v15  ;;  %v12375_v15 = vand.u32 4294901760, %v12313_v46  ;;  %v12381_v46 = vand.u32 4294901760, %v12380_v45  ;;  %v12443_v45 = vld [vmem:[#allocation74_spill] sm:$0xff] }
 0x259   : > { %1855 = vmatmul.mubr.f32.vlgmr.msra.gmra.mrb[0].mxu0 %v12330_v6  ;;  %v12336_v6 = vand.u32 4294901760, %v8304_v21  ;;  %v6326_v1 = vpack.c.bf16 %v12339_v10, %v12338_v58  ;;  %v6328_v21 = vpack.c.bf16 %v12342_v62, %v12341_v47  ;;  %v12392_v10 = vld [vmem:[#allocation90_spill] sm:$0xff] }
 0x25a   : > { %6317 = vmatpush1.bf16.msra.mxu0 %v6316_v2  ;;  %1860 = vmatprep.mubr.f32.mxu0 %v12163_v34  ;;  %v12354_v2 = vand.u32 4294901760, %v8527_v17  ;;  %v12360_v17 = vand.u32 4294901760, %v12293_v60  ;;  %v12372_v60 = vand.u32 4294901760, %v12310_v39  ;;  %v12376_v39 = vand.u32 4294901760, %v12314_v12  ;;  %v12396_v62 = vld [vmem:[#allocation94_spill] sm:$0xff] }
 0x25b   : > { %6319 = vmatprep.subr.bf16.mxu0 %v6318_v28  ;;  %v6324_v40 = vpack.c.bf16 %v12337_v43, %v12336_v6  ;;  %v12356_v28 = vand.u32 4294901760, %v8547_v13  ;;  %v6344_v13 = vpack.c.bf16 %v12362_v42, %v12361_v59  ;;  %v12388_v6 = vld [vmem:[#allocation86_spill] sm:$0xff]  ;;  %v12423_v59 = vld [vmem:[#allocation28_spill] sm:$0xff]  ;;  %v12424_v42 = vld [vmem:[#allocation43_spill] sm:$0xff] }
 0x25c   : > { %v6338_v36 = vpack.c.bf16 %v12354_v2, %v12353_v18  ;;  %v12389_v43 = vand.u32 4294901760, %v12388_v6  ;;  %v12412_v18 = vld [vmem:[#allocation31_spill] sm:$0xff]  ;;  %v12413_v2 = vld [vmem:[#allocation18_spill] sm:$0xff] }
 0x25d   : > { %1864 = vmatmul.mubr.f32.gmra.mrb[2].mxu0 %v12335_v5  ;;  %v6340_v56 = vpack.c.bf16 %v12357_v51, %v12356_v28  ;;  %v12416_v28 = vld [vmem:[#allocation20_spill] sm:$0xff]  ;;  %v12417_v51 = vld [vmem:[#allocation21_spill] sm:$0xff]  ;;  %v12451_v6 = vld [vmem:[#allocation91_spill] sm:$0xff] }
 0x25e   : > { %1869 = vmatprep.mubr.f32.mxu0 %v12163_v34  ;;  %6321 = vmatpush1.bf16.msra.mxu0 %v6320_v32  ;;  %v12344_v32 = vand.u32 4294901760, %v8410_v22  ;;  %v12350_v22 = vand.u32 4294901760, %v12287_v7  ;;  %v12359_v7 = vand.u32 4294901760, %v8592_v4  ;;  %v12365_v4 = vand.u32 4294901760, %v12303_v20 }
 0x25f   : > { %6323 = vmatprep.subr.bf16.mxu0 %v6322_v50  ;;  %v12369_v20 = vand.u32 4294901760, %v12307_v24  ;;  %v12378_v24 = vld [vmem:[#allocation76_spill] sm:$0xff]  ;;  %v12386_v50 = vld [vmem:[#allocation85_spill] sm:$0xff] }
 0x260   : > { %v6330_v61 = vpack.c.bf16 %v12344_v32, %v12343_v57  ;;  %v6342_v41 = vpack.c.bf16 %v12359_v7, %v12358_v19  ;;  %v12379_v26 = vand.u32 4294901760, %v12378_v24  ;;  %v12387_v5 = vand.u32 4294901760, %v12386_v50  ;;  %v12398_v57 = vld [vmem:[#allocation96_spill] sm:$0xff]  ;;  %v12420_v7 = vld [vmem:[#allocation25_spill] sm:$0xff]  ;;  %v12441_v24 = vld [vmem:[#allocation71_spill] sm:$0xff] }
 0x261   : > { %1873 = vmatmul.mubr.f32.gmra.mrb[4].mxu0 %v12340_v23  ;;  %v12394_v23 = vld [vmem:[#allocation93_spill] sm:$0xff]  ;;  %v12399_v32 = vand.u32 4294901760, %v12398_v57  ;;  %v12419_v19 = vld [vmem:[#allocation24_spill] sm:$0xff]  ;;  %v12449_v50 = vld [vmem:[#allocation87_spill] sm:$0xff] }
 0x262   : > { %1878 = vmatprep.mubr.f32.mxu0 %v12163_v34  ;;  %6325 = vmatpush1.bf16.msra.mxu0 %v6324_v40  ;;  %v12390_v40 = vld [vmem:[#allocation88_spill] sm:$0xff]  ;;  %v12395_v47 = vand.u32 4294901760, %v12394_v23  ;;  %v3154_v23 = vld [vmem:[#allocation7] sm:$0xff] }
 0x263   : > { %6327 = vmatprep.subr.bf16.mxu0 %v6326_v1  ;;  %v12391_v58 = vand.u32 4294901760, %v12390_v40  ;;  %v12393_v1 = vand.u32 4294901760, %v12392_v10  ;;  %v12453_v40 = vld [vmem:[#allocation95_spill] sm:$0xff]  ;;  %v3194_v57 = vand.u32 4294901760, %v3154_v23 }
 0x264   : > { %v12455_v10 = vld [vmem:[#allocation99_spill] sm:$0xff] }
 0x265   : > { %1882 = vmatmul.mubr.f32.gmra.mrb[6].mxu0 %v12345_v3 }
 0x266   : > { %1887 = vmatprep.mubr.f32.mxu0 %v12163_v34  ;;  %6329 = vmatpush1.bf16.msra.mxu0 %v6328_v21  ;;  %v12397_v21 = vand.u32 4294901760, %v12396_v62  ;;  %v3156_v62 = vld [vmem:[#allocation7 + $0x10] sm:$0xff] }
 0x267   : > { %6331 = vmatprep.subr.bf16.mxu0 %v6330_v61  ;;  %v12400_v61 = vld [vmem:[#allocation98_spill] sm:$0xff] }
 0x268   : > { %v12401_v3 = vand.u32 4294901760, %v12400_v61  ;;  %v3157_v61 = vld [vmem:[#allocation7 + $0x18] sm:$0xff] }
 0x269   : > { %1891 = vmatmul.mubr.f32.gmra.mrb[8].mxu0 %v12350_v22  ;;  %v12408_v22 = vld [vmem:[#allocation15_spill] sm:$0xff] }
 0x26a   : > { %1896 = vmatprep.mubr.f32.mxu0 %v12163_v34  ;;  %6333 = vmatpush1.bf16.msra.mxu0 %v6332_v38  ;;  %v12404_v38 = vld [vmem:[#allocation102_spill] sm:$0xff] }
 0x26b   : > { %6335 = vmatprep.subr.bf16.mxu0 %v6334_v55  ;;  %v12405_v0 = vand.u32 4294901760, %v12404_v38  ;;  %v12407_v55 = vld [vmem:[#allocation14_spill] sm:$0xff]  ;;  %v3203_v38 = vand.u32 4294901760, %v3157_v61 }
 0x26d   : > { %1900 = vmatmul.mubr.f32.gmra.mrb[10].mxu0 %v12355_v33  ;;  %v12415_v33 = vld [vmem:[#allocation34_spill] sm:$0xff] }
 0x26e   : > { %1905 = vmatprep.mubr.f32.mxu0 %v12163_v34  ;;  %6337 = vmatpush1.bf16.msra.mxu0 %v6336_v16  ;;  %v12411_v16 = vld [vmem:[#allocation17_spill] sm:$0xff] }
 0x26f   : > { %6339 = vmatprep.subr.bf16.mxu0 %v6338_v36  ;;  %v12414_v36 = vld [vmem:[#allocation19_spill] sm:$0xff] }
 0x271   : > { %1909 = vmatmul.mubr.f32.gmra.mrb[12].mxu0 %v12360_v17  ;;  %v12422_v17 = vld [vmem:[#allocation27_spill] sm:$0xff] }
 0x272   : > { %1914 = vmatprep.mubr.f32.mxu0 %v12163_v34  ;;  %6341 = vmatpush1.bf16.msra.mxu0 %v6340_v56  ;;  %v12418_v56 = vld [vmem:[#allocation39_spill] sm:$0xff] }
 0x273   : > { %6343 = vmatprep.subr.bf16.mxu0 %v6342_v41  ;;  %v12421_v41 = vld [vmem:[#allocation41_spill] sm:$0xff] }
 0x275   : > { %1918 = vmatmul.mubr.f32.gmra.mrb[14].mxu0 %v12363_v30  ;;  %v12426_v30 = vld [vmem:[#allocation35_spill] sm:$0xff] }
 0x276   : > { %1923 = vmatprep.mubr.f32.mxu0 %v12163_v34  ;;  %6345 = vmatpush1.bf16.msra.mxu0 %v6344_v13  ;;  %v12425_v13 = vld [vmem:[#allocation33_spill] sm:$0xff] }
 0x277   : > { %6347 = vmatprep.subr.bf16.mxu0 %v12258_v44  ;;  %v12371_v44 = vand.u32 4294901760, %v12309_v9  ;;  %v12382_v9 = vld [vmem:[#allocation80_spill] sm:$0xff] }
 0x278   : > { %v12383_v12 = vand.u32 4294901760, %v12382_v9  ;;  %v12445_v9 = vld [vmem:[#allocation79_spill] sm:$0xff] }
 0x279   : > { %1927 = vmatmul.mubr.f32.gmra.mrb[16].mxu0 %v12364_v35  ;;  %v12427_v35 = vld [vmem:[#allocation44_spill] sm:$0xff] }
 0x27a   : > { %1932 = vmatprep.mubr.f32.mxu0 %v12163_v34 }
 0x27d   : > { %1936 = vmatmul.mubr.f32.gmra.mrb[18].mxu0 %v12365_v4  ;;  %v12428_v4 = vld [vmem:[#allocation36_spill] sm:$0xff] }
 0x27e   : > { %1941 = vmatprep.mubr.f32.mxu0 %v12163_v34 }
 0x281   : > { %1945 = vmatmul.mubr.f32.gmra.mrb[20].mxu0 %v12366_v52  ;;  %v12429_v52 = vld [vmem:[#allocation46_spill] sm:$0xff] }
 0x282   : > { %1950 = vmatprep.mubr.f32.mxu0 %v12163_v34 }
 0x285   : > { %1954 = vmatmul.mubr.f32.gmra.mrb[22].mxu0 %v12367_v27  ;;  %v12430_v27 = vld [vmem:[#allocation49_spill] sm:$0xff] }
 0x286   : > { %1959 = vmatprep.mubr.f32.mxu0 %v12163_v34 }
 0x289   : > { %1963 = vmatmul.mubr.f32.gmra.mrb[24].mxu0 %v12368_v29  ;;  %v12431_v29 = vld [vmem:[#allocation51_spill] sm:$0xff] }
 0x28a   : > { %1968 = vmatprep.mubr.f32.mxu0 %v12163_v34 }
 0x28d   : > { %1972 = vmatmul.mubr.f32.gmra.mrb[26].mxu0 %v12369_v20  ;;  %v12432_v20 = vld [vmem:[#allocation53_spill] sm:$0xff] }
 0x28e   : > { %1977 = vmatprep.mubr.f32.mxu0 %v12163_v34 }
 0x291   : > { %1981 = vmatmul.mubr.f32.gmra.mrb[28].mxu0 %v12370_v63  ;;  %v12433_v63 = vld [vmem:[#allocation54_spill] sm:$0xff] }
 0x292   : > { %1986 = vmatprep.mubr.f32.mxu0 %v12163_v34 }
 0x295   : > { %1990 = vmatmul.mubr.f32.gmra.mrb[30].mxu0 %v12371_v44  ;;  %v12434_v44 = vld [vmem:[#allocation57_spill] sm:$0xff] }
 0x296   : > { %1995 = vmatprep.mubr.f32.mxu0 %v12163_v34 }
 0x299   : > { %1999 = vmatmul.mubr.f32.gmra.mrb[32].mxu0 %v12372_v60  ;;  %v12435_v60 = vld [vmem:[#allocation59_spill] sm:$0xff] }
 0x29a   : > { %2004 = vmatprep.mubr.f32.mxu0 %v12163_v34 }
 0x29d   : > { %2008 = vmatmul.mubr.f32.gmra.mrb[34].mxu0 %v12373_v37  ;;  %v12436_v37 = vld [vmem:[#allocation61_spill] sm:$0xff] }
 0x29e   : > { %2013 = vmatprep.mubr.f32.mxu0 %v12163_v34 }
 0x2a1   : > { %2017 = vmatmul.mubr.f32.gmra.mrb[36].mxu0 %v12374_v8  ;;  %v12437_v8 = vld [vmem:[#allocation62_spill] sm:$0xff] }
 0x2a2   : > { %2022 = vmatprep.mubr.f32.mxu0 %v12163_v34 }
 0x2a5   : > { %2026 = vmatmul.mubr.f32.gmra.mrb[38].mxu0 %v12375_v15  ;;  %v12438_v15 = vld [vmem:[#allocation64_spill] sm:$0xff] }
 0x2a6   : > { %2031 = vmatprep.mubr.f32.mxu0 %v12163_v34 }
 0x2a9   : > { %2035 = vmatmul.mubr.f32.gmra.mrb[40].mxu0 %v12376_v39  ;;  %v12439_v39 = vld [vmem:[#allocation67_spill] sm:$0xff] }
 0x2aa   : > { %2040 = vmatprep.mubr.f32.mxu0 %v12163_v34 }
 0x2ad   : > { %2044 = vmatmul.mubr.f32.gmra.mrb[42].mxu0 %v12377_v14  ;;  %v12440_v14 = vld [vmem:[#allocation69_spill] sm:$0xff] }
 0x2ae   : > { %2049 = vmatprep.mubr.f32.mxu0 %v12163_v34 }
 0x2b1   : > { %2053 = vmatmul.mubr.f32.gmra.mrb[44].mxu0 %v12379_v26  ;;  %v12442_v26 = vld [vmem:[#allocation73_spill] sm:$0xff] }
 0x2b2   : > { %2058 = vmatprep.mubr.f32.mxu0 %v12163_v34 }
 0x2b5   : > { %2062 = vmatmul.mubr.f32.gmra.mrb[46].mxu0 %v12381_v46  ;;  %v12444_v46 = vld [vmem:[#allocation77_spill] sm:$0xff] }
 0x2b6   : > { %2067 = vmatprep.mubr.f32.mxu0 %v12163_v34 }
 0x2b9   : > { %2071 = vmatmul.mubr.f32.gmra.mrb[48].mxu0 %v12383_v12  ;;  %v12446_v12 = vld [vmem:[#allocation81_spill] sm:$0xff] }
 0x2ba   : > { %2076 = vmatprep.mubr.f32.mxu0 %v12163_v34 }
 0x2bd   : > { %2080 = vmatmul.mubr.f32.gmra.mrb[50].mxu0 %v12385_v11  ;;  %v12448_v11 = vld [vmem:[#allocation84_spill] sm:$0xff] }
 0x2be   : > { %2085 = vmatprep.mubr.f32.mxu0 %v12163_v34 }
 0x2c1   : > { %2089 = vmatmul.mubr.f32.gmra.mrb[52].mxu0 %v12387_v5  ;;  %v12450_v5 = vld [vmem:[#allocation89_spill] sm:$0xff] }
 0x2c2   : > { %2094 = vmatprep.mubr.f32.mxu0 %v12163_v34 }
 0x2c5   : > { %2098 = vmatmul.mubr.f32.gmra.mrb[54].mxu0 %v12389_v43  ;;  %v12452_v43 = vld [vmem:[#allocation92_spill] sm:$0xff] }
 0x2c6   : > { %2103 = vmatprep.mubr.f32.mxu0 %v12163_v34 }
 0x2c9   : > { %2107 = vmatmul.mubr.f32.gmra.mrb[56].mxu0 %v12391_v58  ;;  %v12454_v58 = vld [vmem:[#allocation97_spill] sm:$0xff] }
 0x2ca   : > { %2112 = vmatprep.mubr.f32.mxu0 %v12163_v34 }
 0x2cd   : > { %2116 = vmatmul.mubr.f32.gmra.mrb[58].mxu0 %v12393_v1  ;;  %v12456_v1 = vld [vmem:[#allocation101_spill] sm:$0xff] }
 0x2ce   : > { %2121 = vmatprep.mubr.f32.mxu0 %v12163_v34 }
 0x2d1   : > { %2125 = vmatmul.mubr.f32.gmra.mrb[60].mxu0 %v12395_v47  ;;  %v3155_v47 = vld [vmem:[#allocation7 + $0x8] sm:$0xff] }
 0x2d2   : > { %2130 = vmatprep.mubr.f32.mxu0 %v12163_v34 }
 0x2d5   : > { %2134 = vmatmul.mubr.f32.gmra.mrb[62].mxu0 %v12397_v21  ;;  %v11655_v21 = vmov 0.0|0.0  }
 0x2d6   : > { %2139 = vmatprep.mubr.f32.mxu0 %v12163_v34  ;;  %6666 = vmatprep.subr.bf16.mxu1 %v11655_v21 }
 0x2d9   : > { %2143 = vmatmul.mubr.f32.gmra.mrb[64].mxu0 %v12399_v32  ;;  %v3197_v32 = vand.u32 4294901760, %v3155_v47 }
 0x2da   : > { %2148 = vmatprep.mubr.f32.mxu0 %v12163_v34 }
 0x2dd   : > { %2152 = vmatmul.mubr.f32.gmra.mrb[66].mxu0 %v12401_v3  ;;  %v3200_v3 = vand.u32 4294901760, %v3156_v62 }
 0x2de   : > { %2157 = vmatprep.mubr.f32.mxu0 %v12163_v34 }
 0x2e1   : > { %2161 = vmatmul.mubr.f32.gmra.mrb[68].mxu0 %v12403_v49  ;;  %v3159_v49 = vld [vmem:[#allocation7 + $0x28] sm:$0xff] }
 0x2e2   : > { %2166 = vmatprep.mubr.f32.mxu0 %v12163_v34 }
 0x2e5   : > { %2170 = vmatmul.mubr.f32.gmra.mrb[70].mxu0 %v12405_v0  ;;  %v3206_v0 = vand.u32 4294901760, %v3158_v54 }
 0x2e6   : > { %2336 = vmatprep.mubr.f32.mxu0 %v12163_v34 }
 0x2e9   : > { %2338 = vmatmul.mubr.f32.vlgmr.msra.gmra.mrb[0].mxu0 %v12406_v31 }
 0x2ea   : > { %6349 = vmatpush1.bf16.msra.mxu0 %v12407_v55  ;;  %2343 = vmatprep.mubr.f32.mxu0 %v12163_v34  ;;  %v9345_v55 = vld [vmem:[#allocation7 + $0x30] sm:$0xff] }
 0x2eb   : > { %6351 = vmatprep.subr.bf16.mxu0 %v12408_v22  ;;  %v9347_v22 = vld [vmem:[#allocation7 + $0x38] sm:$0xff] }
 0x2ed   : > { %2345 = vmatmul.mubr.f32.gmra.mrb[2].mxu0 %v12409_v48 }
 0x2ee   : > { %2350 = vmatprep.mubr.f32.mxu0 %v12163_v34  ;;  %6353 = vmatpush1.bf16.msra.mxu0 %v12410_v53  ;;  %v9352_v53 = vpack.c.bf16 %v3197_v32, %v3194_v57 }
 0x2ef   : > { %6355 = vmatprep.subr.bf16.mxu0 %v12411_v16  ;;  %v9354_v16 = vsub.f32 %v3154_v23, %v3194_v57  ;;  %v9389_v57 = vld [vmem:[#allocation7 + $0x70] sm:$0xff] }
 0x2f0   : > { %12457 = vst [vmem:[#allocation13_spill] sm:$0xff] %v9352_v53  ;;  %6682 = vmatpush1.bf16.msra.mxu1 %v9352_v53 }
 0x2f1   : > { %2352 = vmatmul.mubr.f32.gmra.mrb[4].mxu0 %v12412_v18  ;;  %6667 = vmatprep.subr.bf16.mxu1 %v11655_v21 }
 0x2f2   : > { %2357 = vmatprep.mubr.f32.mxu0 %v12163_v34  ;;  %6357 = vmatpush1.bf16.msra.mxu0 %v12413_v2  ;;  %v9358_v2 = vsub.f32 %v3156_v62, %v3200_v3  ;;  %v9387_v62 = vld [vmem:[#allocation7 + $0x68] sm:$0xff] }
 0x2f3   : > { %6359 = vmatprep.subr.bf16.mxu0 %v12414_v36  ;;  %v9360_v36 = vld [vmem:[#allocation7 + $0x48] sm:$0xff] }
 0x2f5   : > { %2359 = vmatmul.mubr.f32.gmra.mrb[6].mxu0 %v12415_v33 }
 0x2f6   : > { %2364 = vmatprep.mubr.f32.mxu0 %v12163_v34  ;;  %6361 = vmatpush1.bf16.msra.mxu0 %v12416_v28  ;;  %v9364_v28 = vld [vmem:[#allocation7 + $0x58] sm:$0xff] }
 0x2f7   : > { %6363 = vmatprep.subr.bf16.mxu0 %v12417_v51  ;;  %v9367_v51 = vpack.c.bf16 %v3203_v38, %v3200_v3 }
 0x2f9   : > { %2366 = vmatmul.mubr.f32.gmra.mrb[8].mxu0 %v12418_v56  ;;  %12458 = vst [vmem:[#allocation29_spill] sm:$0xff] %v9367_v51  ;;  %6683 = vmatpush1.bf16.msra.mxu1 %v9367_v51 }
 0x2fa   : > { %2371 = vmatprep.mubr.f32.mxu0 %v12163_v34  ;;  %6365 = vmatpush1.bf16.msra.mxu0 %v12419_v19  ;;  %v9369_v19 = vsub.f32 %v3157_v61, %v3203_v38  ;;  %v9406_v38 = vld [vmem:[#allocation7 + $0x80] sm:$0xff] }
 0x2fb   : > { %6367 = vmatprep.subr.bf16.mxu0 %v12420_v7  ;;  %v9371_v7 = vsub.f32 %v3158_v54, %v3206_v0 }
 0x2fd   : > { %2373 = vmatmul.mubr.f32.gmra.mrb[10].mxu0 %v12421_v41  ;;  %12459 = vst [vmem:[#allocation32_spill] sm:$0xff] %v9371_v7 }
 0x2fe   : > { %2378 = vmatprep.mubr.f32.mxu0 %v12163_v34  ;;  %6369 = vmatpush1.bf16.msra.mxu0 %v12422_v17  ;;  %v9373_v17 = vld [vmem:[#allocation7 + $0x60] sm:$0xff] }
 0x2ff   : > { %6371 = vmatprep.subr.bf16.mxu0 %v12423_v59  ;;  %v11664_v54 = vand.u32 4294901760, %v9373_v17 }
 0x301   : > { %2380 = vmatmul.mubr.f32.gmra.mrb[12].mxu0 %v12424_v42 }
 0x302   : > { %2385 = vmatprep.mubr.f32.mxu0 %v12163_v34  ;;  %6373 = vmatpush1.bf16.msra.mxu0 %v12425_v13  ;;  %v3212_v13 = vand.u32 4294901760, %v9345_v55 }
 0x303   : > { %6375 = vmatprep.subr.bf16.mxu0 %v12426_v30  ;;  %v3215_v30 = vand.u32 4294901760, %v9347_v22 }
 0x305   : > { %2387 = vmatmul.mubr.f32.gmra.mrb[14].mxu0 %v12427_v35  ;;  %v9395_v61 = vsub.f32 %v9347_v22, %v3215_v30 }
 0x306   : > { %2392 = vmatprep.mubr.f32.mxu0 %v12163_v34  ;;  %6377 = vmatpush1.bf16.msra.mxu0 %v12428_v4  ;;  %v3221_v4 = vand.u32 4294901760, %v9360_v36 }
 0x307   : > { %6378 = vmatprep.subr.bf16.mxu0 %v11655_v21  ;;  %12462 = vst [vmem:[#allocation40_spill] sm:$0xff] %v9395_v61  ;;  %v9470_v61 = vpack.c.bf16 %v3215_v30, %v3212_v13 }
 0x308   : > { %v9412_v22 = vsub.f32 %v9360_v36, %v3221_v4  ;;  %v9434_v36 = vsub.f32 %v9373_v17, %v11664_v54 }
 0x309   : > { %2394 = vmatmul.mubr.f32.gmra.mrb[16].mxu0 %v12429_v52  ;;  %12475 = vst [vmem:[#allocation58_spill] sm:$0xff] %v9470_v61 }
 0x30a   : > { %2399 = vmatprep.mubr.f32.mxu0 %v12163_v34  ;;  %12465 = vst [vmem:[#allocation22_spill] sm:$0xff] %v9412_v22  ;;  %12469 = vst [vmem:[#allocation48_spill] sm:$0xff] %v9434_v36 }
 0x30d   : > { %2401 = vmatmul.mubr.f32.gmra.mrb[18].mxu0 %v12430_v27 }
 0x30e   : > { %2406 = vmatprep.mubr.f32.mxu0 %v12163_v34 }
 0x311   : > { %2408 = vmatmul.mubr.f32.gmra.mrb[20].mxu0 %v12431_v29 }
 0x312   : > { %2413 = vmatprep.mubr.f32.mxu0 %v12163_v34 }
 0x315   : > { %2415 = vmatmul.mubr.f32.gmra.mrb[22].mxu0 %v12432_v20 }
 0x316   : > { %2420 = vmatprep.mubr.f32.mxu0 %v12163_v34 }
 0x319   : > { %2422 = vmatmul.mubr.f32.gmra.mrb[24].mxu0 %v12433_v63 }
 0x31a   : > { %2427 = vmatprep.mubr.f32.mxu0 %v12163_v34 }
 0x31d   : > { %2429 = vmatmul.mubr.f32.gmra.mrb[26].mxu0 %v12434_v44 }
 0x31e   : > { %2434 = vmatprep.mubr.f32.mxu0 %v12163_v34 }
 0x321   : > { %2436 = vmatmul.mubr.f32.gmra.mrb[28].mxu0 %v12435_v60 }
 0x322   : > { %2441 = vmatprep.mubr.f32.mxu0 %v12163_v34 }
 0x325   : > { %2443 = vmatmul.mubr.f32.gmra.mrb[30].mxu0 %v12436_v37 }
 0x326   : > { %2448 = vmatprep.mubr.f32.mxu0 %v12163_v34 }
 0x329   : > { %2450 = vmatmul.mubr.f32.gmra.mrb[32].mxu0 %v12437_v8 }
 0x32a   : > { %2455 = vmatprep.mubr.f32.mxu0 %v12163_v34 }
 0x32d   : > { %2457 = vmatmul.mubr.f32.gmra.mrb[34].mxu0 %v12438_v15 }
 0x32e   : > { %2462 = vmatprep.mubr.f32.mxu0 %v12163_v34 }
 0x331   : > { %2464 = vmatmul.mubr.f32.gmra.mrb[36].mxu0 %v12439_v39 }
 0x332   : > { %2469 = vmatprep.mubr.f32.mxu0 %v12163_v34 }
 0x335   : > { %2471 = vmatmul.mubr.f32.gmra.mrb[38].mxu0 %v12440_v14 }
 0x336   : > { %2476 = vmatprep.mubr.f32.mxu0 %v12163_v34 }
 0x339   : > { %2478 = vmatmul.mubr.f32.gmra.mrb[40].mxu0 %v12441_v24 }
 0x33a   : > { %2483 = vmatprep.mubr.f32.mxu0 %v12163_v34 }
 0x33d   : > { %2485 = vmatmul.mubr.f32.gmra.mrb[42].mxu0 %v12442_v26 }
 0x33e   : > { %2490 = vmatprep.mubr.f32.mxu0 %v12163_v34 }
 0x341   : > { %2492 = vmatmul.mubr.f32.gmra.mrb[44].mxu0 %v12443_v45 }
 0x342   : > { %2497 = vmatprep.mubr.f32.mxu0 %v12163_v34 }
 0x345   : > { %2499 = vmatmul.mubr.f32.gmra.mrb[46].mxu0 %v12444_v46 }
 0x346   : > { %2504 = vmatprep.mubr.f32.mxu0 %v12163_v34 }
 0x349   : > { %2506 = vmatmul.mubr.f32.gmra.mrb[48].mxu0 %v12445_v9 }
 0x34a   : > { %2511 = vmatprep.mubr.f32.mxu0 %v12163_v34 }
 0x34d   : > { %2513 = vmatmul.mubr.f32.gmra.mrb[50].mxu0 %v12446_v12 }
 0x34e   : > { %2518 = vmatprep.mubr.f32.mxu0 %v12163_v34 }
 0x351   : > { %2520 = vmatmul.mubr.f32.gmra.mrb[52].mxu0 %v12447_v25 }
 0x352   : > { %2525 = vmatprep.mubr.f32.mxu0 %v12163_v34 }
 0x355   : > { %2527 = vmatmul.mubr.f32.gmra.mrb[54].mxu0 %v12448_v11 }
 0x356   : > { %2532 = vmatprep.mubr.f32.mxu0 %v12163_v34 }
 0x359   : > { %2534 = vmatmul.mubr.f32.gmra.mrb[56].mxu0 %v12449_v50 }
 0x35a   : > { %2539 = vmatprep.mubr.f32.mxu0 %v12163_v34 }
 0x35d   : > { %2541 = vmatmul.mubr.f32.gmra.mrb[58].mxu0 %v12450_v5 }
 0x35e   : > { %2546 = vmatprep.mubr.f32.mxu0 %v12163_v34 }
 0x361   : > { %2548 = vmatmul.mubr.f32.gmra.mrb[60].mxu0 %v12451_v6 }
 0x362   : > { %2553 = vmatprep.mubr.f32.mxu0 %v12163_v34 }
 0x365   : > { %2555 = vmatmul.mubr.f32.gmra.mrb[62].mxu0 %v12452_v43 }
 0x366   : > { %2560 = vmatprep.mubr.f32.mxu0 %v12163_v34 }
 0x369   : > { %2562 = vmatmul.mubr.f32.gmra.mrb[64].mxu0 %v12453_v40 }
 0x36a   : > { %2567 = vmatprep.mubr.f32.mxu0 %v12163_v34 }
 0x36d   : > { %2569 = vmatmul.mubr.f32.gmra.mrb[66].mxu0 %v12454_v58 }
 0x36e   : > { %2574 = vmatprep.mubr.f32.mxu0 %v12163_v34 }
 0x371   : > { %2576 = vmatmul.mubr.f32.gmra.mrb[68].mxu0 %v12455_v10 }
 0x372   : > { %2581 = vmatprep.mubr.f32.mxu0 %v12163_v34 }
 0x375   : > { %2583 = vmatmul.mubr.f32.gmra.mrb[70].mxu0 %v12456_v1 }
 0x376   : > { %2685 = vmatprep.mubr.f32.mxu0 %v12163_v34 }
 0x379   : > { %2687 = vmatmul.mubr.f32.vlgmr.msra.gmra.mrb[0].mxu0 %v12406_v31  ;;  %v3209_v31 = vand.u32 4294901760, %v3159_v49 }
 0x37a   : > { %2692 = vmatprep.mubr.f32.mxu0 %v12163_v34  ;;  %6380 = vmatpush1.bf16.msra.mxu0 %v9352_v53  ;;  %v9437_v53 = vld [vmem:[#allocation7 + $0x98] sm:$0xff] }
 0x37b   : > { %v9377_v59 = vsub.f32 %v3159_v49, %v3209_v31  ;;  %6381 = vmatprep.subr.bf16.mxu0 %v11655_v21  ;;  %v9404_v49 = vld [vmem:[#allocation7 + $0x78] sm:$0xff]  ;;  %v9421_v21 = vld [vmem:[#allocation7 + $0x90] sm:$0xff] }
 0x37c   : > { %v3239_v22 = vand.u32 4294901760, %v9404_v49 }
 0x37d   : > { %2694 = vmatmul.mubr.f32.gmra.mrb[2].mxu0 %v12409_v48  ;;  %v9350_v48 = vld [vmem:[#allocation7 + $0x40] sm:$0xff]  ;;  %12460 = vst [vmem:[#allocation37_spill] sm:$0xff] %v9377_v59 }
 0x37e   : > { %2699 = vmatprep.mubr.f32.mxu0 %v12163_v34  ;;  %6383 = vmatpush1.bf16.msra.mxu0 %v9367_v51  ;;  %v9456_v51 = vld [vmem:[#allocation7 + $0xb0] sm:$0xff]  ;;  %v9460_v59 = vsub.f32 %v9404_v49, %v3239_v22 }
 0x37f   : > { %v3260_v30 = vand.u32 4294901760, %v9456_v51 }
 0x380   : > { %12473 = vst [vmem:[#allocation55_spill] sm:$0xff] %v9460_v59 }
 0x381   : > { %2701 = vmatmul.mubr.f32.gmra.mrb[4].mxu0 %v12412_v18  ;;  %v9356_v18 = vsub.f32 %v3155_v47, %v3197_v32  ;;  %v9392_v32 = vsub.f32 %v9345_v55, %v3212_v13  ;;  %v9409_v55 = vpack.c.bf16 %v3209_v31, %v3206_v0  ;;  %v9419_v47 = vld [vmem:[#allocation7 + $0x88] sm:$0xff]  ;;  %v3233_v31 = vand.u32 4294901760, %v9387_v62 }
 0x382   : > { %2706 = vmatprep.mubr.f32.mxu0 %v12163_v34  ;;  %v3245_v36 = vand.u32 4294901760, %v9419_v47 }
 0x383   : > { %12461 = vst [vmem:[#allocation38_spill] sm:$0xff] %v9392_v32  ;;  %12464 = vst [vmem:[#allocation45_spill] sm:$0xff] %v9409_v55  ;;  %v9454_v32 = vld [vmem:[#allocation7 + $0xa8] sm:$0xff] }
 0x384   : > { %v3257_v13 = vand.u32 4294901760, %v9454_v32 }
 0x385   : > { %2708 = vmatmul.mubr.f32.gmra.mrb[6].mxu0 %v12415_v33  ;;  %v9362_v33 = vld [vmem:[#allocation7 + $0x50] sm:$0xff] }
 0x386   : > { %2713 = vmatprep.mubr.f32.mxu0 %v12163_v34  ;;  %v11657_v23 = vand.u32 4294901760, %v9362_v33 }
 0x389   : > { %2715 = vmatmul.mubr.f32.gmra.mrb[8].mxu0 %v12418_v56  ;;  %v11654_v56 = vand.u32 4294901760, %v9350_v48 }
 0x38a   : > { %2720 = vmatprep.mubr.f32.mxu0 %v12163_v34 }
 0x38b   : > { %v9400_v3 = vsub.f32 %v9350_v48, %v11654_v56  ;;  %v9417_v56 = vsub.f32 %v9362_v33, %v11657_v23  ;;  %v3236_v23 = vand.u32 4294901760, %v9389_v57 }
 0x38d   : > { %12463 = vst [vmem:[#allocation42_spill] sm:$0xff] %v9400_v3  ;;  %2722 = vmatmul.mubr.f32.gmra.mrb[10].mxu0 %v12421_v41  ;;  %12466 = vst [vmem:[#allocation23_spill] sm:$0xff] %v9417_v56  ;;  %v12467_v41 = vand.u32 4294901760, %v9364_v28  ;;  %v12470_v56 = vmov 0.0|0.0   ;;  %v9447_v3 = vsub.f32 %v9387_v62, %v3233_v31  ;;  %v9450_v54 = vsub.f32 %v9389_v57, %v3236_v23  ;;  %v9466_v57 = vld [vmem:[#allocation7 + $0xb8] sm:$0xff] }
 0x38e   : > { %2727 = vmatprep.mubr.f32.mxu0 %v12163_v34  ;;  %6384 = vmatprep.subr.bf16.mxu0 %v12470_v56  ;;  %v3251_v62 = vand.u32 4294901760, %v9437_v53 }
 0x38f   : > { %v9428_v0 = vsub.f32 %v9364_v28, %v12467_v41  ;;  %v3242_v41 = vand.u32 4294901760, %v9406_v38  ;;  %6668 = vmatprep.subr.bf16.mxu1 %v12470_v56  ;;  %12471 = vst [vmem:[#allocation50_spill] sm:$0xff] %v9447_v3  ;;  %12472 = vst [vmem:[#allocation52_spill] sm:$0xff] %v9450_v54  ;;  %6386 = vmatpush1.bf16.msra.mxu0 %v9409_v55  ;;  %v9473_v54 = vsub.f32 %v9419_v47, %v3245_v36 }
 0x390   : > { %6387 = vmatprep.subr.bf16.mxu0 %v12470_v56  ;;  %6684 = vmatpush1.bf16.msra.mxu1 %v9409_v55  ;;  %v9498_v55 = vsub.f32 %v9456_v51, %v3260_v30 }
 0x391   : > { %12468 = vst [vmem:[#allocation47_spill] sm:$0xff] %v9428_v0  ;;  %v9443_v0 = vld [vmem:[#allocation7 + $0xa0] sm:$0xff]  ;;  %2729 = vmatmul.mubr.f32.gmra.mrb[12].mxu0 %v12424_v42  ;;  %v9463_v7 = vsub.f32 %v9406_v38, %v3242_v41  ;;  %12476 = vst [vmem:[#allocation60_spill] sm:$0xff] %v9473_v54  ;;  %v12477_v42 = vand.u32 4294901760, %v9421_v21  ;;  %6669 = vmatprep.subr.bf16.mxu1 %v12470_v56 }
 0x392   : > { %2734 = vmatprep.mubr.f32.mxu0 %v12163_v34  ;;  %v3254_v38 = vand.u32 4294901760, %v9443_v0  ;;  %12482 = vst [vmem:[#allocation70_spill] sm:$0xff] %v9498_v55 }
 0x393   : > { %12474 = vst [vmem:[#allocation56_spill] sm:$0xff] %v9463_v7  ;;  %v9478_v49 = vsub.f32 %v9421_v21, %v12477_v42  ;;  %v9484_v7 = vsub.f32 %v9437_v53, %v3251_v62  ;;  %v3263_v42 = vand.u32 4294901760, %v9466_v57  ;;  %6389 = vmatpush1.bf16.msra.mxu0 %v9470_v61  ;;  %v12483_v53 = vand.u32 4294901760, %v9350_v48 }
 0x394   : > { %v9490_v47 = vsub.f32 %v9443_v0, %v3254_v38  ;;  %6390 = vmatprep.subr.bf16.mxu0 %v12470_v56  ;;  %6685 = vmatpush1.bf16.msra.mxu1 %v9470_v61  ;;  %v12487_v48 = vand.u32 4294901760, %v9364_v28  ;;  %v3181_v28 = vld [vmem:[#allocation7 + $0xd8] sm:$0xff] }
 0x395   : > { %12478 = vst [vmem:[#allocation63_spill] sm:$0xff] %v9478_v49  ;;  %12479 = vst [vmem:[#allocation65_spill] sm:$0xff] %v9484_v7  ;;  %2736 = vmatmul.mubr.f32.gmra.mrb[14].mxu0 %v12427_v35  ;;  %v9495_v49 = vsub.f32 %v9454_v32, %v3257_v13  ;;  %v9504_v7 = vpack.c.bf16 %v3221_v4, %v12483_v53  ;;  %v9507_v0 = vsub.f32 %v9466_v57, %v3263_v42 }
 0x396   : > { %12480 = vst [vmem:[#allocation66_spill] sm:$0xff] %v9490_v47  ;;  %2741 = vmatprep.mubr.f32.mxu0 %v12163_v34  ;;  %6670 = vmatprep.subr.bf16.mxu1 %v12470_v56  ;;  %v12486_v35 = vand.u32 4294901760, %v9362_v33  ;;  %v9545_v33 = vpack.c.bf16 %v3245_v36, %v3242_v41  ;;  %v3185_v36 = vld [vmem:[#allocation7 + $0xf8] sm:$0xff] }
 0x397   : > { %12481 = vst [vmem:[#allocation68_spill] sm:$0xff] %v9495_v49  ;;  %12484 = vst [vmem:[#allocation72_spill] sm:$0xff] %v9504_v7  ;;  %6392 = vmatpush1.bf16.msra.mxu0 %v9504_v7 }
 0x398   : > { %12485 = vst [vmem:[#allocation75_spill] sm:$0xff] %v9507_v0  ;;  %v9519_v51 = vpack.c.bf16 %v12487_v48, %v12486_v35  ;;  %6393 = vmatprep.subr.bf16.mxu0 %v12470_v56  ;;  %6686 = vmatpush1.bf16.msra.mxu1 %v9504_v7  ;;  %12492 = vst [vmem:[#allocation82_spill] sm:$0xff] %v9545_v33 }
 0x399   : > { %2743 = vmatmul.mubr.f32.gmra.mrb[16].mxu0 %v12429_v52  ;;  %6671 = vmatprep.subr.bf16.mxu1 %v12470_v56  ;;  %v12489_v52 = vand.u32 4294901760, %v9373_v17  ;;  %v3275_v17 = vand.u32 4294901760, %v3181_v28 }
 0x39a   : > { %2748 = vmatprep.mubr.f32.mxu0 %v12163_v34  ;;  %12488 = vst [vmem:[#allocation76_spill] sm:$0xff] %v9519_v51 }
 0x39b   : > { %6395 = vmatpush1.bf16.msra.mxu0 %v9519_v51  ;;  %v9529_v4 = vpack.c.bf16 %v3233_v31, %v12489_v52  ;;  %v12509_v52 = vld [vmem:[#allocation32_spill] sm:$0xff] }
 0x39c   : > { %6396 = vmatprep.subr.bf16.mxu0 %v12470_v56  ;;  %6687 = vmatpush1.bf16.msra.mxu1 %v9519_v51 }
 0x39d   : > { %2750 = vmatmul.mubr.f32.gmra.mrb[18].mxu0 %v12430_v27  ;;  %12490 = vst [vmem:[#allocation78_spill] sm:$0xff] %v9529_v4  ;;  %6672 = vmatprep.subr.bf16.mxu1 %v12470_v56  ;;  %v9537_v27 = vpack.c.bf16 %v3239_v22, %v3236_v23  ;;  %v3183_v23 = vld [vmem:[#allocation7 + $0xe8] sm:$0xff] }
 0x39e   : > { %2755 = vmatprep.mubr.f32.mxu0 %v12163_v34  ;;  %v3281_v22 = vand.u32 4294901760, %v3183_v23 }
 0x39f   : > { %6398 = vmatpush1.bf16.msra.mxu0 %v9529_v4  ;;  %12491 = vst [vmem:[#allocation80_spill] sm:$0xff] %v9537_v27 }
 0x3a0   : > { %6399 = vmatprep.subr.bf16.mxu0 %v12470_v56  ;;  %6688 = vmatpush1.bf16.msra.mxu1 %v9529_v4 }
 0x3a1   : > { %2757 = vmatmul.mubr.f32.gmra.mrb[20].mxu0 %v12431_v29  ;;  %6673 = vmatprep.subr.bf16.mxu1 %v12470_v56  ;;  %v12493_v29 = vand.u32 4294901760, %v9421_v21  ;;  %v9571_v21 = vpack.c.bf16 %v3263_v42, %v3260_v30  ;;  %v9626_v30 = vsub.f32 %v3181_v28, %v3275_v17  ;;  %v9634_v42 = vsub.f32 %v3183_v23, %v3281_v22 }
 0x3a2   : > { %2762 = vmatprep.mubr.f32.mxu0 %v12163_v34 }
 0x3a3   : > { %6401 = vmatpush1.bf16.msra.mxu0 %v9537_v27  ;;  %12496 = vst [vmem:[#allocation88_spill] sm:$0xff] %v9571_v21  ;;  %12504 = vst [vmem:[#allocation26_spill] sm:$0xff] %v9626_v30 }
 0x3a4   : > { %6402 = vmatprep.subr.bf16.mxu0 %v12470_v56  ;;  %6689 = vmatpush1.bf16.msra.mxu1 %v9537_v27  ;;  %12506 = vst [vmem:[#allocation15_spill] sm:$0xff] %v9634_v42 }
 0x3a5   : > { %2764 = vmatmul.mubr.f32.gmra.mrb[22].mxu0 %v12432_v20  ;;  %6674 = vmatprep.subr.bf16.mxu1 %v12470_v56  ;;  %v9555_v20 = vpack.c.bf16 %v3251_v62, %v12493_v29  ;;  %v3287_v62 = vand.u32 4294901760, %v3185_v36  ;;  %v11683_v29 = vand.u32 4294901760, %v12509_v52 }
 0x3a6   : > { %2769 = vmatprep.mubr.f32.mxu0 %v12163_v34 }
 0x3a7   : > { %6404 = vmatpush1.bf16.msra.mxu0 %v9545_v33  ;;  %12494 = vst [vmem:[#allocation85_spill] sm:$0xff] %v9555_v20  ;;  %v9640_v35 = vsub.f32 %v3185_v36, %v3287_v62 }
 0x3a8   : > { %6405 = vmatprep.subr.bf16.mxu0 %v12470_v56  ;;  %6690 = vmatpush1.bf16.msra.mxu1 %v9545_v33 }
 0x3a9   : > { %2771 = vmatmul.mubr.f32.gmra.mrb[24].mxu0 %v12433_v63  ;;  %6675 = vmatprep.subr.bf16.mxu1 %v12470_v56  ;;  %v9563_v63 = vpack.c.bf16 %v3257_v13, %v3254_v38  ;;  %12508 = vst [vmem:[#allocation16_spill] sm:$0xff] %v9640_v35 }
 0x3aa   : > { %2776 = vmatprep.mubr.f32.mxu0 %v12163_v34 }
 0x3ab   : > { %6407 = vmatpush1.bf16.msra.mxu0 %v9555_v20  ;;  %12495 = vst [vmem:[#allocation86_spill] sm:$0xff] %v9563_v63 }
 0x3ac   : > { %6408 = vmatprep.subr.bf16.mxu0 %v12470_v56  ;;  %6691 = vmatpush1.bf16.msra.mxu1 %v9555_v20 }
 0x3ad   : > { %2778 = vmatmul.mubr.f32.gmra.mrb[26].mxu0 %v12434_v44  ;;  %6676 = vmatprep.subr.bf16.mxu1 %v12470_v56  ;;  %v3178_v44 = vld [vmem:[#allocation7 + $0xc0] sm:$0xff] }
 0x3ae   : > { %2783 = vmatprep.mubr.f32.mxu0 %v12163_v34 }
 0x3af   : > { %6410 = vmatpush1.bf16.msra.mxu0 %v9563_v63 }
 0x3b0   : > { %6411 = vmatprep.subr.bf16.mxu0 %v12470_v56  ;;  %6692 = vmatpush1.bf16.msra.mxu1 %v9563_v63 }
 0x3b1   : > { %2785 = vmatmul.mubr.f32.gmra.mrb[28].mxu0 %v12435_v60  ;;  %6677 = vmatprep.subr.bf16.mxu1 %v12470_v56  ;;  %v3179_v60 = vld [vmem:[#allocation7 + $0xc8] sm:$0xff] }
 0x3b2   : > { %2790 = vmatprep.mubr.f32.mxu0 %v12163_v34 }
 0x3b3   : > { %6413 = vmatpush1.bf16.msra.mxu0 %v9571_v21 }
 0x3b4   : > { %6414 = vmatprep.subr.bf16.mxu0 %v12470_v56  ;;  %6693 = vmatpush1.bf16.msra.mxu1 %v9571_v21 }
 0x3b5   : > { %2792 = vmatmul.mubr.f32.gmra.mrb[30].mxu0 %v12436_v37  ;;  %6678 = vmatprep.subr.bf16.mxu1 %v12470_v56  ;;  %v3266_v37 = vand.u32 4294901760, %v3178_v44 }
 0x3b6   : > { %2797 = vmatprep.mubr.f32.mxu0 %v12163_v34 }
 0x3b9   : > { %2799 = vmatmul.mubr.f32.gmra.mrb[32].mxu0 %v12437_v8  ;;  %v3269_v8 = vand.u32 4294901760, %v3179_v60 }
 0x3ba   : > { %2804 = vmatprep.mubr.f32.mxu0 %v12163_v34 }
 0x3bb   : > { %v9622_v38 = vsub.f32 %v3179_v60, %v3269_v8 }
 0x3bd   : > { %2806 = vmatmul.mubr.f32.gmra.mrb[34].mxu0 %v12438_v15  ;;  %v9593_v15 = vpack.c.bf16 %v3269_v8, %v3266_v37  ;;  %12502 = vst [vmem:[#allocation100_spill] sm:$0xff] %v9622_v38 }
 0x3be   : > { %2811 = vmatprep.mubr.f32.mxu0 %v12163_v34 }
 0x3bf   : > { %12497 = vst [vmem:[#allocation90_spill] sm:$0xff] %v9593_v15  ;;  %6416 = vmatpush1.bf16.msra.mxu0 %v9593_v15  ;;  %6694 = vmatpush1.bf16.msra.mxu1 %v9593_v15  ;;  %v12522_v15 = vld [vmem:[#allocation65_spill] sm:$0xff] }
 0x3c0   : > { %6417 = vmatprep.subr.bf16.mxu0 %v12470_v56  ;;  %6679 = vmatprep.subr.bf16.mxu1 %v12470_v56 }
 0x3c1   : > { %2813 = vmatmul.mubr.f32.gmra.mrb[36].mxu0 %v12439_v39  ;;  %v3180_v39 = vld [vmem:[#allocation7 + $0xd0] sm:$0xff] }
 0x3c2   : > { %2818 = vmatprep.mubr.f32.mxu0 %v12163_v34 }
 0x3c5   : > { %2820 = vmatmul.mubr.f32.gmra.mrb[38].mxu0 %v12440_v14  ;;  %v3272_v14 = vand.u32 4294901760, %v3180_v39 }
 0x3c6   : > { %2825 = vmatprep.mubr.f32.mxu0 %v12163_v34 }
 0x3c7   : > { %v9624_v13 = vsub.f32 %v3180_v39, %v3272_v14  ;;  %v12511_v39 = vld [vmem:[#allocation38_spill] sm:$0xff] }
 0x3c8   : > { %v11684_v28 = vand.u32 4294901760, %v12511_v39 }
 0x3c9   : > { %2827 = vmatmul.mubr.f32.gmra.mrb[40].mxu0 %v12441_v24  ;;  %v9601_v24 = vpack.c.bf16 %v3275_v17, %v3272_v14  ;;  %12503 = vst [vmem:[#allocation102_spill] sm:$0xff] %v9624_v13  ;;  %v12512_v14 = vld [vmem:[#allocation40_spill] sm:$0xff] }
 0x3ca   : > { %2832 = vmatprep.mubr.f32.mxu0 %v12163_v34  ;;  %v11685_v17 = vand.u32 4294901760, %v12512_v14 }
 0x3cb   : > { %12498 = vst [vmem:[#allocation93_spill] sm:$0xff] %v9601_v24  ;;  %6419 = vmatpush1.bf16.msra.mxu0 %v9601_v24  ;;  %6695 = vmatpush1.bf16.msra.mxu1 %v9601_v24  ;;  %v12521_v24 = vld [vmem:[#allocation63_spill] sm:$0xff] }
 0x3cc   : > { %6420 = vmatprep.subr.bf16.mxu0 %v12470_v56  ;;  %6680 = vmatprep.subr.bf16.mxu1 %v12470_v56 }
 0x3cd   : > { %2834 = vmatmul.mubr.f32.gmra.mrb[42].mxu0 %v12442_v26  ;;  %v3182_v26 = vld [vmem:[#allocation7 + $0xe0] sm:$0xff] }
 0x3ce   : > { %2839 = vmatprep.mubr.f32.mxu0 %v12163_v34  ;;  %v3278_v32 = vand.u32 4294901760, %v3182_v26 }
 0x3d0   : > { %v9609_v31 = vpack.c.bf16 %v3281_v22, %v3278_v32 }
 0x3d1   : > { %2841 = vmatmul.mubr.f32.gmra.mrb[44].mxu0 %v12443_v45  ;;  %v3184_v45 = vld [vmem:[#allocation7 + $0xf0] sm:$0xff] }
 0x3d2   : > { %2846 = vmatprep.mubr.f32.mxu0 %v12163_v34  ;;  %12499 = vst [vmem:[#allocation94_spill] sm:$0xff] %v9609_v31  ;;  %6422 = vmatpush1.bf16.msra.mxu0 %v9609_v31  ;;  %v3284_v41 = vand.u32 4294901760, %v3184_v45 }
 0x3d3   : > { %6696 = vmatpush1.bf16.msra.mxu1 %v9609_v31  ;;  %6423 = vmatprep.subr.bf16.mxu0 %v12470_v56 }
 0x3d4   : > { %6681 = vmatprep.subr.bf16.mxu1 %v12470_v56  ;;  %v9617_v57 = vpack.c.bf16 %v3287_v62, %v3284_v41  ;;  %v9638_v53 = vsub.f32 %v3184_v45, %v3284_v41  ;;  %v12515_v41 = vld [vmem:[#allocation23_spill] sm:$0xff] }
 0x3d5   : > { %2848 = vmatmul.mubr.f32.gmra.mrb[46].mxu0 %v12444_v46  ;;  %v9620_v46 = vsub.f32 %v3178_v44, %v3266_v37  ;;  %v12510_v44 = vld [vmem:[#allocation37_spill] sm:$0xff] }
 0x3d6   : > { %2853 = vmatprep.mubr.f32.mxu0 %v12163_v34  ;;  %12500 = vst [vmem:[#allocation96_spill] sm:$0xff] %v9617_v57  ;;  %6425 = vmatpush1.bf16.msra.mxu0 %v9617_v57  ;;  %12507 = vst [vmem:[#allocation30_spill] sm:$0xff] %v9638_v53  ;;  %v11682_v60 = vand.u32 4294901760, %v12510_v44 }
 0x3d7   : > { %12501 = vst [vmem:[#allocation98_spill] sm:$0xff] %v9620_v46  ;;  %6697 = vmatpush1.bf16.msra.mxu1 %v9617_v57 }
 0x3d8   : > { %6426 = vmatprep.subr.bf16.mxu1 %v12470_v56 }
 0x3d9   : > { %2855 = vmatmul.mubr.f32.gmra.mrb[48].mxu0 %v12445_v9  ;;  %v9632_v9 = vsub.f32 %v3182_v26, %v3278_v32  ;;  %v12513_v26 = vld [vmem:[#allocation42_spill] sm:$0xff] }
 0x3da   : > { %2860 = vmatprep.mubr.f32.mxu0 %v12163_v34  ;;  %v11692_v23 = vand.u32 4294901760, %v12513_v26  ;;  %v12514_v32 = vld [vmem:[#allocation22_spill] sm:$0xff] }
 0x3db   : > { %12505 = vst [vmem:[#allocation14_spill] sm:$0xff] %v9632_v9  ;;  %v11697_v22 = vand.u32 4294901760, %v12514_v32 }
 0x3dd   : > { %2862 = vmatmul.mubr.f32.gmra.mrb[50].mxu0 %v12446_v12  ;;  %v358_v12 = vlaneseq }
 0x3de   : > { %2867 = vmatprep.mubr.f32.mxu0 %v12163_v34 }
 0x3e1   : > { %2869 = vmatmul.mubr.f32.gmra.mrb[52].mxu0 %v12447_v25  ;;  %v359_v25 = vshrl.u32 %v358_v12, 7  ;;  %v12516_v12 = vld [vmem:[#allocation47_spill] sm:$0xff] }
 0x3e2   : > { %2874 = vmatprep.mubr.f32.mxu0 %v12163_v34 }
 0x3e5   : > { %2876 = vmatmul.mubr.f32.gmra.mrb[54].mxu0 %v12448_v11  ;;  %v11681_v11 = vand.u32 4294901760, %v9354_v16 }
 0x3e6   : > { %2881 = vmatprep.mubr.f32.mxu0 %v12163_v34 }
 0x3e9   : > { %2883 = vmatmul.mubr.f32.gmra.mrb[56].mxu0 %v12449_v50  ;;  %v11680_v50 = vand.u32 4294901760, %v9356_v18 }
 0x3ea   : > { %2888 = vmatprep.mubr.f32.mxu0 %v12163_v34 }
 0x3ed   : > { %2890 = vmatmul.mubr.f32.gmra.mrb[58].mxu0 %v12450_v5  ;;  %v11679_v5 = vand.u32 4294901760, %v9358_v2 }
 0x3ee   : > { %2895 = vmatprep.mubr.f32.mxu0 %v12163_v34 }
 0x3f1   : > { %2897 = vmatmul.mubr.f32.gmra.mrb[60].mxu0 %v12451_v6  ;;  %v11678_v6 = vand.u32 4294901760, %v9369_v19 }
 0x3f2   : > { %2902 = vmatprep.mubr.f32.mxu0 %v12163_v34 }
 0x3f3   : > { %v3855_v48 = vsub.f32 %v9369_v19, %v11678_v6 }
 0x3f5   : > { %2904 = vmatmul.mubr.f32.gmra.mrb[62].mxu0 %v12452_v43  ;;  %v360_v43 = vsub.s32 0, %v359_v25 }
 0x3f6   : > { %2909 = vmatprep.mubr.f32.mxu0 %v12163_v34 }
 0x3f9   : > { %2911 = vmatmul.mubr.f32.gmra.mrb[64].mxu0 %v12453_v40  ;;  %v364_v40 = vsub.s32 1, %v359_v25  ;;  %v11702_v25 = vand.u32 4294901760, %v12516_v12 }
 0x3fa   : > { %2916 = vmatprep.mubr.f32.mxu0 %v12163_v34 }
 0x3fd   : > { %2918 = vmatmul.mubr.f32.gmra.mrb[66].mxu0 %v12454_v58  ;;  %v356_v58 = vld [vmem:[%s11396_s2] sm:$0x3] }
 0x3fe   : > { %2923 = vmatprep.mubr.f32.mxu0 %v12163_v34  ;;  %v9681_v37 = vrot.slane %v356_v58, %v360_v43  ;;  %v9683_v8 = vrot.slane %v356_v58, %v364_v40  ;;  %v3862_v43 = vsub.f32 %v12509_v52, %v11683_v29  ;;  %v3869_v40 = vsub.f32 %v12510_v44, %v11682_v60  ;;  %v12517_v58 = vld [vmem:[#allocation48_spill] sm:$0xff] }
 0x3ff   : > { %v3890_v60 = vsub.f32 %v12513_v26, %v11692_v23  ;;  %v3897_v29 = vsub.f32 %v12514_v32, %v11697_v22  ;;  %v12523_v22 = vand.u32 4294901760, %v12517_v58 }
 0x400   : > { %v3863_v57 = vand.u32 4294901760, %v3862_v43  ;;  %v3870_v31 = vand.u32 4294901760, %v3869_v40 }
 0x401   : > { %2925 = vmatmul.mubr.f32.gmra.mrb[68].mxu0 %v12455_v10  ;;  %v3841_v10 = vsub.f32 %v9356_v18, %v11680_v50  ;;  %v3918_v63 = vsub.f32 %v12517_v58, %v12523_v22  ;;  %v3891_v33 = vand.u32 4294901760, %v3890_v60  ;;  %v3898_v21 = vand.u32 4294901760, %v3897_v29 }
 0x402   : > { %2930 = vmatprep.mubr.f32.mxu0 %v12163_v34  ;;  %v3834_v34 = vsub.f32 %v9354_v16, %v11681_v11  ;;  %v12520_v11 = vld [vmem:[#allocation56_spill] sm:$0xff]  ;;  %v12530_v29 = vand.u32 4294901760, %v12522_v15 }
 0x403   : > { %v3842_v36 = vand.u32 4294901760, %v3841_v10  ;;  %v12519_v10 = vand.u32 4294901760, %v12515_v41  ;;  %v12527_v22 = vand.u32 4294901760, %v12520_v11 }
 0x404   : > { %v3835_v45 = vand.u32 4294901760, %v3834_v34  ;;  %v12518_v34 = vld [vmem:[#allocation52_spill] sm:$0xff]  ;;  %v3967_v60 = vsub.f32 %v12522_v15, %v12530_v29 }
 0x405   : > { %2932 = vmatmul.mubr.f32.gmra.mrb[70].mxu0 %v12456_v1  ;;  %v3848_v1 = vsub.f32 %v9358_v2, %v11679_v5  ;;  %v3856_v5 = vand.u32 4294901760, %v3855_v48  ;;  %v3883_v48 = vsub.f32 %v12512_v14, %v11685_v17  ;;  %v3904_v62 = vsub.f32 %v12515_v41, %v12519_v10 }
 0x406   : > { %v12524_v10 = vand.u32 4294901760, %v9447_v3  ;;  %v12526_v17 = vand.u32 4294901760, %v9460_v59  ;;  %v3946_v51 = vsub.f32 %v12520_v11, %v12527_v22  ;;  %v9741_v61 = vpack.c.bf16 %v3842_v36, %v3835_v45 }
 0x407   : > { %v3849_v6 = vand.u32 4294901760, %v3848_v1  ;;  %v3876_v1 = vsub.f32 %v12511_v39, %v11684_v28  ;;  %v3911_v28 = vsub.f32 %v12516_v12, %v11702_v25  ;;  %v12525_v25 = vand.u32 4294901760, %v12518_v34 }
 0x408   : > { %v3925_v20 = vsub.f32 %v9447_v3, %v12524_v10  ;;  %v3939_v43 = vsub.f32 %v9460_v59, %v12526_v17  ;;  %v3884_v23 = vand.u32 4294901760, %v3883_v48  ;;  %v3905_v27 = vand.u32 4294901760, %v3904_v62 }
 0x409   : > { %v3932_v50 = vsub.f32 %v12518_v34, %v12525_v25  ;;  %v3877_v40 = vand.u32 4294901760, %v3876_v1  ;;  %v3912_v4 = vand.u32 4294901760, %v3911_v28  ;;  %v12528_v10 = vand.u32 4294901760, %v9473_v54 }
 0x40a   : > { %v9743_v25 = vpack.c.bf16 %v3856_v5, %v3849_v6  ;;  %v12529_v17 = vand.u32 4294901760, %v12521_v24  ;;  %v3919_v62 = vand.u32 4294901760, %v3918_v63  ;;  %v3926_v48 = vand.u32 4294901760, %v3925_v20 }
 0x40b   : > { %v3953_v7 = vsub.f32 %v9473_v54, %v12528_v10  ;;  %v3933_v22 = vand.u32 4294901760, %v3932_v50  ;;  %v3940_v11 = vand.u32 4294901760, %v3939_v43  ;;  %v9752_v45 = vpack.c.bf16 %v3870_v31, %v3863_v57 }
 0x40c   : > { %v3960_v1 = vsub.f32 %v12521_v24, %v12529_v17  ;;  %v9754_v5 = vpack.c.bf16 %v3884_v23, %v3877_v40  ;;  %v9756_v6 = vpack.c.bf16 %v3898_v21, %v3891_v33  ;;  %v9759_v17 = vpack.c.bf16 %v3912_v4, %v3905_v27 }
 0x40d   : > { %v3947_v24 = vand.u32 4294901760, %v3946_v51  ;;  %v3954_v29 = vand.u32 4294901760, %v3953_v7  ;;  %v3968_v50 = vand.u32 4294901760, %v3967_v60  ;;  %v9761_v15 = vpack.c.bf16 %v3926_v48, %v3919_v62 }
 0x40e   : > { %v3961_v20 = vand.u32 4294901760, %v3960_v1  ;;  %v9763_v31 = vpack.c.bf16 %v3940_v11, %v3933_v22  ;;  %v11721_v4 = vand.u32 4294901760, %v9490_v47  ;;  %v11720_v51 = vand.u32 4294901760, %v9495_v49 }
 0x40f   : > { %v9771_v40 = vpack.c.bf16 %v3954_v29, %v3947_v24 }
 0x410   : > { %v9775_v60 = vpack.c.bf16 %v3968_v50, %v3961_v20  ;;  %v9783_v22 = vsub.f32 %v9490_v47, %v11721_v4 }
 0x44c   : > { %v2688_v28 = vpop.f32.mrb[0].mxu0 }
 0x44d   : > { %v6698_v59 = vadd.f32 %v2688_v28, %v9681_v37  ;;  %v2690_v10 = vpop.f32.mrb[1].mxu0 }
 0x44e   : > { %v6699_v36 = vadd.f32 %v2690_v10, %v9683_v8 }
 0x44f   : > { %vm2938_vm0 = vcmp.gt.f32.partialorder %v6698_v59, 0.0  ;;  %v3010_v63 = vmul.f32 0.01, %v6698_v59 }
 0x450   : > { %vm2939_vm1 = vcmp.gt.f32.partialorder %v6699_v36, 0.0  ;;  %v3011_v43 = vmul.f32 0.01, %v6699_v36  ;;  %v2695_v28 = vpop.f32.mrb[2].mxu0 }
 0x451   : > { %v3082_v57 = vsel %vm2938_vm0, %v6698_v59, %v3010_v63  ;;  %v6700_v33 = vadd.f32 %v2695_v28, %v9681_v37  ;;  %v2697_v21 = vpop.f32.mrb[3].mxu0  ;;  %v9792_v63 = vsub.f32 %v9495_v49, %v11720_v51 }
 0x452   : > { %v9768_v7 = vand.u32 4294901760, %v3082_v57  ;;  %v3083_v27 = vsel %vm2939_vm1, %v6699_v36, %v3011_v43  ;;  %v6701_v23 = vadd.f32 %v2697_v21, %v9683_v8 }
 0x453   : > { %v9773_v1 = vand.u32 4294901760, %v3083_v27  ;;  %vm2940_vm2 = vcmp.gt.f32.partialorder %v6700_v33, 0.0  ;;  %v3012_v11 = vmul.f32 0.01, %v6700_v33 }
 0x454   : > { %12531 = vst [vmem:[#allocation17_spill] sm:$0xff] %v9768_v7  ;;  %v9778_v59 = vsub.f32 %v3082_v57, %v9768_v7  ;;  %vm2941_vm3 = vcmp.gt.f32.partialorder %v6701_v23, 0.0  ;;  %v3013_v62 = vmul.f32 0.01, %v6701_v23  ;;  %v2702_v48 = vpop.f32.mrb[4].mxu0 }
 0x455   : > { %12532 = vst [vmem:[#allocation31_spill] sm:$0xff] %v9773_v1  ;;  %v9786_v24 = vsub.f32 %v3083_v27, %v9773_v1  ;;  %v3084_v10 = vsel %vm2940_vm2, %v6700_v33, %v3012_v11  ;;  %v6702_v36 = vadd.f32 %v2702_v48, %v9681_v37  ;;  %v2704_v29 = vpop.f32.mrb[5].mxu0 }
 0x456   : > { %12533 = vst [vmem:[#allocation18_spill] sm:$0xff] %v9778_v59  ;;  %v11728_v20 = vand.u32 4294901760, %v9778_v59  ;;  %v9795_v50 = vand.u32 4294901760, %v3084_v10  ;;  %v3085_v43 = vsel %vm2941_vm3, %v6701_v23, %v3013_v62  ;;  %v6703_v28 = vadd.f32 %v2704_v29, %v9683_v8 }
 0x457   : > { %12534 = vst [vmem:[#allocation19_spill] sm:$0xff] %v9786_v24  ;;  %v9798_v57 = vand.u32 4294901760, %v3085_v43  ;;  %vm2942_vm4 = vcmp.gt.f32.partialorder %v6702_v36, 0.0  ;;  %v3014_v21 = vmul.f32 0.01, %v6702_v36  ;;  %v11734_v33 = vand.u32 4294901760, %v9786_v24 }
 0x458   : > { %12535 = vst [vmem:[#allocation34_spill] sm:$0xff] %v9795_v50  ;;  %v3298_v27 = vsub.f32 %v9778_v59, %v11728_v20  ;;  %v9805_v11 = vsub.f32 %v3084_v10, %v9795_v50  ;;  %vm2943_vm5 = vcmp.gt.f32.partialorder %v6703_v28, 0.0  ;;  %v3015_v48 = vmul.f32 0.01, %v6703_v28  ;;  %v2709_v51 = vpop.f32.mrb[6].mxu0 }
 0x459   : > { %12536 = vst [vmem:[#allocation20_spill] sm:$0xff] %v9798_v57  ;;  %v9808_v23 = vsub.f32 %v3085_v43, %v9798_v57  ;;  %v3086_v62 = vsel %vm2942_vm4, %v6702_v36, %v3014_v21  ;;  %v6704_v29 = vadd.f32 %v2709_v51, %v9681_v37  ;;  %v2711_v4 = vpop.f32.mrb[7].mxu0  ;;  %v3292_v49 = vsub.f32 %v9786_v24, %v11734_v33 }
 0x45a   : > { %12537 = vst [vmem:[#allocation21_spill] sm:$0xff] %v9805_v11  ;;  %v3299_v47 = vand.u32 4294901760, %v3298_v27  ;;  %v9814_v54 = vand.u32 4294901760, %v3086_v62  ;;  %v3087_v20 = vsel %vm2943_vm5, %v6703_v28, %v3015_v48  ;;  %v6705_v10 = vadd.f32 %v2711_v4, %v9683_v8 }
 0x45b   : > { %12538 = vst [vmem:[#allocation39_spill] sm:$0xff] %v9808_v23  ;;  %v9817_v59 = vand.u32 4294901760, %v3087_v20  ;;  %vm2944_vm6 = vcmp.gt.f32.partialorder %v6704_v29, 0.0  ;;  %v3016_v34 = vmul.f32 0.01, %v6704_v29  ;;  %v3293_v43 = vand.u32 4294901760, %v3292_v49 }
 0x45c   : > { %12539 = vst [vmem:[#allocation24_spill] sm:$0xff] %v9814_v54  ;;  %v9820_v36 = vsub.f32 %v3086_v62, %v9814_v54  ;;  %vm2945_vm7 = vcmp.gt.f32.partialorder %v6705_v10, 0.0  ;;  %v3017_v51 = vmul.f32 0.01, %v6705_v10  ;;  %v2716_v21 = vpop.f32.mrb[8].mxu0  ;;  %v11739_v3 = vand.u32 4294901760, %v9808_v23 }
 0x45d   : > { %12540 = vst [vmem:[#allocation25_spill] sm:$0xff] %v9817_v59  ;;  %v9824_v27 = vsub.f32 %v3087_v20, %v9817_v59  ;;  %v3088_v33 = vsel %vm2944_vm6, %v6704_v29, %v3016_v34  ;;  %v6706_v28 = vadd.f32 %v2716_v21, %v9681_v37  ;;  %v2718_v4 = vpop.f32.mrb[9].mxu0  ;;  %3294 = vmatprep.mubr.f32.mxu0 %v3293_v43  ;;  %v11744_v48 = vand.u32 4294901760, %v9805_v11 }
 0x45e   : > { %12541 = vst [vmem:[#allocation41_spill] sm:$0xff] %v9820_v36  ;;  %v9828_v24 = vand.u32 4294901760, %v3088_v33  ;;  %v3089_v49 = vsel %vm2945_vm7, %v6705_v10, %v3017_v51  ;;  %v6707_v62 = vadd.f32 %v2718_v4, %v9683_v8  ;;  %3300 = vmatmul.mubr.f32.vlgmr.msra.gmra.mrb[72].mxu0 %v3299_v47  ;;  %v3307_v58 = vsub.f32 %v9808_v23, %v11739_v3 }
 0x45f   : > { %12542 = vst [vmem:[#allocation27_spill] sm:$0xff] %v9824_v27  ;;  %v9834_v12 = vand.u32 4294901760, %v3089_v49  ;;  %vm2946_vm8 = vcmp.gt.f32.partialorder %v6706_v28, 0.0  ;;  %v3018_v34 = vmul.f32 0.01, %v6706_v28  ;;  %v3313_v20 = vsub.f32 %v9805_v11, %v11744_v48 }
 0x460   : > { %12543 = vst [vmem:[#allocation28_spill] sm:$0xff] %v9828_v24  ;;  %vm2947_vm9 = vcmp.gt.f32.partialorder %v6707_v62, 0.0  ;;  %v3019_v29 = vmul.f32 0.01, %v6707_v62  ;;  %v2723_v43 = vpop.f32.mrb[10].mxu0  ;;  %v3308_v21 = vand.u32 4294901760, %v3307_v58  ;;  %v9845_v41 = vsub.f32 %v3088_v33, %v9828_v24 }
 0x461   : > { %12544 = vst [vmem:[#allocation43_spill] sm:$0xff] %v9834_v12  ;;  %v9841_v47 = vsub.f32 %v3089_v49, %v9834_v12  ;;  %v3090_v51 = vsel %vm2946_vm8, %v6706_v28, %v3018_v34  ;;  %v6708_v4 = vadd.f32 %v2723_v43, %v9681_v37  ;;  %v2725_v3 = vpop.f32.mrb[11].mxu0  ;;  %v3314_v23 = vand.u32 4294901760, %v3313_v20 }
 0x462   : > { %12546 = vst [vmem:[#allocation35_spill] sm:$0xff] %v9845_v41  ;;  %v3091_v32 = vsel %vm2947_vm9, %v6707_v62, %v3019_v29  ;;  %v6709_v48 = vadd.f32 %v2725_v3, %v9683_v8  ;;  %3309 = vmatprep.mubr.f32.mxu0 %v3308_v21  ;;  %v11752_v11 = vand.u32 4294901760, %v9824_v27  ;;  %v9849_v58 = vand.u32 4294901760, %v3090_v51 }
 0x463   : > { %12545 = vst [vmem:[#allocation33_spill] sm:$0xff] %v9841_v47  ;;  %vm2948_vm10 = vcmp.gt.f32.partialorder %v6708_v4, 0.0  ;;  %v3020_v10 = vmul.f32 0.01, %v6708_v4  ;;  %3315 = vmatmul.mubr.f32.gmra.mrb[74].mxu0 %v3314_v23  ;;  %v11753_v28 = vand.u32 4294901760, %v9820_v36  ;;  %v9852_v49 = vand.u32 4294901760, %v3091_v32 }
 0x464   : > { %12547 = vst [vmem:[#allocation44_spill] sm:$0xff] %v9849_v58  ;;  %vm2949_vm11 = vcmp.gt.f32.partialorder %v6709_v48, 0.0  ;;  %v3021_v34 = vmul.f32 0.01, %v6709_v48  ;;  %v2730_v20 = vpop.f32.mrb[12].mxu0  ;;  %v3322_v33 = vsub.f32 %v9824_v27, %v11752_v11  ;;  %v11762_v23 = vand.u32 4294901760, %v9841_v47 }
 0x465   : > { %12548 = vst [vmem:[#allocation36_spill] sm:$0xff] %v9852_v49  ;;  %v3092_v3 = vsel %vm2948_vm10, %v6708_v4, %v3020_v10  ;;  %v6710_v62 = vadd.f32 %v2730_v20, %v9681_v37  ;;  %v2732_v29 = vpop.f32.mrb[13].mxu0  ;;  %v3328_v43 = vsub.f32 %v9820_v36, %v11753_v28  ;;  %v9868_v4 = vsub.f32 %v3090_v51, %v9849_v58 }
 0x466   : > { %v9862_v21 = vand.u32 4294901760, %v3092_v3  ;;  %v3093_v26 = vsel %vm2949_vm11, %v6709_v48, %v3021_v34  ;;  %v6711_v24 = vadd.f32 %v2732_v29, %v9683_v8  ;;  %v3323_v14 = vand.u32 4294901760, %v3322_v33 }
 0x467   : > { %v9865_v39 = vand.u32 4294901760, %v3093_v26  ;;  %vm2950_vm12 = vcmp.gt.f32.partialorder %v6710_v62, 0.0  ;;  %v3022_v11 = vmul.f32 0.01, %v6710_v62  ;;  %v3329_v10 = vand.u32 4294901760, %v3328_v43  ;;  %12551 = vst [vmem:[#allocation51_spill] sm:$0xff] %v9868_v4 }
 0x468   : > { %12549 = vst [vmem:[#allocation46_spill] sm:$0xff] %v9862_v21  ;;  %vm2951_vm13 = vcmp.gt.f32.partialorder %v6711_v24, 0.0  ;;  %v3023_v20 = vmul.f32 0.01, %v6711_v24  ;;  %3324 = vmatprep.mubr.f32.mxu0 %v3323_v14  ;;  %v2737_v28 = vpop.f32.mrb[14].mxu0  ;;  %v3337_v36 = vsub.f32 %v9841_v47, %v11762_v23  ;;  %v9874_v48 = vsub.f32 %v3092_v3, %v9862_v21 }
 0x469   : > { %12550 = vst [vmem:[#allocation49_spill] sm:$0xff] %v9865_v39  ;;  %v3094_v34 = vsel %vm2950_vm12, %v6710_v62, %v3022_v11  ;;  %3330 = vmatmul.mubr.f32.gmra.mrb[76].mxu0 %v3329_v10  ;;  %v6712_v33 = vadd.f32 %v2737_v28, %v9681_v37  ;;  %v2739_v29 = vpop.f32.mrb[15].mxu0  ;;  %v11765_v43 = vand.u32 4294901760, %v9845_v41  ;;  %v9882_v12 = vsub.f32 %v3093_v26, %v9865_v39 }
 0x46a   : > { %12552 = vst [vmem:[#allocation53_spill] sm:$0xff] %v9874_v48  ;;  %v9878_v51 = vand.u32 4294901760, %v3094_v34  ;;  %v3095_v27 = vsel %vm2951_vm13, %v6711_v24, %v3023_v20  ;;  %v6713_v14 = vadd.f32 %v2739_v29, %v9683_v8  ;;  %v3338_v58 = vand.u32 4294901760, %v3337_v36 }
 0x46b   : > { %12554 = vst [vmem:[#allocation57_spill] sm:$0xff] %v9882_v12  ;;  %vm2952_vm14 = vcmp.gt.f32.partialorder %v6712_v33, 0.0  ;;  %v3024_v23 = vmul.f32 0.01, %v6712_v33  ;;  %v3343_v11 = vsub.f32 %v9845_v41, %v11765_v43  ;;  %v9887_v3 = vand.u32 4294901760, %v3095_v27 }
 0x46c   : > { %12553 = vst [vmem:[#allocation54_spill] sm:$0xff] %v9878_v51  ;;  %vm2953_vm15 = vcmp.gt.f32.partialorder %v6713_v14, 0.0  ;;  %v3025_v28 = vmul.f32 0.01, %v6713_v14  ;;  %3339 = vmatprep.mubr.f32.mxu0 %v3338_v58  ;;  %v2744_v62 = vpop.f32.mrb[16].mxu0  ;;  %v9890_v24 = vsub.f32 %v3091_v32, %v9852_v49  ;;  %v9893_v36 = vsub.f32 %v3094_v34, %v9878_v51 }
 0x46d   : > { %12555 = vst [vmem:[#allocation59_spill] sm:$0xff] %v9887_v3  ;;  %v3096_v26 = vsel %vm2952_vm14, %v6712_v33, %v3024_v23  ;;  %v3344_v10 = vand.u32 4294901760, %v3343_v11  ;;  %v6714_v20 = vadd.f32 %v2744_v62, %v9681_v37  ;;  %v2746_v29 = vpop.f32.mrb[17].mxu0  ;;  %v11781_v34 = vand.u32 4294901760, %v9868_v4 }
 0x46e   : > { %12556 = vst [vmem:[#allocation61_spill] sm:$0xff] %v9890_v24  ;;  %12557 = vst [vmem:[#allocation62_spill] sm:$0xff] %v9893_v36  ;;  %v9896_v47 = vand.u32 4294901760, %v3096_v26  ;;  %v3097_v43 = vsel %vm2953_vm15, %v6713_v14, %v3025_v28  ;;  %v6715_v41 = vadd.f32 %v2746_v29, %v9683_v8  ;;  %v11778_v21 = vand.u32 4294901760, %v9890_v24 }
 0x46f   : > { %v9900_v58 = vand.u32 4294901760, %v3097_v43  ;;  %3345 = vmatmul.mubr.f32.gmra.mrb[78].mxu0 %v3344_v10  ;;  %vm2954_vm0 = vcmp.gt.f32.partialorder %v6714_v20, 0.0  ;;  %v3026_v32 = vmul.f32 0.01, %v6714_v20  ;;  %v9904_v23 = vsub.f32 %v3095_v27, %v9887_v3 }
 0x470   : > { %12558 = vst [vmem:[#allocation64_spill] sm:$0xff] %v9896_v47  ;;  %vm2955_vm1 = vcmp.gt.f32.partialorder %v6715_v41, 0.0  ;;  %v3027_v33 = vmul.f32 0.01, %v6715_v41  ;;  %v3352_v14 = vsub.f32 %v9890_v24, %v11778_v21  ;;  %v2751_v11 = vpop.f32.mrb[18].mxu0  ;;  %v9910_v28 = vsub.f32 %v3096_v26, %v9896_v47 }
 0x471   : > { %12559 = vst [vmem:[#allocation67_spill] sm:$0xff] %v9900_v58  ;;  %12560 = vst [vmem:[#allocation69_spill] sm:$0xff] %v9904_v23  ;;  %v3098_v62 = vsel %vm2954_vm0, %v6714_v20, %v3026_v32  ;;  %v3358_v10 = vsub.f32 %v9868_v4, %v11781_v34  ;;  %v6716_v29 = vadd.f32 %v2751_v11, %v9681_v37  ;;  %v2753_v51 = vpop.f32.mrb[19].mxu0  ;;  %v11786_v11 = vand.u32 4294901760, %v9882_v12 }
 0x472   : > { %12561 = vst [vmem:[#allocation71_spill] sm:$0xff] %v9910_v28  ;;  %v9916_v27 = vand.u32 4294901760, %v3098_v62  ;;  %v3099_v3 = vsel %vm2955_vm1, %v6715_v41, %v3027_v33  ;;  %v3353_v39 = vand.u32 4294901760, %v3352_v14  ;;  %v6717_v49 = vadd.f32 %v2753_v51, %v9683_v8 }
 0x473   : > { %v9920_v21 = vsub.f32 %v3097_v43, %v9900_v58  ;;  %v3359_v24 = vand.u32 4294901760, %v3358_v10  ;;  %vm2956_vm2 = vcmp.gt.f32.partialorder %v6716_v29, 0.0  ;;  %v3028_v26 = vmul.f32 0.01, %v6716_v29 }
 0x474   : > { %12562 = vst [vmem:[#allocation73_spill] sm:$0xff] %v9916_v27  ;;  %v9922_v20 = vand.u32 4294901760, %v3099_v3  ;;  %3354 = vmatprep.mubr.f32.mxu1 %v3353_v39  ;;  %vm2957_vm3 = vcmp.gt.f32.partialorder %v6717_v49, 0.0  ;;  %v3029_v32 = vmul.f32 0.01, %v6717_v49  ;;  %v2758_v34 = vpop.f32.mrb[20].mxu0  ;;  %v9926_v4 = vsub.f32 %v3098_v62, %v9916_v27 }
 0x475   : > { %12563 = vst [vmem:[#allocation74_spill] sm:$0xff] %v9920_v21  ;;  %3360 = vmatmul.mubr.f32.vlgmr.msra.gmra.mrb[0].mxu1 %v3359_v24  ;;  %v3100_v41 = vsel %vm2956_vm2, %v6716_v29, %v3028_v26  ;;  %v11791_v51 = vand.u32 4294901760, %v9874_v48  ;;  %v6718_v43 = vadd.f32 %v2758_v34, %v9681_v37  ;;  %v2760_v33 = vpop.f32.mrb[21].mxu0  ;;  %v3367_v10 = vsub.f32 %v9882_v12, %v11786_v11 }
 0x476   : > { %12564 = vst [vmem:[#allocation77_spill] sm:$0xff] %v9922_v20  ;;  %12565 = vst [vmem:[#allocation79_spill] sm:$0xff] %v9926_v4  ;;  %6428 = vmatpush1.bf16.msra.mxu1 %v9741_v61  ;;  %v9931_v14 = vand.u32 4294901760, %v3100_v41  ;;  %v3101_v39 = vsel %vm2957_vm3, %v6717_v49, %v3029_v32  ;;  %v6719_v47 = vadd.f32 %v2760_v33, %v9683_v8  ;;  %v11796_v12 = vand.u32 4294901760, %v9904_v23 }
 0x477   : > { %v9937_v62 = vand.u32 4294901760, %v3101_v39  ;;  %v3373_v24 = vsub.f32 %v9874_v48, %v11791_v51  ;;  %vm2958_vm4 = vcmp.gt.f32.partialorder %v6718_v43, 0.0  ;;  %v3030_v34 = vmul.f32 0.01, %v6718_v43  ;;  %6429 = vmatprep.subr.bf16.mxu1 %v12470_v56 }
 0x478   : > { %12566 = vst [vmem:[#allocation81_spill] sm:$0xff] %v9931_v14  ;;  %v9944_v61 = vsub.f32 %v3099_v3, %v9922_v20  ;;  %v3368_v49 = vand.u32 4294901760, %v3367_v10  ;;  %vm2959_vm5 = vcmp.gt.f32.partialorder %v6719_v47, 0.0  ;;  %v3031_v29 = vmul.f32 0.01, %v6719_v47  ;;  %v2765_v26 = vpop.f32.mrb[22].mxu0 }
 0x479   : > { %12567 = vst [vmem:[#allocation83_spill] sm:$0xff] %v9937_v62  ;;  %v9947_v32 = vsub.f32 %v3100_v41, %v9931_v14  ;;  %v3374_v33 = vand.u32 4294901760, %v3373_v24  ;;  %v3102_v11 = vsel %vm2958_vm4, %v6718_v43, %v3030_v34  ;;  %v2767_v27 = vpop.f32.mrb[23].mxu0  ;;  %v11801_v58 = vand.u32 4294901760, %v9893_v36 }
 0x47a   : > { %12568 = vst [vmem:[#allocation84_spill] sm:$0xff] %v9944_v61  ;;  %3369 = vmatprep.mubr.f32.mxu1 %v3368_v49  ;;  %v9950_v51 = vand.u32 4294901760, %v3102_v11  ;;  %v3103_v48 = vsel %vm2959_vm5, %v6719_v47, %v3031_v29  ;;  %6431 = vmatpush1.bf16.msra.mxu1 %v9743_v25  ;;  %v6720_v3 = vadd.f32 %v2765_v26, %v9681_v37  ;;  %v11804_v24 = vand.u32 4294901760, %v9920_v21 }
 0x47b   : > { %12569 = vst [vmem:[#allocation87_spill] sm:$0xff] %v9947_v32  ;;  %v9956_v10 = vsub.f32 %v3101_v39, %v9937_v62  ;;  %3375 = vmatmul.mubr.f32.gmra.mrb[2].mxu1 %v3374_v33  ;;  %v3382_v41 = vsub.f32 %v9904_v23, %v11796_v12  ;;  %v6721_v43 = vadd.f32 %v2767_v27, %v9683_v8  ;;  %v9964_v47 = vand.u32 4294901760, %v3103_v48 }
 0x47c   : > { %12570 = vst [vmem:[#allocation89_spill] sm:$0xff] %v9950_v51  ;;  %6432 = vmatprep.subr.bf16.mxu1 %v12470_v56  ;;  %v3388_v25 = vsub.f32 %v9893_v36, %v11801_v58  ;;  %vm2960_vm6 = vcmp.gt.f32.partialorder %v6720_v3, 0.0  ;;  %v3032_v39 = vmul.f32 0.01, %v6720_v3  ;;  %v2772_v34 = vpop.f32.mrb[24].mxu0  ;;  %v9970_v49 = vsub.f32 %v3102_v11, %v9950_v51 }
 0x47d   : > { %12571 = vst [vmem:[#allocation91_spill] sm:$0xff] %v9956_v10  ;;  %12572 = vst [vmem:[#allocation92_spill] sm:$0xff] %v9964_v47  ;;  %v3383_v29 = vand.u32 4294901760, %v3382_v41  ;;  %vm2961_vm7 = vcmp.gt.f32.partialorder %v6721_v43, 0.0  ;;  %v3033_v26 = vmul.f32 0.01, %v6721_v43  ;;  %v3397_v23 = vsub.f32 %v9920_v21, %v11804_v24 }
 0x47e   : > { %12573 = vst [vmem:[#allocation95_spill] sm:$0xff] %v9970_v49  ;;  %v2774_v27 = vpop.f32.mrb[25].mxu0  ;;  %v3389_v33 = vand.u32 4294901760, %v3388_v25  ;;  %v3104_v12 = vsel %vm2960_vm6, %v6720_v3, %v3032_v39  ;;  %v11805_v14 = vand.u32 4294901760, %v9910_v28  ;;  %6434 = vmatpush1.bf16.msra.mxu1 %v9752_v45  ;;  %v6722_v11 = vadd.f32 %v2772_v34, %v9681_v37 }
 0x47f   : > { %3384 = vmatprep.mubr.f32.mxu1 %v3383_v29  ;;  %v9977_v58 = vand.u32 4294901760, %v3104_v12  ;;  %v3105_v36 = vsel %vm2961_vm7, %v6721_v43, %v3033_v26  ;;  %v6723_v41 = vadd.f32 %v2774_v27, %v9683_v8  ;;  %6435 = vmatprep.subr.bf16.mxu1 %v12470_v56  ;;  %v9983_v3 = vsub.f32 %v3103_v48, %v9964_v47 }
 0x480   : > { %3390 = vmatmul.mubr.f32.gmra.mrb[4].mxu1 %v3389_v33  ;;  %v3398_v25 = vand.u32 4294901760, %v3397_v23  ;;  %v3403_v39 = vsub.f32 %v9910_v28, %v11805_v14  ;;  %v11814_v45 = vand.u32 4294901760, %v9944_v61  ;;  %v2779_v29 = vpop.f32.mrb[26].mxu0  ;;  %v9989_v24 = vand.u32 4294901760, %v3105_v36 }
 0x481   : > { %12574 = vst [vmem:[#allocation97_spill] sm:$0xff] %v9977_v58  ;;  %12575 = vst [vmem:[#allocation99_spill] sm:$0xff] %v9983_v3  ;;  %vm2962_vm8 = vcmp.gt.f32.partialorder %v6722_v11, 0.0  ;;  %v3034_v43 = vmul.f32 0.01, %v6722_v11  ;;  %vm2963_vm9 = vcmp.gt.f32.partialorder %v6723_v41, 0.0  ;;  %v9992_v26 = vsub.f32 %v3104_v12, %v9977_v58 }
 0x482   : > { %12576 = vst [vmem:[#allocation101_spill] sm:$0xff] %v9989_v24  ;;  %v2781_v34 = vpop.f32.mrb[27].mxu0  ;;  %3399 = vmatprep.mubr.f32.mxu1 %v3398_v25  ;;  %v3404_v48 = vand.u32 4294901760, %v3403_v39  ;;  %v3035_v27 = vmul.f32 0.01, %v6723_v41  ;;  %v3412_v23 = vsub.f32 %v9944_v61, %v11814_v45  ;;  %6437 = vmatpush1.bf16.msra.mxu1 %v9754_v5  ;;  %v11815_v14 = vand.u32 4294901760, %v9926_v4 }
 0x483   : > { %12577 = vst [vmem:[#allocation32_spill] sm:$0xff] %v9992_v26  ;;  %v3106_v33 = vsel %vm2962_vm8, %v6722_v11, %v3034_v43  ;;  %v6724_v28 = vadd.f32 %v2779_v29, %v9681_v37  ;;  %v6725_v21 = vadd.f32 %v2781_v34, %v9683_v8  ;;  %6438 = vmatprep.subr.bf16.mxu1 %v12470_v56  ;;  %v11822_v58 = vand.u32 4294901760, %v9956_v10 }
 0x484   : > { %3405 = vmatmul.mubr.f32.gmra.mrb[6].mxu1 %v3404_v48  ;;  %v10002_v12 = vand.u32 4294901760, %v3106_v33  ;;  %v3107_v25 = vsel %vm2963_vm9, %v6723_v41, %v3035_v27  ;;  %v3413_v39 = vand.u32 4294901760, %v3412_v23  ;;  %v2786_v51 = vpop.f32.mrb[28].mxu0  ;;  %v3418_v5 = vsub.f32 %v9926_v4, %v11815_v14 }
 0x485   : > { %v10005_v45 = vand.u32 4294901760, %v3107_v25  ;;  %vm2964_vm10 = vcmp.gt.f32.partialorder %v6724_v28, 0.0  ;;  %v3036_v11 = vmul.f32 0.01, %v6724_v28  ;;  %v2788_v29 = vpop.f32.mrb[29].mxu0  ;;  %v10011_v43 = vsub.f32 %v3105_v36, %v9989_v24 }
 0x486   : > { %12578 = vst [vmem:[#allocation37_spill] sm:$0xff] %v10002_v12  ;;  %3414 = vmatprep.mubr.f32.mxu1 %v3413_v39  ;;  %vm2965_vm11 = vcmp.gt.f32.partialorder %v6725_v21, 0.0  ;;  %v3037_v34 = vmul.f32 0.01, %v6725_v21  ;;  %v3427_v41 = vsub.f32 %v9956_v10, %v11822_v58  ;;  %6440 = vmatpush1.bf16.msra.mxu1 %v9756_v6  ;;  %v10018_v48 = vsub.f32 %v3106_v33, %v10002_v12 }
 0x487   : > { %12579 = vst [vmem:[#allocation103_spill] sm:$0xff] %v10005_v45  ;;  %12580 = vst [vmem:[#allocation104_spill] sm:$0xff] %v10011_v43  ;;  %v3419_v27 = vand.u32 4294901760, %v3418_v5  ;;  %v3108_v23 = vsel %vm2964_vm10, %v6724_v28, %v3036_v11  ;;  %v11823_v14 = vand.u32 4294901760, %v9947_v32  ;;  %6441 = vmatprep.subr.bf16.mxu1 %v12470_v56  ;;  %v6726_v61 = vadd.f32 %v2786_v51, %v9681_v37 }
 0x488   : > { %12581 = vst [vmem:[#allocation105_spill] sm:$0xff] %v10018_v48  ;;  %v10022_v36 = vand.u32 4294901760, %v3108_v23  ;;  %v3109_v39 = vsel %vm2965_vm11, %v6725_v21, %v3037_v34  ;;  %v3428_v4 = vand.u32 4294901760, %v3427_v41  ;;  %v2793_v24 = vpop.f32.mrb[30].mxu0  ;;  %v10026_v58 = vsub.f32 %v3107_v25, %v10005_v45 }
 0x489   : > { %3420 = vmatmul.mubr.f32.gmra.mrb[8].mxu1 %v3419_v27  ;;  %v3433_v6 = vsub.f32 %v9947_v32, %v11823_v14  ;;  %v6727_v28 = vadd.f32 %v2788_v29, %v9683_v8  ;;  %v11828_v33 = vand.u32 4294901760, %v9983_v3  ;;  %v2795_v5 = vpop.f32.mrb[31].mxu0  ;;  %v10033_v11 = vand.u32 4294901760, %v3109_v39 }
 0x48a   : > { %12582 = vst [vmem:[#allocation106_spill] sm:$0xff] %v10022_v36  ;;  %12583 = vst [vmem:[#allocation107_spill] sm:$0xff] %v10026_v58  ;;  %3429 = vmatprep.mubr.f32.mxu1 %v3428_v4  ;;  %vm2966_vm12 = vcmp.gt.f32.partialorder %v6726_v61, 0.0  ;;  %v3038_v21 = vmul.f32 0.01, %v6726_v61  ;;  %v11831_v51 = vand.u32 4294901760, %v9970_v49  ;;  %6443 = vmatpush1.bf16.msra.mxu1 %v9759_v17  ;;  %v10038_v25 = vsub.f32 %v3108_v23, %v10022_v36 }
 0x48b   : > { %12584 = vst [vmem:[#allocation108_spill] sm:$0xff] %v10033_v11  ;;  %v3434_v34 = vand.u32 4294901760, %v3433_v6  ;;  %vm2967_vm13 = vcmp.gt.f32.partialorder %v6727_v28, 0.0  ;;  %v3039_v41 = vmul.f32 0.01, %v6727_v28  ;;  %6444 = vmatprep.subr.bf16.mxu1 %v12470_v56  ;;  %v3442_v27 = vsub.f32 %v9983_v3, %v11828_v33 }
 0x48c   : > { %12585 = vst [vmem:[#allocation109_spill] sm:$0xff] %v10038_v25  ;;  %v3110_v29 = vsel %vm2966_vm12, %v6726_v61, %v3038_v21  ;;  %v3448_v4 = vsub.f32 %v9970_v49, %v11831_v51  ;;  %v6728_v14 = vadd.f32 %v2793_v24, %v9681_v37  ;;  %v2800_v17 = vpop.f32.mrb[32].mxu0  ;;  %v6729_v32 = vadd.f32 %v2795_v5, %v9683_v8 }
 0x48d   : > { %3435 = vmatmul.mubr.f32.gmra.mrb[10].mxu1 %v3434_v34  ;;  %v10048_v23 = vand.u32 4294901760, %v3110_v29  ;;  %v3111_v6 = vsel %vm2967_vm13, %v6727_v28, %v3039_v41  ;;  %v11840_v10 = vand.u32 4294901760, %v10011_v43  ;;  %v2802_v61 = vpop.f32.mrb[33].mxu0  ;;  %v10053_v21 = vsub.f32 %v3109_v39, %v10033_v11 }
 0x48e   : > { %v10055_v33 = vand.u32 4294901760, %v3111_v6  ;;  %v3443_v3 = vand.u32 4294901760, %v3442_v27  ;;  %vm2968_vm14 = vcmp.gt.f32.partialorder %v6728_v14, 0.0  ;;  %6446 = vmatpush1.bf16.msra.mxu1 %v9761_v15  ;;  %v3449_v24 = vand.u32 4294901760, %v3448_v4 }
 0x48f   : > { %12586 = vst [vmem:[#allocation110_spill] sm:$0xff] %v10048_v23  ;;  %12587 = vst [vmem:[#allocation111_spill] sm:$0xff] %v10053_v21  ;;  %v3040_v51 = vmul.f32 0.01, %v6728_v14  ;;  %vm2969_vm15 = vcmp.gt.f32.partialorder %v6729_v32, 0.0  ;;  %6447 = vmatprep.subr.bf16.mxu1 %v12470_v56  ;;  %v10060_v28 = vsub.f32 %v3110_v29, %v10048_v23  ;;  %v3457_v39 = vsub.f32 %v10011_v43, %v11840_v10 }
 0x490   : > { %12588 = vst [vmem:[#allocation112_spill] sm:$0xff] %v10055_v33  ;;  %v3041_v34 = vmul.f32 0.01, %v6729_v32  ;;  %3444 = vmatprep.mubr.f32.mxu1 %v3443_v3  ;;  %v11841_v5 = vand.u32 4294901760, %v9992_v26  ;;  %v6730_v41 = vadd.f32 %v2800_v17, %v9681_v37  ;;  %v2807_v27 = vpop.f32.mrb[34].mxu0  ;;  %v6731_v49 = vadd.f32 %v2802_v61, %v9683_v8 }
 0x491   : > { %12589 = vst [vmem:[#allocation113_spill] sm:$0xff] %v10060_v28  ;;  %3450 = vmatmul.mubr.f32.gmra.mrb[12].mxu1 %v3449_v24  ;;  %v3112_v15 = vsel %vm2968_vm14, %v6728_v14, %v3040_v51  ;;  %v11849_v36 = vand.u32 4294901760, %v10026_v58  ;;  %v2809_v11 = vpop.f32.mrb[35].mxu0  ;;  %v10070_v29 = vsub.f32 %v3111_v6, %v10055_v33  ;;  %v3458_v23 = vand.u32 4294901760, %v3457_v39 }
 0x492   : > { %v3113_v4 = vsel %vm2969_vm15, %v6729_v32, %v3041_v34  ;;  %v10072_v3 = vand.u32 4294901760, %v3112_v15  ;;  %v3463_v10 = vsub.f32 %v9992_v26, %v11841_v5  ;;  %6449 = vmatpush1.bf16.msra.mxu1 %v9763_v31  ;;  %vm2970_vm0 = vcmp.gt.f32.partialorder %v6730_v41, 0.0 }
 0x493   : > { %12590 = vst [vmem:[#allocation114_spill] sm:$0xff] %v10070_v29  ;;  %v3042_v14 = vmul.f32 0.01, %v6730_v41  ;;  %vm2971_vm1 = vcmp.gt.f32.partialorder %v6731_v49, 0.0  ;;  %v3043_v32 = vmul.f32 0.01, %v6731_v49  ;;  %6450 = vmatprep.subr.bf16.mxu1 %v12470_v56  ;;  %3459 = vmatprep.mubr.f32.mxu1 %v3458_v23  ;;  %v3472_v61 = vsub.f32 %v10026_v58, %v11849_v36 }
 0x494   : > { %12591 = vst [vmem:[#allocation115_spill] sm:$0xff] %v10072_v3  ;;  %v10080_v51 = vsub.f32 %v3112_v15, %v10072_v3  ;;  %v10082_v17 = vand.u32 4294901760, %v3113_v4  ;;  %v3464_v6 = vand.u32 4294901760, %v3463_v10  ;;  %v2814_v24 = vpop.f32.mrb[36].mxu0  ;;  %v11848_v39 = vand.u32 4294901760, %v10018_v48 }
 0x495   : > { %v3114_v34 = vsel %vm2970_vm0, %v6730_v41, %v3042_v14  ;;  %v3115_v31 = vsel %vm2971_vm1, %v6731_v49, %v3043_v32  ;;  %v6732_v5 = vadd.f32 %v2807_v27, %v9681_v37  ;;  %v2816_v26 = vpop.f32.mrb[37].mxu0  ;;  %v3473_v3 = vand.u32 4294901760, %v3472_v61 }
 0x496   : > { %12592 = vst [vmem:[#allocation116_spill] sm:$0xff] %v10080_v51  ;;  %12593 = vst [vmem:[#allocation117_spill] sm:$0xff] %v10082_v17  ;;  %3465 = vmatmul.mubr.f32.gmra.mrb[14].mxu1 %v3464_v6  ;;  %v10089_v43 = vand.u32 4294901760, %v3114_v34  ;;  %v10091_v15 = vand.u32 4294901760, %v3115_v31  ;;  %v6733_v10 = vadd.f32 %v2809_v11, %v9683_v8  ;;  %v3478_v23 = vsub.f32 %v10018_v48, %v11848_v39 }
 0x497   : > { %vm2972_vm2 = vcmp.gt.f32.partialorder %v6732_v5, 0.0  ;;  %v3044_v41 = vmul.f32 0.01, %v6732_v5  ;;  %v11854_v49 = vand.u32 4294901760, %v10053_v21  ;;  %6452 = vmatpush1.bf16.msra.mxu1 %v9771_v40  ;;  %v10100_v27 = vsub.f32 %v3113_v4, %v10082_v17  ;;  %3474 = vmatprep.mubr.f32.mxu1 %v3473_v3 }
 0x498   : > { %12594 = vst [vmem:[#allocation118_spill] sm:$0xff] %v10089_v43  ;;  %12595 = vst [vmem:[#allocation119_spill] sm:$0xff] %v10091_v15  ;;  %v10103_v14 = vsub.f32 %v3114_v34, %v10089_v43  ;;  %vm2973_vm3 = vcmp.gt.f32.partialorder %v6733_v10, 0.0  ;;  %v3045_v32 = vmul.f32 0.01, %v6733_v10  ;;  %v2821_v11 = vpop.f32.mrb[38].mxu0  ;;  %6453 = vmatprep.subr.bf16.mxu1 %v12470_v56  ;;  %v6734_v34 = vadd.f32 %v2814_v24, %v9681_v37 }
 0x499   : > { %12596 = vst [vmem:[#allocation120_spill] sm:$0xff] %v10100_v27  ;;  %v3479_v6 = vand.u32 4294901760, %v3478_v23  ;;  %v3116_v61 = vsel %vm2972_vm2, %v6732_v5, %v3044_v41  ;;  %v3487_v39 = vsub.f32 %v10053_v21, %v11854_v49  ;;  %v11857_v40 = vand.u32 4294901760, %v10038_v25  ;;  %v2823_v36 = vpop.f32.mrb[39].mxu0 }
 0x49a   : > { %12597 = vst [vmem:[#allocation121_spill] sm:$0xff] %v10103_v14  ;;  %v10110_v4 = vand.u32 4294901760, %v3116_v61  ;;  %v3117_v48 = vsel %vm2973_vm3, %v6733_v10, %v3045_v32  ;;  %v6735_v3 = vadd.f32 %v2816_v26, %v9683_v8  ;;  %v10115_v58 = vsub.f32 %v3115_v31, %v10091_v15 }
 0x49b   : > { %3480 = vmatmul.mubr.f32.gmra.mrb[16].mxu1 %v3479_v6  ;;  %v3488_v23 = vand.u32 4294901760, %v3487_v39  ;;  %v3493_v5 = vsub.f32 %v10038_v25, %v11857_v40  ;;  %v11864_v41 = vand.u32 4294901760, %v10070_v29  ;;  %v10121_v49 = vand.u32 4294901760, %v3117_v48 }
 0x49c   : > { %12598 = vst [vmem:[#allocation122_spill] sm:$0xff] %v10110_v4  ;;  %12599 = vst [vmem:[#allocation123_spill] sm:$0xff] %v10115_v58  ;;  %vm2974_vm4 = vcmp.gt.f32.partialorder %v6734_v34, 0.0  ;;  %v3046_v21 = vmul.f32 0.01, %v6734_v34  ;;  %vm2975_vm5 = vcmp.gt.f32.partialorder %v6735_v3, 0.0  ;;  %6455 = vmatpush1.bf16.msra.mxu1 %v9775_v60  ;;  %v10125_v26 = vsub.f32 %v3116_v61, %v10110_v4 }
 0x49d   : > { %12600 = vst [vmem:[#allocation124_spill] sm:$0xff] %v10121_v49  ;;  %v2828_v10 = vpop.f32.mrb[40].mxu0  ;;  %3489 = vmatprep.mubr.f32.mxu1 %v3488_v23  ;;  %v3494_v24 = vand.u32 4294901760, %v3493_v5  ;;  %v3047_v31 = vmul.f32 0.01, %v6735_v3  ;;  %v3502_v39 = vsub.f32 %v10070_v29, %v11864_v41  ;;  %6456 = vmatprep.subr.bf16.mxu1 %v12470_v56  ;;  %v11867_v40 = vand.u32 4294901760, %v10060_v28 }
 0x49e   : > { %12601 = vst [vmem:[#allocation125_spill] sm:$0xff] %v10125_v26  ;;  %v2830_v32 = vpop.f32.mrb[41].mxu0  ;;  %v3118_v6 = vsel %vm2974_vm4, %v6734_v34, %v3046_v21  ;;  %v6736_v25 = vadd.f32 %v2821_v11, %v9681_v37  ;;  %v6737_v60 = vadd.f32 %v2823_v36, %v9683_v8  ;;  %v11874_v4 = vand.u32 4294901760, %v10100_v27 }
 0x49f   : > { %3495 = vmatmul.mubr.f32.gmra.mrb[18].mxu1 %v3494_v24  ;;  %v10134_v61 = vand.u32 4294901760, %v3118_v6  ;;  %v3119_v23 = vsel %vm2975_vm5, %v6735_v3, %v3047_v31  ;;  %v3503_v5 = vand.u32 4294901760, %v3502_v39  ;;  %v3508_v21 = vsub.f32 %v10060_v28, %v11867_v40 }
 0x4a0   : > { %v10138_v43 = vand.u32 4294901760, %v3119_v23  ;;  %vm2976_vm6 = vcmp.gt.f32.partialorder %v6736_v25, 0.0  ;;  %v3048_v34 = vmul.f32 0.01, %v6736_v25  ;;  %v2835_v41 = vpop.f32.mrb[42].mxu0  ;;  %v10144_v11 = vsub.f32 %v3117_v48, %v10121_v49 }
 0x4a1   : > { %12602 = vst [vmem:[#allocation126_spill] sm:$0xff] %v10134_v61  ;;  %3504 = vmatprep.mubr.f32.mxu1 %v3503_v5  ;;  %vm2977_vm7 = vcmp.gt.f32.partialorder %v6737_v60, 0.0  ;;  %v3049_v36 = vmul.f32 0.01, %v6737_v60  ;;  %v3517_v3 = vsub.f32 %v10100_v27, %v11874_v4  ;;  %v2837_v24 = vpop.f32.mrb[43].mxu0  ;;  %v10150_v31 = vsub.f32 %v3118_v6, %v10134_v61 }
 0x4a2   : > { %12603 = vst [vmem:[#allocation127_spill] sm:$0xff] %v10138_v43  ;;  %12604 = vst [vmem:[#allocation128_spill] sm:$0xff] %v10144_v11  ;;  %v3509_v39 = vand.u32 4294901760, %v3508_v21  ;;  %v3120_v29 = vsel %vm2976_vm6, %v6736_v25, %v3048_v34  ;;  %v11875_v40 = vand.u32 4294901760, %v10080_v51  ;;  %v6738_v5 = vadd.f32 %v2828_v10, %v9681_v37 }
 0x4a3   : > { %12605 = vst [vmem:[#allocation129_spill] sm:$0xff] %v10150_v31  ;;  %v10153_v28 = vand.u32 4294901760, %v3120_v29  ;;  %v3121_v15 = vsel %vm2977_vm7, %v6737_v60, %v3049_v36  ;;  %v3518_v48 = vand.u32 4294901760, %v3517_v3  ;;  %v10157_v49 = vsub.f32 %v3119_v23, %v10138_v43 }
 0x4a4   : > { %3510 = vmatmul.mubr.f32.gmra.mrb[20].mxu1 %v3509_v39  ;;  %v3523_v4 = vsub.f32 %v10080_v51, %v11875_v40  ;;  %v6739_v6 = vadd.f32 %v2830_v32, %v9683_v8  ;;  %v11884_v25 = vand.u32 4294901760, %v10115_v58  ;;  %v2842_v21 = vpop.f32.mrb[44].mxu0  ;;  %v10164_v34 = vand.u32 4294901760, %v3121_v15 }
 0x4a5   : > { %12606 = vst [vmem:[#allocation130_spill] sm:$0xff] %v10153_v28  ;;  %12607 = vst [vmem:[#allocation131_spill] sm:$0xff] %v10157_v49  ;;  %3519 = vmatprep.mubr.f32.mxu1 %v3518_v48  ;;  %vm2978_vm8 = vcmp.gt.f32.partialorder %v6738_v5, 0.0  ;;  %v3050_v60 = vmul.f32 0.01, %v6738_v5  ;;  %v11887_v10 = vand.u32 4294901760, %v10103_v14  ;;  %v10168_v23 = vsub.f32 %v3120_v29, %v10153_v28 }
 0x4a6   : > { %12608 = vst [vmem:[#allocation132_spill] sm:$0xff] %v10164_v34  ;;  %v2844_v36 = vpop.f32.mrb[45].mxu0  ;;  %v3524_v3 = vand.u32 4294901760, %v3523_v4  ;;  %vm2979_vm9 = vcmp.gt.f32.partialorder %v6739_v6, 0.0  ;;  %v3051_v39 = vmul.f32 0.01, %v6739_v6  ;;  %v3532_v32 = vsub.f32 %v10115_v58, %v11884_v25 }
 0x4a7   : > { %12609 = vst [vmem:[#allocation133_spill] sm:$0xff] %v10168_v23  ;;  %v3122_v40 = vsel %vm2978_vm8, %v6738_v5, %v3050_v60  ;;  %v3538_v48 = vsub.f32 %v10103_v14, %v11887_v10  ;;  %v6740_v51 = vadd.f32 %v2835_v41, %v9681_v37  ;;  %v6741_v29 = vadd.f32 %v2837_v24, %v9683_v8 }
 0x4a8   : > { %3525 = vmatmul.mubr.f32.gmra.mrb[22].mxu1 %v3524_v3  ;;  %v10177_v27 = vand.u32 4294901760, %v3122_v40  ;;  %v3123_v61 = vsel %vm2979_vm9, %v6739_v6, %v3051_v39  ;;  %v11896_v4 = vand.u32 4294901760, %v10144_v11  ;;  %v2849_v28 = vpop.f32.mrb[46].mxu0  ;;  %v10182_v5 = vsub.f32 %v3121_v15, %v10164_v34 }
 0x4a9   : > { %v10184_v60 = vand.u32 4294901760, %v3123_v61  ;;  %v3533_v25 = vand.u32 4294901760, %v3532_v32  ;;  %vm2980_vm10 = vcmp.gt.f32.partialorder %v6740_v51, 0.0  ;;  %v2851_v58 = vpop.f32.mrb[47].mxu0  ;;  %v3539_v10 = vand.u32 4294901760, %v3538_v48 }
 0x4aa   : > { %12610 = vst [vmem:[#allocation134_spill] sm:$0xff] %v10177_v27  ;;  %12611 = vst [vmem:[#allocation135_spill] sm:$0xff] %v10182_v5  ;;  %v3052_v14 = vmul.f32 0.01, %v6740_v51  ;;  %vm2981_vm11 = vcmp.gt.f32.partialorder %v6741_v29, 0.0  ;;  %v10187_v3 = vsub.f32 %v3122_v40, %v10177_v27  ;;  %v3547_v24 = vsub.f32 %v10144_v11, %v11896_v4 }
 0x4ab   : > { %12612 = vst [vmem:[#allocation136_spill] sm:$0xff] %v10184_v60  ;;  %v3053_v41 = vmul.f32 0.01, %v6741_v29  ;;  %3534 = vmatprep.mubr.f32.mxu1 %v3533_v25  ;;  %v11899_v15 = vand.u32 4294901760, %v10125_v26  ;;  %v6742_v6 = vadd.f32 %v2842_v21, %v9681_v37  ;;  %v6743_v48 = vadd.f32 %v2844_v36, %v9683_v8 }
 0x4ac   : > { %12613 = vst [vmem:[#allocation137_spill] sm:$0xff] %v10187_v3  ;;  %3540 = vmatmul.mubr.f32.gmra.mrb[24].mxu1 %v3539_v10  ;;  %v3124_v39 = vsel %vm2980_vm10, %v6740_v51, %v3052_v14  ;;  %v11906_v34 = vand.u32 4294901760, %v10157_v49  ;;  %v2856_v43 = vpop.f32.mrb[48].mxu0  ;;  %v10197_v40 = vsub.f32 %v3123_v61, %v10184_v60  ;;  %v3548_v27 = vand.u32 4294901760, %v3547_v24 }
 0x4ad   : > { %v3125_v32 = vsel %vm2981_vm11, %v6741_v29, %v3053_v41  ;;  %v10199_v25 = vand.u32 4294901760, %v3124_v39  ;;  %v3553_v4 = vsub.f32 %v10125_v26, %v11899_v15  ;;  %v2858_v11 = vpop.f32.mrb[49].mxu0  ;;  %vm2982_vm12 = vcmp.gt.f32.partialorder %v6742_v6, 0.0 }
 0x4ae   : > { %12614 = vst [vmem:[#allocation138_spill] sm:$0xff] %v10197_v40  ;;  %v3054_v21 = vmul.f32 0.01, %v6742_v6  ;;  %vm2983_vm13 = vcmp.gt.f32.partialorder %v6743_v48, 0.0  ;;  %v3055_v51 = vmul.f32 0.01, %v6743_v48  ;;  %3549 = vmatprep.mubr.f32.mxu1 %v3548_v27  ;;  %v3562_v36 = vsub.f32 %v10157_v49, %v11906_v34 }
 0x4af   : > { %12615 = vst [vmem:[#allocation139_spill] sm:$0xff] %v10199_v25  ;;  %v10205_v14 = vsub.f32 %v3124_v39, %v10199_v25  ;;  %v10207_v10 = vand.u32 4294901760, %v3125_v32  ;;  %v3554_v61 = vand.u32 4294901760, %v3553_v4  ;;  %v11907_v24 = vand.u32 4294901760, %v10150_v31 }
 0x4b0   : > { %v3126_v29 = vsel %vm2982_vm12, %v6742_v6, %v3054_v21  ;;  %v3127_v41 = vsel %vm2983_vm13, %v6743_v48, %v3055_v51  ;;  %v6744_v15 = vadd.f32 %v2849_v28, %v9681_v37  ;;  %v2863_v26 = vpop.f32.mrb[50].mxu0  ;;  %v3563_v25 = vand.u32 4294901760, %v3562_v36 }
 0x4b1   : > { %12616 = vst [vmem:[#allocation140_spill] sm:$0xff] %v10205_v14  ;;  %12617 = vst [vmem:[#allocation141_spill] sm:$0xff] %v10207_v10  ;;  %3555 = vmatmul.mubr.f32.gmra.mrb[26].mxu1 %v3554_v61  ;;  %v10214_v60 = vand.u32 4294901760, %v3126_v29  ;;  %v10216_v39 = vand.u32 4294901760, %v3127_v41  ;;  %v6745_v27 = vadd.f32 %v2851_v58, %v9683_v8  ;;  %v2865_v4 = vpop.f32.mrb[51].mxu0  ;;  %v3568_v34 = vsub.f32 %v10150_v31, %v11907_v24 }
 0x4b2   : > { %vm2984_vm14 = vcmp.gt.f32.partialorder %v6744_v15, 0.0  ;;  %v3056_v6 = vmul.f32 0.01, %v6744_v15  ;;  %v11916_v48 = vand.u32 4294901760, %v10182_v5  ;;  %v10224_v28 = vsub.f32 %v3125_v32, %v10207_v10  ;;  %3564 = vmatprep.mubr.f32.mxu1 %v3563_v25 }
 0x4b3   : > { %12618 = vst [vmem:[#allocation142_spill] sm:$0xff] %v10214_v60  ;;  %12619 = vst [vmem:[#allocation143_spill] sm:$0xff] %v10216_v39  ;;  %v10227_v21 = vsub.f32 %v3126_v29, %v10214_v60  ;;  %vm2985_vm15 = vcmp.gt.f32.partialorder %v6745_v27, 0.0  ;;  %v3057_v51 = vmul.f32 0.01, %v6745_v27  ;;  %v3569_v61 = vand.u32 4294901760, %v3568_v34 }
 0x4b4   : > { %12620 = vst [vmem:[#allocation144_spill] sm:$0xff] %v10224_v28  ;;  %v3128_v58 = vsel %vm2984_vm14, %v6744_v15, %v3056_v6  ;;  %v3577_v36 = vsub.f32 %v10182_v5, %v11916_v48  ;;  %v11917_v24 = vand.u32 4294901760, %v10168_v23  ;;  %v2870_v31 = vpop.f32.mrb[52].mxu0  ;;  %v6746_v32 = vadd.f32 %v2856_v43, %v9681_v37 }
 0x4b5   : > { %12621 = vst [vmem:[#allocation145_spill] sm:$0xff] %v10227_v21  ;;  %v10233_v49 = vand.u32 4294901760, %v3128_v58  ;;  %v3129_v17 = vsel %vm2985_vm15, %v6745_v27, %v3057_v51  ;;  %v6747_v29 = vadd.f32 %v2858_v11, %v9683_v8  ;;  %v2872_v60 = vpop.f32.mrb[53].mxu0  ;;  %v10238_v25 = vsub.f32 %v3127_v41, %v10216_v39  ;;  %3570 = vmatmul.mubr.f32.gmra.mrb[28].mxu1 %v3569_v61 }
 0x4b6   : > { %v3578_v34 = vand.u32 4294901760, %v3577_v36  ;;  %v3583_v15 = vsub.f32 %v10168_v23, %v11917_v24  ;;  %v11928_v6 = vand.u32 4294901760, %v10197_v40  ;;  %v10244_v48 = vand.u32 4294901760, %v3129_v17 }
 0x4b7   : > { %12622 = vst [vmem:[#allocation146_spill] sm:$0xff] %v10233_v49  ;;  %12623 = vst [vmem:[#allocation147_spill] sm:$0xff] %v10238_v25  ;;  %vm2986_vm0 = vcmp.gt.f32.partialorder %v6746_v32, 0.0  ;;  %v3058_v27 = vmul.f32 0.01, %v6746_v32  ;;  %vm2987_vm1 = vcmp.gt.f32.partialorder %v6747_v29, 0.0  ;;  %v10247_v43 = vsub.f32 %v3128_v58, %v10233_v49 }
 0x4b8   : > { %12624 = vst [vmem:[#allocation148_spill] sm:$0xff] %v10244_v48  ;;  %3579 = vmatprep.mubr.f32.mxu1 %v3578_v34  ;;  %v3584_v11 = vand.u32 4294901760, %v3583_v15  ;;  %v3059_v41 = vmul.f32 0.01, %v6747_v29  ;;  %v3592_v51 = vsub.f32 %v10197_v40, %v11928_v6  ;;  %v2877_v61 = vpop.f32.mrb[54].mxu0  ;;  %v11929_v24 = vand.u32 4294901760, %v10187_v3 }
 0x4b9   : > { %12625 = vst [vmem:[#allocation149_spill] sm:$0xff] %v10247_v43  ;;  %v3130_v36 = vsel %vm2986_vm0, %v6746_v32, %v3058_v27  ;;  %v6748_v23 = vadd.f32 %v2863_v26, %v9681_v37  ;;  %v6749_v5 = vadd.f32 %v2865_v4, %v9683_v8  ;;  %v2879_v39 = vpop.f32.mrb[55].mxu0  ;;  %v11938_v15 = vand.u32 4294901760, %v10224_v28 }
 0x4ba   : > { %3585 = vmatmul.mubr.f32.gmra.mrb[30].mxu1 %v3584_v11  ;;  %v10255_v10 = vand.u32 4294901760, %v3130_v36  ;;  %v3131_v58 = vsel %vm2987_vm1, %v6747_v29, %v3059_v41  ;;  %v3593_v34 = vand.u32 4294901760, %v3592_v51  ;;  %v3598_v32 = vsub.f32 %v10187_v3, %v11929_v24 }
 0x4bb   : > { %v10258_v49 = vand.u32 4294901760, %v3131_v58  ;;  %vm2988_vm2 = vcmp.gt.f32.partialorder %v6748_v23, 0.0  ;;  %v3060_v27 = vmul.f32 0.01, %v6748_v23  ;;  %v10264_v26 = vsub.f32 %v3129_v17, %v10244_v48 }
 0x4bc   : > { %12626 = vst [vmem:[#allocation150_spill] sm:$0xff] %v10255_v10  ;;  %3594 = vmatprep.mubr.f32.mxu1 %v3593_v34  ;;  %vm2989_vm3 = vcmp.gt.f32.partialorder %v6749_v5, 0.0  ;;  %v3061_v4 = vmul.f32 0.01, %v6749_v5  ;;  %v3607_v29 = vsub.f32 %v10224_v28, %v11938_v15  ;;  %v2884_v11 = vpop.f32.mrb[56].mxu0  ;;  %v10270_v41 = vsub.f32 %v3130_v36, %v10255_v10 }
 0x4bd   : > { %12627 = vst [vmem:[#allocation151_spill] sm:$0xff] %v10258_v49  ;;  %12628 = vst [vmem:[#allocation152_spill] sm:$0xff] %v10264_v26  ;;  %v3599_v51 = vand.u32 4294901760, %v3598_v32  ;;  %v3132_v6 = vsel %vm2988_vm2, %v6748_v23, %v3060_v27  ;;  %v11939_v24 = vand.u32 4294901760, %v10205_v14  ;;  %v2886_v3 = vpop.f32.mrb[57].mxu0  ;;  %v6750_v34 = vadd.f32 %v2870_v31, %v9681_v37 }
 0x4be   : > { %12629 = vst [vmem:[#allocation153_spill] sm:$0xff] %v10270_v41  ;;  %v10273_v40 = vand.u32 4294901760, %v3132_v6  ;;  %v3133_v17 = vsel %vm2989_vm3, %v6749_v5, %v3061_v4  ;;  %v3608_v48 = vand.u32 4294901760, %v3607_v29  ;;  %v10277_v33 = vsub.f32 %v3131_v58, %v10258_v49 }
 0x4bf   : > { %3600 = vmatmul.mubr.f32.gmra.mrb[32].mxu1 %v3599_v51  ;;  %v3613_v36 = vsub.f32 %v10205_v14, %v11939_v24  ;;  %v6751_v32 = vadd.f32 %v2872_v60, %v9683_v8  ;;  %v11948_v23 = vand.u32 4294901760, %v10238_v25  ;;  %v10284_v27 = vand.u32 4294901760, %v3133_v17 }
 0x4c0   : > { %12630 = vst [vmem:[#allocation154_spill] sm:$0xff] %v10273_v40  ;;  %12631 = vst [vmem:[#allocation155_spill] sm:$0xff] %v10277_v33  ;;  %3609 = vmatprep.mubr.f32.mxu1 %v3608_v48  ;;  %vm2990_vm4 = vcmp.gt.f32.partialorder %v6750_v34, 0.0  ;;  %v3062_v5 = vmul.f32 0.01, %v6750_v34  ;;  %v11951_v4 = vand.u32 4294901760, %v10227_v21  ;;  %v10288_v58 = vsub.f32 %v3132_v6, %v10273_v40 }
 0x4c1   : > { %12632 = vst [vmem:[#allocation156_spill] sm:$0xff] %v10284_v27  ;;  %v2891_v31 = vpop.f32.mrb[58].mxu0  ;;  %v3614_v29 = vand.u32 4294901760, %v3613_v36  ;;  %vm2991_vm5 = vcmp.gt.f32.partialorder %v6751_v32, 0.0  ;;  %v3063_v51 = vmul.f32 0.01, %v6751_v32  ;;  %v3622_v60 = vsub.f32 %v10238_v25, %v11948_v23 }
 0x4c2   : > { %12633 = vst [vmem:[#allocation157_spill] sm:$0xff] %v10288_v58  ;;  %v2893_v15 = vpop.f32.mrb[59].mxu0  ;;  %v3134_v24 = vsel %vm2990_vm4, %v6750_v34, %v3062_v5  ;;  %v3628_v48 = vsub.f32 %v10227_v21, %v11951_v4  ;;  %v6752_v14 = vadd.f32 %v2877_v61, %v9681_v37  ;;  %v6753_v36 = vadd.f32 %v2879_v39, %v9683_v8 }
 0x4c3   : > { %3615 = vmatmul.mubr.f32.gmra.mrb[34].mxu1 %v3614_v29  ;;  %v10297_v28 = vand.u32 4294901760, %v3134_v24  ;;  %v3135_v6 = vsel %vm2991_vm5, %v6751_v32, %v3063_v51  ;;  %v11958_v40 = vand.u32 4294901760, %v10264_v26  ;;  %v3623_v34 = vand.u32 4294901760, %v3622_v60 }
 0x4c4   : > { %v10301_v10 = vand.u32 4294901760, %v3135_v6  ;;  %v3629_v5 = vand.u32 4294901760, %v3628_v48  ;;  %vm2992_vm6 = vcmp.gt.f32.partialorder %v6752_v14, 0.0  ;;  %v2898_v23 = vpop.f32.mrb[60].mxu0  ;;  %v10304_v25 = vsub.f32 %v3133_v17, %v10284_v27 }
 0x4c5   : > { %12634 = vst [vmem:[#allocation158_spill] sm:$0xff] %v10297_v28  ;;  %v3064_v4 = vmul.f32 0.01, %v6752_v14  ;;  %vm2993_vm7 = vcmp.gt.f32.partialorder %v6753_v36, 0.0  ;;  %v3065_v61 = vmul.f32 0.01, %v6753_v36  ;;  %v10307_v21 = vsub.f32 %v3134_v24, %v10297_v28  ;;  %3624 = vmatprep.mubr.f32.mxu1 %v3623_v34 }
 0x4c6   : > { %12635 = vst [vmem:[#allocation159_spill] sm:$0xff] %v10301_v10  ;;  %12636 = vst [vmem:[#allocation160_spill] sm:$0xff] %v10304_v25  ;;  %v2900_v29 = vpop.f32.mrb[61].mxu0  ;;  %v3637_v39 = vsub.f32 %v10264_v26, %v11958_v40  ;;  %v11961_v32 = vand.u32 4294901760, %v10247_v43  ;;  %v6754_v51 = vadd.f32 %v2884_v11, %v9681_v37  ;;  %v6755_v48 = vadd.f32 %v2886_v3, %v9683_v8 }
 0x4c7   : > { %12637 = vst [vmem:[#allocation161_spill] sm:$0xff] %v10307_v21  ;;  %3630 = vmatmul.mubr.f32.gmra.mrb[36].mxu1 %v3629_v5  ;;  %v3136_v60 = vsel %vm2992_vm6, %v6752_v14, %v3064_v4  ;;  %v3137_v17 = vsel %vm2993_vm7, %v6753_v36, %v3065_v61  ;;  %v11968_v27 = vand.u32 4294901760, %v10277_v33  ;;  %v10326_v4 = vsub.f32 %v3135_v6, %v10301_v10 }
 0x4c8   : > { %v10316_v49 = vand.u32 4294901760, %v3136_v60  ;;  %v10318_v24 = vand.u32 4294901760, %v3137_v17  ;;  %v3638_v34 = vand.u32 4294901760, %v3637_v39  ;;  %v3643_v40 = vsub.f32 %v10247_v43, %v11961_v32  ;;  %v10323_v26 = vpop.f32.mrb[62].mxu0 }
 0x4c9   : > { %vm2994_vm8 = vcmp.gt.f32.partialorder %v6754_v51, 0.0  ;;  %v3066_v11 = vmul.f32 0.01, %v6754_v51  ;;  %vm2995_vm9 = vcmp.gt.f32.partialorder %v6755_v48, 0.0  ;;  %v3067_v14 = vmul.f32 0.01, %v6755_v48 }
 0x4ca   : > { %12638 = vst [vmem:[#allocation162_spill] sm:$0xff] %v10316_v49  ;;  %12639 = vst [vmem:[#allocation163_spill] sm:$0xff] %v10318_v24  ;;  %v10329_v3 = vsub.f32 %v3136_v60, %v10316_v49  ;;  %3639 = vmatprep.mubr.f32.mxu1 %v3638_v34  ;;  %v3644_v36 = vand.u32 4294901760, %v3643_v40  ;;  %v3652_v5 = vsub.f32 %v10277_v33, %v11968_v27  ;;  %v10334_v61 = vpop.f32.mrb[63].mxu0  ;;  %v11969_v43 = vand.u32 4294901760, %v10270_v41 }
 0x4cb   : > { %12640 = vst [vmem:[#allocation164_spill] sm:$0xff] %v10326_v4  ;;  %v3138_v39 = vsel %vm2994_vm8, %v6754_v51, %v3066_v11  ;;  %v3139_v32 = vsel %vm2995_vm9, %v6755_v48, %v3067_v14  ;;  %v3982_v28 = vand.u32 4294901760, %v9792_v63  ;;  %v10339_v6 = vsub.f32 %v3137_v17, %v10318_v24 }
 0x4cc   : > { %12641 = vst [vmem:[#allocation165_spill] sm:$0xff] %v10329_v3  ;;  %3645 = vmatmul.mubr.f32.gmra.mrb[38].mxu1 %v3644_v36  ;;  %v10341_v60 = vand.u32 4294901760, %v3138_v39  ;;  %v3653_v34 = vand.u32 4294901760, %v3652_v5  ;;  %v6756_v40 = vadd.f32 %v2891_v31, %v9681_v37  ;;  %v10344_v49 = vpop.f32.mrb[64].mxu0  ;;  %v3658_v51 = vsub.f32 %v10270_v41, %v11969_v43 }
 0x4cd   : > { %12642 = vst [vmem:[#allocation166_spill] sm:$0xff] %v10339_v6  ;;  %v12644_v48 = vand.u32 4294901760, %v9783_v22  ;;  %v6757_v63 = vadd.f32 %v2893_v15, %v9683_v8  ;;  %v11976_v17 = vand.u32 4294901760, %v10304_v25  ;;  %v10353_v14 = vpop.f32.mrb[65].mxu0  ;;  %v10358_v5 = vand.u32 4294901760, %v3139_v32 }
 0x4ce   : > { %12643 = vst [vmem:[#allocation167_spill] sm:$0xff] %v10341_v60  ;;  %v10356_v36 = vsub.f32 %v3138_v39, %v10341_v60  ;;  %3654 = vmatprep.mubr.f32.mxu1 %v3653_v34  ;;  %vm2996_vm10 = vcmp.gt.f32.partialorder %v6756_v40, 0.0  ;;  %v3068_v31 = vmul.f32 0.01, %v6756_v40  ;;  %v3659_v27 = vand.u32 4294901760, %v3658_v51 }
 0x4cf   : > { %v6457_v11 = vpack.c.bf16 %v3982_v28, %v12644_v48  ;;  %12646 = vst [vmem:[#allocation169_spill] sm:$0xff] %v10358_v5  ;;  %vm2997_vm11 = vcmp.gt.f32.partialorder %v6757_v63, 0.0  ;;  %v3069_v43 = vmul.f32 0.01, %v6757_v63  ;;  %v3667_v22 = vsub.f32 %v10304_v25, %v11976_v17 }
 0x4d0   : > { %12645 = vst [vmem:[#allocation168_spill] sm:$0xff] %v10356_v36  ;;  %v3140_v28 = vsel %vm2996_vm10, %v6756_v40, %v3068_v31  ;;  %v11979_v15 = vand.u32 4294901760, %v10288_v58  ;;  %v6758_v48 = vadd.f32 %v2898_v23, %v9681_v37  ;;  %v6759_v39 = vadd.f32 %v2900_v29, %v9683_v8  ;;  %v10367_v34 = vpop.f32.mrb[66].mxu0  ;;  %3660 = vmatmul.mubr.f32.gmra.mrb[40].mxu1 %v3659_v27 }
 0x4d1   : > { %6458 = vmatpush1.bf16.msra.mxu1 %v6457_v11  ;;  %v10369_v51 = vand.u32 4294901760, %v3140_v28  ;;  %v3141_v11 = vsel %vm2997_vm11, %v6757_v63, %v3069_v43  ;;  %v3668_v41 = vand.u32 4294901760, %v3667_v22  ;;  %v11989_v33 = vand.u32 4294901760, %v10326_v4  ;;  %v10372_v60 = vpop.f32.mrb[67].mxu0 }
 0x4d2   : > { %6459 = vmatprep.subr.bf16.mxu1 %v12470_v56  ;;  %v10374_v40 = vand.u32 4294901760, %v3141_v11  ;;  %v3673_v23 = vsub.f32 %v10288_v58, %v11979_v15  ;;  %vm2998_vm12 = vcmp.gt.f32.partialorder %v6758_v48, 0.0  ;;  %v3070_v29 = vmul.f32 0.01, %v6758_v48 }
 0x4d3   : > { %12647 = vst [vmem:[#allocation170_spill] sm:$0xff] %v10369_v51  ;;  %v10380_v31 = vsub.f32 %v3139_v32, %v10358_v5  ;;  %3669 = vmatprep.mubr.f32.mxu1 %v3668_v41  ;;  %vm2999_vm13 = vcmp.gt.f32.partialorder %v6759_v39, 0.0  ;;  %v3071_v27 = vmul.f32 0.01, %v6759_v39  ;;  %v3682_v43 = vsub.f32 %v10326_v4, %v11989_v33 }
 0x4d4   : > { %12648 = vst [vmem:[#allocation171_spill] sm:$0xff] %v10374_v40  ;;  %v10386_v63 = vsub.f32 %v3140_v28, %v10369_v51  ;;  %v3674_v22 = vand.u32 4294901760, %v3673_v23  ;;  %v3142_v17 = vsel %vm2998_vm12, %v6758_v48, %v3070_v29  ;;  %v11988_v25 = vand.u32 4294901760, %v10307_v21  ;;  %v10389_v15 = vpop.f32.mrb[68].mxu0 }
 0x4d5   : > { %12649 = vst [vmem:[#allocation172_spill] sm:$0xff] %v10380_v31  ;;  %v10391_v58 = vand.u32 4294901760, %v3142_v17  ;;  %v3143_v32 = vsel %vm2999_vm13, %v6759_v39, %v3071_v27  ;;  %v3683_v5 = vand.u32 4294901760, %v3682_v43  ;;  %v11990_v41 = vand.u32 4294901760, %v9498_v55  ;;  %v10394_v24 = vpop.f32.mrb[69].mxu0 }
 0x4d6   : > { %v10397_v10 = vsub.f32 %v3141_v11, %v10374_v40  ;;  %3675 = vmatmul.mubr.f32.gmra.mrb[42].mxu1 %v3674_v22  ;;  %v3688_v28 = vsub.f32 %v10307_v21, %v11988_v25  ;;  %v11995_v48 = vand.u32 4294901760, %v9507_v0  ;;  %v6760_v23 = vadd.f32 %v10323_v26, %v9681_v37 }
 0x4d7   : > { %12650 = vst [vmem:[#allocation173_spill] sm:$0xff] %v10391_v58  ;;  %v10405_v29 = vand.u32 4294901760, %v3143_v32  ;;  %3684 = vmatprep.mubr.f32.mxu1 %v3683_v5  ;;  %v3988_v39 = vsub.f32 %v9498_v55, %v11990_v41  ;;  %v6761_v11 = vadd.f32 %v10334_v61, %v9683_v8  ;;  %v12002_v27 = vand.u32 4294901760, %v10339_v6 }
 0x4d8   : > { %12651 = vst [vmem:[#allocation174_spill] sm:$0xff] %v10397_v10  ;;  %v10414_v43 = vsub.f32 %v3142_v17, %v10391_v58  ;;  %v3689_v22 = vand.u32 4294901760, %v3688_v28  ;;  %v3995_v26 = vsub.f32 %v9507_v0, %v11995_v48  ;;  %vm3000_vm14 = vcmp.gt.f32.partialorder %v6760_v23, 0.0  ;;  %v10419_v25 = vpop.f32.mrb[70].mxu0 }
 0x4d9   : > { %12652 = vst [vmem:[#allocation175_spill] sm:$0xff] %v10405_v29  ;;  %v3989_v5 = vand.u32 4294901760, %v3988_v39  ;;  %v3072_v33 = vmul.f32 0.01, %v6760_v23  ;;  %vm3001_vm15 = vcmp.gt.f32.partialorder %v6761_v11, 0.0  ;;  %v3697_v61 = vsub.f32 %v10339_v6, %v12002_v27  ;;  %v10427_v4 = vpop.f32.mrb[71].mxu0 }
 0x4da   : > { %12653 = vst [vmem:[#allocation176_spill] sm:$0xff] %v10414_v43  ;;  %v3073_v41 = vmul.f32 0.01, %v6761_v11  ;;  %3690 = vmatmul.mubr.f32.gmra.mrb[44].mxu1 %v3689_v22  ;;  %v3996_v21 = vand.u32 4294901760, %v3995_v26  ;;  %v12005_v17 = vand.u32 4294901760, %v10329_v3  ;;  %v6762_v28 = vadd.f32 %v10344_v49, %v9681_v37 }
 0x4db   : > { %v3144_v48 = vsel %vm3000_vm14, %v6760_v23, %v3072_v33  ;;  %v6763_v39 = vadd.f32 %v10353_v14, %v9683_v8  ;;  %v12006_v51 = vand.u32 4294901760, %v10380_v31  ;;  %v3698_v27 = vand.u32 4294901760, %v3697_v61 }
 0x4dc   : > { %v3145_v58 = vsel %vm3001_vm15, %v6761_v11, %v3073_v41  ;;  %v6460_v22 = vpack.c.bf16 %v3996_v21, %v3989_v5  ;;  %v10432_v26 = vand.u32 4294901760, %v3144_v48  ;;  %v3703_v6 = vsub.f32 %v10329_v3, %v12005_v17 }
 0x4dd   : > { %v10434_v40 = vand.u32 4294901760, %v3145_v58  ;;  %vm3002_vm0 = vcmp.gt.f32.partialorder %v6762_v28, 0.0  ;;  %v3074_v49 = vmul.f32 0.01, %v6762_v28  ;;  %vm3003_vm1 = vcmp.gt.f32.partialorder %v6763_v39, 0.0  ;;  %3699 = vmatprep.mubr.f32.mxu1 %v3698_v27 }
 0x4de   : > { %12654 = vst [vmem:[#allocation177_spill] sm:$0xff] %v10432_v26  ;;  %v10440_v33 = vsub.f32 %v3143_v32, %v10405_v29  ;;  %6461 = vmatpush1.bf16.msra.mxu1 %v6460_v22  ;;  %v10443_v14 = vsub.f32 %v3144_v48, %v10432_v26  ;;  %v3075_v21 = vmul.f32 0.01, %v6763_v39  ;;  %v3712_v41 = vsub.f32 %v10380_v31, %v12006_v51 }
 0x4df   : > { %12655 = vst [vmem:[#allocation178_spill] sm:$0xff] %v10434_v40  ;;  %v3704_v23 = vand.u32 4294901760, %v3703_v6  ;;  %v3146_v11 = vsel %vm3002_vm0, %v6762_v28, %v3074_v49  ;;  %v12007_v5 = vand.u32 4294901760, %v10356_v36  ;;  %6462 = vmatprep.subr.bf16.mxu1 %v12470_v56  ;;  %v12008_v61 = vand.u32 4294901760, %v9620_v46 }
 0x4e0   : > { %12656 = vst [vmem:[#allocation179_spill] sm:$0xff] %v10440_v33  ;;  %12657 = vst [vmem:[#allocation180_spill] sm:$0xff] %v10443_v14  ;;  %v10451_v32 = vand.u32 4294901760, %v3146_v11  ;;  %v3147_v22 = vsel %vm3003_vm1, %v6763_v39, %v3075_v21  ;;  %v3713_v17 = vand.u32 4294901760, %v3712_v41  ;;  %v12011_v48 = vand.u32 4294901760, %v9622_v38 }
 0x4e1   : > { %v10455_v27 = vsub.f32 %v3145_v58, %v10434_v40  ;;  %3705 = vmatmul.mubr.f32.gmra.mrb[46].mxu1 %v3704_v23  ;;  %v3718_v6 = vsub.f32 %v10356_v36, %v12007_v5  ;;  %v4002_v28 = vsub.f32 %v9620_v46, %v12008_v61  ;;  %v6764_v49 = vadd.f32 %v10367_v34, %v9681_v37 }
 0x4e2   : > { %12658 = vst [vmem:[#allocation181_spill] sm:$0xff] %v10451_v32  ;;  %v10465_v51 = vand.u32 4294901760, %v3147_v22  ;;  %3714 = vmatprep.mubr.f32.mxu1 %v3713_v17  ;;  %v4009_v58 = vsub.f32 %v9622_v38, %v12011_v48  ;;  %v6765_v39 = vadd.f32 %v10372_v60, %v9683_v8  ;;  %v12018_v21 = vand.u32 4294901760, %v10397_v10 }
 0x4e3   : > { %12659 = vst [vmem:[#allocation182_spill] sm:$0xff] %v10455_v27  ;;  %v10474_v41 = vsub.f32 %v3146_v11, %v10451_v32  ;;  %v3719_v23 = vand.u32 4294901760, %v3718_v6  ;;  %v4003_v5 = vand.u32 4294901760, %v4002_v28  ;;  %vm3004_vm2 = vcmp.gt.f32.partialorder %v6764_v49, 0.0 }
 0x4e4   : > { %12660 = vst [vmem:[#allocation183_spill] sm:$0xff] %v10465_v51  ;;  %v4010_v61 = vand.u32 4294901760, %v4009_v58  ;;  %v3076_v34 = vmul.f32 0.01, %v6764_v49  ;;  %vm3005_vm3 = vcmp.gt.f32.partialorder %v6765_v39, 0.0  ;;  %v3727_v17 = vsub.f32 %v10397_v10, %v12018_v21 }
 0x4e5   : > { %12661 = vst [vmem:[#allocation184_spill] sm:$0xff] %v10474_v41  ;;  %v3077_v36 = vmul.f32 0.01, %v6765_v39  ;;  %3720 = vmatmul.mubr.f32.gmra.mrb[48].mxu1 %v3719_v23  ;;  %v12023_v48 = vand.u32 4294901760, %v10386_v63  ;;  %v6766_v60 = vadd.f32 %v10389_v15, %v9681_v37  ;;  %v6767_v11 = vadd.f32 %v10394_v24, %v9683_v8 }
 0x4e6   : > { %v6463_v6 = vpack.c.bf16 %v4010_v61, %v4003_v5  ;;  %v3148_v28 = vsel %vm3004_vm2, %v6764_v49, %v3076_v34  ;;  %v12022_v58 = vand.u32 4294901760, %v10440_v33  ;;  %v3728_v32 = vand.u32 4294901760, %v3727_v17 }
 0x4e7   : > { %v3149_v31 = vsel %vm3005_vm3, %v6765_v39, %v3077_v36  ;;  %v10485_v3 = vand.u32 4294901760, %v3148_v28  ;;  %v3733_v21 = vsub.f32 %v10386_v63, %v12023_v48  ;;  %vm3006_vm4 = vcmp.gt.f32.partialorder %v6766_v60, 0.0 }
 0x4e8   : > { %v10487_v23 = vand.u32 4294901760, %v3149_v31  ;;  %6464 = vmatpush1.bf16.msra.mxu1 %v6463_v6  ;;  %v3078_v15 = vmul.f32 0.01, %v6766_v60  ;;  %vm3007_vm5 = vcmp.gt.f32.partialorder %v6767_v11, 0.0  ;;  %v3079_v10 = vmul.f32 0.01, %v6767_v11  ;;  %3729 = vmatprep.mubr.f32.mxu1 %v3728_v32 }
 0x4e9   : > { %12662 = vst [vmem:[#allocation185_spill] sm:$0xff] %v10485_v3  ;;  %v10493_v24 = vsub.f32 %v3147_v22, %v10465_v51  ;;  %v10496_v36 = vsub.f32 %v3148_v28, %v10485_v3  ;;  %v3734_v5 = vand.u32 4294901760, %v3733_v21  ;;  %v3742_v61 = vsub.f32 %v10440_v33, %v12022_v58  ;;  %6465 = vmatprep.subr.bf16.mxu1 %v12470_v56 }
 0x4ea   : > { %12663 = vst [vmem:[#allocation186_spill] sm:$0xff] %v10487_v23  ;;  %v3150_v49 = vsel %vm3006_vm4, %v6766_v60, %v3078_v15  ;;  %v3151_v39 = vsel %vm3007_vm5, %v6767_v11, %v3079_v10  ;;  %v12021_v34 = vand.u32 4294901760, %v10414_v43  ;;  %v12025_v17 = vand.u32 4294901760, %v9624_v13 }
 0x4eb   : > { %12664 = vst [vmem:[#allocation187_spill] sm:$0xff] %v10493_v24  ;;  %12665 = vst [vmem:[#allocation188_spill] sm:$0xff] %v10496_v36  ;;  %v10505_v22 = vsub.f32 %v3149_v31, %v10487_v23  ;;  %3735 = vmatmul.mubr.f32.gmra.mrb[50].mxu1 %v3734_v5  ;;  %v10507_v6 = vand.u32 4294901760, %v3151_v39  ;;  %v3743_v32 = vand.u32 4294901760, %v3742_v61  ;;  %v12024_v21 = vand.u32 4294901760, %v9626_v30 }
 0x4ec   : > { %v3748_v28 = vsub.f32 %v10414_v43, %v12021_v34  ;;  %v4016_v10 = vsub.f32 %v9624_v13, %v12025_v17  ;;  %v6768_v60 = vadd.f32 %v10419_v25, %v9681_v37  ;;  %v6769_v31 = vadd.f32 %v10427_v4, %v9683_v8 }
 0x4ed   : > { %12666 = vst [vmem:[#allocation189_spill] sm:$0xff] %v10505_v22  ;;  %12667 = vst [vmem:[#allocation190_spill] sm:$0xff] %v10507_v6  ;;  %v10520_v11 = vand.u32 4294901760, %v3150_v49  ;;  %v10523_v15 = vsub.f32 %v3151_v39, %v10507_v6  ;;  %3744 = vmatprep.mubr.f32.mxu1 %v3743_v32  ;;  %v4023_v5 = vsub.f32 %v9626_v30, %v12024_v21  ;;  %v12033_v61 = vand.u32 4294901760, %v10455_v27 }
 0x4ee   : > { %v3749_v34 = vand.u32 4294901760, %v3748_v28  ;;  %v4017_v58 = vand.u32 4294901760, %v4016_v10  ;;  %vm3008_vm6 = vcmp.gt.f32.partialorder %v6768_v60, 0.0  ;;  %v3080_v48 = vmul.f32 0.01, %v6768_v60 }
 0x4ef   : > { %12668 = vst [vmem:[#allocation191_spill] sm:$0xff] %v10520_v11  ;;  %12669 = vst [vmem:[#allocation192_spill] sm:$0xff] %v10523_v15  ;;  %v4024_v37 = vand.u32 4294901760, %v4023_v5  ;;  %vm3009_vm7 = vcmp.gt.f32.partialorder %v6769_v31, 0.0  ;;  %v3081_v25 = vmul.f32 0.01, %v6769_v31  ;;  %v3757_v8 = vsub.f32 %v10455_v27, %v12033_v61 }
 0x4f0   : > { %3750 = vmatmul.mubr.f32.gmra.mrb[52].mxu1 %v3749_v34  ;;  %v3152_v4 = vsel %vm3008_vm6, %v6768_v60, %v3080_v48  ;;  %v12031_v39 = vand.u32 4294901760, %v10443_v14  ;;  %v12030_v32 = vand.u32 4294901760, %v10493_v24  ;;  %v12032_v21 = vand.u32 4294901760, %v10474_v41 }
 0x4f1   : > { %v6466_v17 = vpack.c.bf16 %v4024_v37, %v4017_v58  ;;  %v10535_v28 = vand.u32 4294901760, %v3152_v4  ;;  %v3153_v10 = vsel %vm3009_vm7, %v6769_v31, %v3081_v25  ;;  %v3758_v43 = vand.u32 4294901760, %v3757_v8 }
 0x4f2   : > { %v10537_v5 = vand.u32 4294901760, %v3153_v10  ;;  %v3763_v33 = vsub.f32 %v10443_v14, %v12031_v39  ;;  %v3772_v48 = vsub.f32 %v10493_v24, %v12030_v32  ;;  %v3778_v34 = vsub.f32 %v10474_v41, %v12032_v21 }
 0x4f3   : > { %12670 = vst [vmem:[#allocation193_spill] sm:$0xff] %v10535_v28  ;;  %v10549_v58 = vsub.f32 %v3150_v49, %v10520_v11  ;;  %6467 = vmatpush1.bf16.msra.mxu1 %v6466_v17  ;;  %3759 = vmatprep.mubr.f32.mxu1 %v3758_v43  ;;  %v12034_v60 = vand.u32 4294901760, %v9632_v9  ;;  %v12037_v31 = vand.u32 4294901760, %v9634_v42  ;;  %v12038_v37 = vand.u32 4294901760, %v10505_v22 }
 0x4f4   : > { %12671 = vst [vmem:[#allocation194_spill] sm:$0xff] %v10537_v5  ;;  %v10555_v25 = vsub.f32 %v3152_v4, %v10535_v28  ;;  %v10558_v8 = vsub.f32 %v3153_v10, %v10537_v5  ;;  %v3764_v32 = vand.u32 4294901760, %v3763_v33  ;;  %v3773_v39 = vand.u32 4294901760, %v3772_v48  ;;  %6468 = vmatprep.subr.bf16.mxu1 %v12470_v56 }
 0x4f5   : > { %12672 = vst [vmem:[#allocation195_spill] sm:$0xff] %v10549_v58  ;;  %v4030_v43 = vsub.f32 %v9632_v9, %v12034_v60  ;;  %v4037_v49 = vsub.f32 %v9634_v42, %v12037_v31  ;;  %v3787_v17 = vsub.f32 %v10505_v22, %v12038_v37  ;;  %v12039_v4 = vand.u32 4294901760, %v10496_v36 }
 0x4f6   : > { %12673 = vst [vmem:[#allocation196_spill] sm:$0xff] %v10555_v25  ;;  %12674 = vst [vmem:[#allocation197_spill] sm:$0xff] %v10558_v8  ;;  %3765 = vmatmul.mubr.f32.gmra.mrb[54].mxu1 %v3764_v32  ;;  %v3779_v10 = vand.u32 4294901760, %v3778_v34  ;;  %v12040_v33 = vand.u32 4294901760, %v10523_v15  ;;  %v12043_v48 = vand.u32 4294901760, %v9638_v53  ;;  %v12048_v21 = vand.u32 4294901760, %v9640_v35 }
 0x4f7   : > { %3774 = vmatprep.mubr.f32.mxu1 %v3773_v39  ;;  %v4031_v61 = vand.u32 4294901760, %v4030_v43  ;;  %v4038_v60 = vand.u32 4294901760, %v4037_v49  ;;  %v3788_v41 = vand.u32 4294901760, %v3787_v17  ;;  %v3793_v37 = vsub.f32 %v10496_v36, %v12039_v4 }
 0x4f8   : > { %v3802_v32 = vsub.f32 %v10523_v15, %v12040_v33  ;;  %v4044_v34 = vsub.f32 %v9638_v53, %v12043_v48  ;;  %v4051_v39 = vsub.f32 %v9640_v35, %v12048_v21  ;;  %v12047_v49 = vand.u32 4294901760, %v10558_v8  ;;  %v12686_v21 = vld [vmem:[#allocation47_spill] sm:$0xff] }
 0x4f9   : > { %v6469_v43 = vpack.c.bf16 %v4038_v60, %v4031_v61  ;;  %v3794_v15 = vand.u32 4294901760, %v3793_v37  ;;  %v12675_v48 = vand.u32 4294901760, %v10549_v58  ;;  %v12046_v60 = vand.u32 4294901760, %v10555_v25 }
 0x4fa   : > { %3780 = vmatmul.mubr.f32.gmra.mrb[56].mxu1 %v3779_v10  ;;  %v4045_v17 = vand.u32 4294901760, %v4044_v34  ;;  %v4052_v31 = vand.u32 4294901760, %v4051_v39  ;;  %v3803_v4 = vand.u32 4294901760, %v3802_v32  ;;  %v3817_v33 = vsub.f32 %v10558_v8, %v12047_v49  ;;  %v12684_v49 = vld [vmem:[#allocation49_spill] sm:$0xff]  ;;  %v12690_v32 = vld [vmem:[#allocation50_spill] sm:$0xff] }
 0x4fb   : > { %6470 = vmatpush1.bf16.msra.mxu1 %v6469_v43  ;;  %3789 = vmatprep.mubr.f32.mxu1 %v3788_v41  ;;  %v3808_v36 = vsub.f32 %v10549_v58, %v12675_v48  ;;  %v3823_v48 = vsub.f32 %v10555_v25, %v12046_v60  ;;  %v6481_v34 = vpack.c.bf16 %v12510_v44, %v12509_v52  ;;  %v12676_v43 = vld [vmem:[#allocation43_spill] sm:$0xff]  ;;  %v12683_v60 = vld [vmem:[#allocation44_spill] sm:$0xff] }
 0x4fc   : > { %6471 = vmatprep.subr.bf16.mxu1 %v12470_v56  ;;  %v6472_v61 = vpack.c.bf16 %v4052_v31, %v4045_v17  ;;  %v3818_v10 = vand.u32 4294901760, %v3817_v33  ;;  %v6478_v33 = vpack.c.bf16 %v9369_v19, %v9358_v2  ;;  %v12677_v17 = vld [vmem:[#allocation38_spill] sm:$0xff]  ;;  %v12688_v31 = vld [vmem:[#allocation59_spill] sm:$0xff] }
 0x4fd   : > { %v3809_v37 = vand.u32 4294901760, %v3808_v36  ;;  %v12687_v36 = vld [vmem:[#allocation46_spill] sm:$0xff] }
 0x4fe   : > { %3795 = vmatmul.mubr.f32.gmra.mrb[58].mxu1 %v3794_v15  ;;  %v3824_v15 = vand.u32 4294901760, %v3823_v48  ;;  %v12680_v48 = vld [vmem:[#allocation36_spill] sm:$0xff] }
 0x4ff   : > { %3804 = vmatprep.mubr.f32.mxu1 %v3803_v4  ;;  %6473 = vmatpush1.bf16.msra.mxu1 %v6472_v61  ;;  %v6475_v4 = vpack.c.bf16 %v9356_v18, %v9354_v16  ;;  %v12678_v61 = vld [vmem:[#allocation40_spill] sm:$0xff] }
 0x500   : > { %6474 = vmatprep.subr.bf16.mxu1 %v12470_v56 }
 0x502   : > { %3810 = vmatmul.mubr.f32.gmra.mrb[60].mxu1 %v3809_v37  ;;  %v12679_v37 = vld [vmem:[#allocation28_spill] sm:$0xff] }
 0x503   : > { %3819 = vmatprep.mubr.f32.mxu1 %v3818_v10  ;;  %v6484_v10 = vpack.c.bf16 %v12678_v61, %v12677_v17 }
 0x506   : > { %3825 = vmatmul.mubr.f32.gmra.mrb[62].mxu1 %v3824_v15  ;;  %v12681_v15 = vld [vmem:[#allocation42_spill] sm:$0xff] }
 0x507   : > { %4055 = vmatprep.mubr.f32.mxu1 %v9773_v1  ;;  %v12780_v1 = vld [vmem:[#allocation87_spill] sm:$0xff] }
 0x50a   : > { %4057 = vmatmul.mubr.f32.vlgmr.msra.gmra.mrb[64].mxu1 %v9768_v7  ;;  %v12779_v7 = vld [vmem:[#allocation82_spill] sm:$0xff] }
 0x50b   : > { %4062 = vmatprep.mubr.f32.mxu1 %v9798_v57  ;;  %6476 = vmatpush1.bf16.msra.mxu1 %v6475_v4  ;;  %v12682_v4 = vld [vmem:[#allocation22_spill] sm:$0xff]  ;;  %v12707_v57 = vld [vmem:[#allocation97_spill] sm:$0xff] }
 0x50c   : > { %6477 = vmatprep.subr.bf16.mxu1 %v12470_v56 }
 0x50e   : > { %4064 = vmatmul.mubr.f32.gmra.mrb[66].mxu1 %v9795_v50 }
 0x50f   : > { %4069 = vmatprep.mubr.f32.mxu1 %v9817_v59  ;;  %6479 = vmatpush1.bf16.msra.mxu1 %v6478_v33  ;;  %v6487_v33 = vpack.c.bf16 %v12682_v4, %v12681_v15  ;;  %v12701_v59 = vld [vmem:[#allocation81_spill] sm:$0xff] }
 0x510   : > { %6480 = vmatprep.subr.bf16.mxu1 %v12470_v56 }
 0x512   : > { %4071 = vmatmul.mubr.f32.gmra.mrb[68].mxu1 %v9814_v54  ;;  %v12698_v54 = vld [vmem:[#allocation73_spill] sm:$0xff] }
 0x513   : > { %4076 = vmatprep.mubr.f32.mxu1 %v12676_v43  ;;  %6482 = vmatpush1.bf16.msra.mxu1 %v6481_v34  ;;  %v12685_v34 = vld [vmem:[#allocation23_spill] sm:$0xff]  ;;  %v12695_v43 = vld [vmem:[#allocation64_spill] sm:$0xff] }
 0x514   : > { %6483 = vmatprep.subr.bf16.mxu1 %v12470_v56  ;;  %v6490_v39 = vpack.c.bf16 %v12686_v21, %v12685_v34 }
 0x516   : > { %4078 = vmatmul.mubr.f32.gmra.mrb[70].mxu1 %v12679_v37 }
 0x517   : > { %4083 = vmatprep.mubr.f32.mxu1 %v12680_v48  ;;  %6485 = vmatpush1.bf16.msra.mxu1 %v6484_v10  ;;  %v12689_v10 = vld [vmem:[#allocation48_spill] sm:$0xff]  ;;  %v12691_v48 = vld [vmem:[#allocation54_spill] sm:$0xff] }
 0x518   : > { %6486 = vmatprep.subr.bf16.mxu1 %v12470_v56  ;;  %v6493_v41 = vpack.c.bf16 %v12690_v32, %v12689_v10 }
 0x51a   : > { %4085 = vmatmul.mubr.f32.gmra.mrb[0].mxu1 %v12683_v60  ;;  %v12692_v60 = vld [vmem:[#allocation67_spill] sm:$0xff] }
 0x51b   : > { %4090 = vmatprep.mubr.f32.mxu1 %v12684_v49  ;;  %6488 = vmatpush1.bf16.msra.mxu1 %v6487_v33  ;;  %v12693_v33 = vld [vmem:[#allocation52_spill] sm:$0xff]  ;;  %v12694_v49 = vld [vmem:[#allocation55_spill] sm:$0xff] }
 0x51c   : > { %6489 = vmatprep.subr.bf16.mxu1 %v12470_v56  ;;  %v6496_v37 = vpack.c.bf16 %v12694_v49, %v12693_v33 }
 0x51e   : > { %4092 = vmatmul.mubr.f32.gmra.mrb[2].mxu1 %v12687_v36 }
 0x51f   : > { %4097 = vmatprep.mubr.f32.mxu1 %v12688_v31  ;;  %6491 = vmatpush1.bf16.msra.mxu1 %v6490_v39  ;;  %v12696_v39 = vld [vmem:[#allocation56_spill] sm:$0xff] }
 0x520   : > { %6492 = vmatprep.subr.bf16.mxu1 %v12470_v56  ;;  %v12697_v31 = vld [vmem:[#allocation60_spill] sm:$0xff] }
 0x521   : > { %v6499_v36 = vpack.c.bf16 %v12697_v31, %v12696_v39 }
 0x522   : > { %4099 = vmatmul.mubr.f32.gmra.mrb[4].mxu1 %v12691_v48 }
 0x523   : > { %4104 = vmatprep.mubr.f32.mxu1 %v12692_v60  ;;  %6494 = vmatpush1.bf16.msra.mxu1 %v6493_v41  ;;  %v12699_v41 = vld [vmem:[#allocation63_spill] sm:$0xff]  ;;  %v12700_v60 = vld [vmem:[#allocation65_spill] sm:$0xff] }
 0x524   : > { %6495 = vmatprep.subr.bf16.mxu1 %v12470_v56  ;;  %v6502_v48 = vpack.c.bf16 %v12700_v60, %v12699_v41 }
 0x526   : > { %4106 = vmatmul.mubr.f32.gmra.mrb[6].mxu1 %v12695_v43 }
 0x527   : > { %4111 = vmatprep.mubr.f32.mxu1 %v9922_v20  ;;  %6497 = vmatpush1.bf16.msra.mxu1 %v6496_v37  ;;  %v12702_v37 = vld [vmem:[#allocation66_spill] sm:$0xff]  ;;  %v12703_v20 = vld [vmem:[#allocation68_spill] sm:$0xff] }
 0x528   : > { %6498 = vmatprep.subr.bf16.mxu1 %v12470_v56  ;;  %v6505_v43 = vpack.c.bf16 %v12703_v20, %v12702_v37 }
 0x52a   : > { %4113 = vmatmul.mubr.f32.gmra.mrb[8].mxu1 %v12698_v54  ;;  %v12705_v54 = vld [vmem:[#allocation89_spill] sm:$0xff] }
 0x52b   : > { %4118 = vmatprep.mubr.f32.mxu1 %v9937_v62  ;;  %6500 = vmatpush1.bf16.msra.mxu1 %v6499_v36  ;;  %v12706_v62 = vld [vmem:[#allocation101_spill] sm:$0xff] }
 0x52c   : > { %6501 = vmatprep.subr.bf16.mxu1 %v12470_v56 }
 0x52e   : > { %4120 = vmatmul.mubr.f32.gmra.mrb[10].mxu1 %v12701_v59 }
 0x52f   : > { %4125 = vmatprep.mubr.f32.mxu1 %v9964_v47  ;;  %6503 = vmatpush1.bf16.msra.mxu1 %v6502_v48  ;;  %v12709_v47 = vpack.c.bf16 %v9507_v0, %v9498_v55  ;;  %v12794_v0 = vld [vmem:[#allocation93_spill] sm:$0xff] }
 0x530   : > { %6504 = vmatprep.subr.bf16.mxu1 %v12470_v56  ;;  %v12807_v55 = vld [vmem:[#allocation133_spill] sm:$0xff] }
 0x531   : > { %v10663_v50 = vpop.f32.mrb[72].mxu0 }
 0x532   : > { %12704 = vst [vmem:[#allocation38_spill] sm:$0xff] %v10663_v50  ;;  %4127 = vmatmul.mubr.f32.gmra.mrb[12].mxu1 %v12705_v54  ;;  %v3303_v36 = vpop.f32.mrb[73].mxu0  ;;  %v12733_v54 = vld [vmem:[#allocation139_spill] sm:$0xff] }
 0x533   : > { %4132 = vmatprep.mubr.f32.mxu1 %v12706_v62  ;;  %6506 = vmatpush1.bf16.msra.mxu1 %v6505_v43  ;;  %v12710_v36 = vld [vmem:[#allocation108_spill] sm:$0xff]  ;;  %v12711_v43 = vpack.c.bf16 %v9622_v38, %v9620_v46  ;;  %v12731_v62 = vld [vmem:[#allocation134_spill] sm:$0xff]  ;;  %v12792_v46 = vld [vmem:[#allocation109_spill] sm:$0xff] }
 0x534   : > { %6507 = vmatprep.subr.bf16.mxu1 %v12470_v56  ;;  %v12791_v38 = vld [vmem:[#allocation90_spill] sm:$0xff] }
 0x536   : > { %4134 = vmatmul.mubr.f32.gmra.mrb[14].mxu1 %v12707_v57  ;;  %v10669_v59 = vpop.f32.mrb[74].mxu0  ;;  %v12728_v57 = vld [vmem:[#allocation132_spill] sm:$0xff] }
 0x537   : > { %12708 = vst [vmem:[#allocation40_spill] sm:$0xff] %v10669_v59  ;;  %4139 = vmatprep.mubr.f32.mxu1 %v10005_v45  ;;  %v3318_v48 = vpop.f32.mrb[75].mxu0  ;;  %6509 = vmatpush1.bf16.msra.mxu1 %v12709_v47  ;;  %v12714_v45 = vld [vmem:[#allocation112_spill] sm:$0xff]  ;;  %v12715_v47 = vpack.c.bf16 %v9626_v30, %v9624_v13  ;;  %v12789_v13 = vld [vmem:[#allocation105_spill] sm:$0xff] }
 0x538   : > { %6510 = vmatprep.subr.bf16.mxu1 %v12470_v56  ;;  %v12713_v48 = vld [vmem:[#allocation106_spill] sm:$0xff]  ;;  %v12788_v30 = vld [vmem:[#allocation88_spill] sm:$0xff] }
 0x53a   : > { %4141 = vmatmul.mubr.f32.gmra.mrb[16].mxu1 %v10002_v12 }
 0x53b   : > { %4146 = vmatprep.mubr.f32.mxu1 %v12710_v36  ;;  %6512 = vmatpush1.bf16.msra.mxu1 %v12711_v43  ;;  %v12716_v36 = vld [vmem:[#allocation110_spill] sm:$0xff]  ;;  %v12718_v43 = vld [vmem:[#allocation117_spill] sm:$0xff] }
 0x53c   : > { %v10681_v50 = vpop.f32.mrb[76].mxu0  ;;  %6513 = vmatprep.subr.bf16.mxu1 %v12470_v56 }
 0x53d   : > { %12712 = vst [vmem:[#allocation42_spill] sm:$0xff] %v10681_v50  ;;  %v3333_v59 = vpop.f32.mrb[77].mxu0 }
 0x53e   : > { %4148 = vmatmul.mubr.f32.gmra.mrb[18].mxu1 %v12713_v48  ;;  %v12719_v59 = vpack.c.bf16 %v9634_v42, %v9632_v9  ;;  %v12721_v48 = vld [vmem:[#allocation119_spill] sm:$0xff]  ;;  %v12785_v42 = vld [vmem:[#allocation86_spill] sm:$0xff]  ;;  %v12786_v9 = vld [vmem:[#allocation32_spill] sm:$0xff] }
 0x53f   : > { %4153 = vmatprep.mubr.f32.mxu1 %v12714_v45  ;;  %6515 = vmatpush1.bf16.msra.mxu1 %v12715_v47  ;;  %v12720_v45 = vld [vmem:[#allocation115_spill] sm:$0xff]  ;;  %v12722_v47 = vpack.c.bf16 %v9640_v35, %v9638_v53  ;;  %v12782_v35 = vld [vmem:[#allocation85_spill] sm:$0xff] }
 0x540   : > { %6516 = vmatprep.subr.bf16.mxu1 %v12470_v56  ;;  %v12783_v53 = vld [vmem:[#allocation95_spill] sm:$0xff] }
 0x542   : > { %4155 = vmatmul.mubr.f32.gmra.mrb[20].mxu1 %v12716_v36  ;;  %v10691_v12 = vpop.f32.mrb[78].mxu0  ;;  %v12726_v36 = vld [vmem:[#allocation127_spill] sm:$0xff] }
 0x543   : > { %12717 = vst [vmem:[#allocation22_spill] sm:$0xff] %v10691_v12  ;;  %4160 = vmatprep.mubr.f32.mxu1 %v12718_v43  ;;  %v3348_v50 = vpop.f32.mrb[79].mxu0  ;;  %6518 = vmatpush1.bf16.msra.mxu1 %v12719_v59  ;;  %v12723_v12 = vld [vmem:[#allocation118_spill] sm:$0xff]  ;;  %v12724_v43 = vld [vmem:[#allocation124_spill] sm:$0xff] }
 0x544   : > { %6519 = vmatprep.subr.bf16.mxu1 %v12470_v56  ;;  %v12725_v50 = vld [vmem:[#allocation122_spill] sm:$0xff] }
 0x545   : > { %v12727_v59 = vld [vmem:[#allocation126_spill] sm:$0xff] }
 0x546   : > { %4162 = vmatmul.mubr.f32.gmra.mrb[22].mxu1 %v12720_v45  ;;  %v12729_v45 = vld [vmem:[#allocation130_spill] sm:$0xff] }
 0x547   : > { %4167 = vmatprep.mubr.f32.mxu1 %v12721_v48  ;;  %6521 = vmatpush1.bf16.msra.mxu1 %v12722_v47  ;;  %v12730_v48 = vld [vmem:[#allocation136_spill] sm:$0xff]  ;;  %v12732_v47 = vld [vmem:[#allocation141_spill] sm:$0xff] }
 0x548   : > { %6522 = vmatprep.subr.bf16.mxu1 %v12470_v56 }
 0x54a   : > { %4169 = vmatmul.mubr.f32.gmra.mrb[24].mxu1 %v12723_v12  ;;  %v12734_v12 = vld [vmem:[#allocation143_spill] sm:$0xff] }
 0x54b   : > { %4174 = vmatprep.mubr.f32.mxu1 %v12724_v43  ;;  %v12735_v43 = vld [vmem:[#allocation142_spill] sm:$0xff] }
 0x54e   : > { %4176 = vmatmul.mubr.f32.gmra.mrb[26].mxu1 %v12725_v50  ;;  %v12736_v50 = vld [vmem:[#allocation148_spill] sm:$0xff] }
 0x54f   : > { %4181 = vmatprep.mubr.f32.mxu1 %v12726_v36  ;;  %v12737_v36 = vld [vmem:[#allocation146_spill] sm:$0xff] }
 0x552   : > { %4183 = vmatmul.mubr.f32.gmra.mrb[28].mxu1 %v12727_v59  ;;  %v12738_v59 = vld [vmem:[#allocation151_spill] sm:$0xff] }
 0x553   : > { %4188 = vmatprep.mubr.f32.mxu1 %v12728_v57  ;;  %v12739_v57 = vld [vmem:[#allocation150_spill] sm:$0xff] }
 0x556   : > { %4190 = vmatmul.mubr.f32.gmra.mrb[30].mxu1 %v12729_v45  ;;  %v12740_v45 = vld [vmem:[#allocation156_spill] sm:$0xff] }
 0x557   : > { %4195 = vmatprep.mubr.f32.mxu1 %v12730_v48  ;;  %v12741_v48 = vld [vmem:[#allocation154_spill] sm:$0xff] }
 0x55a   : > { %4197 = vmatmul.mubr.f32.gmra.mrb[32].mxu1 %v12731_v62  ;;  %v12742_v62 = vld [vmem:[#allocation159_spill] sm:$0xff] }
 0x55b   : > { %4202 = vmatprep.mubr.f32.mxu1 %v12732_v47  ;;  %v12743_v47 = vld [vmem:[#allocation158_spill] sm:$0xff] }
 0x55e   : > { %4204 = vmatmul.mubr.f32.gmra.mrb[34].mxu1 %v12733_v54  ;;  %v12744_v54 = vld [vmem:[#allocation163_spill] sm:$0xff] }
 0x55f   : > { %4209 = vmatprep.mubr.f32.mxu1 %v12734_v12  ;;  %v12745_v12 = vld [vmem:[#allocation162_spill] sm:$0xff] }
 0x562   : > { %4211 = vmatmul.mubr.f32.gmra.mrb[36].mxu1 %v12735_v43  ;;  %v12746_v43 = vld [vmem:[#allocation169_spill] sm:$0xff] }
 0x563   : > { %4216 = vmatprep.mubr.f32.mxu1 %v12736_v50  ;;  %v12747_v50 = vld [vmem:[#allocation167_spill] sm:$0xff] }
 0x566   : > { %4218 = vmatmul.mubr.f32.gmra.mrb[38].mxu1 %v12737_v36  ;;  %v12748_v36 = vld [vmem:[#allocation171_spill] sm:$0xff] }
 0x567   : > { %4223 = vmatprep.mubr.f32.mxu1 %v12738_v59  ;;  %v12749_v59 = vld [vmem:[#allocation170_spill] sm:$0xff] }
 0x56a   : > { %4225 = vmatmul.mubr.f32.gmra.mrb[40].mxu1 %v12739_v57  ;;  %v12772_v57 = vld [vmem:[#allocation74_spill] sm:$0xff] }
 0x56b   : > { %4230 = vmatprep.mubr.f32.mxu1 %v12740_v45  ;;  %v12750_v45 = vld [vmem:[#allocation173_spill] sm:$0xff] }
 0x56e   : > { %4232 = vmatmul.mubr.f32.gmra.mrb[42].mxu1 %v12741_v48  ;;  %v12771_v48 = vld [vmem:[#allocation62_spill] sm:$0xff] }
 0x56f   : > { %4237 = vmatprep.mubr.f32.mxu1 %v12742_v62  ;;  %v12770_v62 = vld [vmem:[#allocation76_spill] sm:$0xff] }
 0x572   : > { %4239 = vmatmul.mubr.f32.gmra.mrb[44].mxu1 %v12743_v47  ;;  %v12769_v47 = vld [vmem:[#allocation69_spill] sm:$0xff] }
 0x573   : > { %4244 = vmatprep.mubr.f32.mxu1 %v12744_v54  ;;  %v12751_v54 = vld [vmem:[#allocation181_spill] sm:$0xff] }
 0x576   : > { %4246 = vmatmul.mubr.f32.gmra.mrb[46].mxu1 %v12745_v12  ;;  %v12768_v12 = vld [vmem:[#allocation53_spill] sm:$0xff] }
 0x577   : > { %4251 = vmatprep.mubr.f32.mxu1 %v12746_v43  ;;  %v12767_v43 = vld [vmem:[#allocation72_spill] sm:$0xff] }
 0x57a   : > { %4253 = vmatmul.mubr.f32.gmra.mrb[48].mxu1 %v12747_v50  ;;  %v12766_v50 = vld [vmem:[#allocation57_spill] sm:$0xff] }
 0x57b   : > { %4258 = vmatprep.mubr.f32.mxu1 %v12748_v36  ;;  %v12765_v36 = vld [vmem:[#allocation51_spill] sm:$0xff] }
 0x57e   : > { %4260 = vmatmul.mubr.f32.gmra.mrb[50].mxu1 %v12749_v59  ;;  %v12764_v59 = vld [vmem:[#allocation58_spill] sm:$0xff] }
 0x57f   : > { %4265 = vmatprep.mubr.f32.mxu1 %v10405_v29  ;;  %v12763_v29 = vld [vmem:[#allocation61_spill] sm:$0xff] }
 0x582   : > { %4267 = vmatmul.mubr.f32.gmra.mrb[52].mxu1 %v12750_v45  ;;  %v12752_v45 = vld [vmem:[#allocation19_spill] sm:$0xff] }
 0x583   : > { %4272 = vmatprep.mubr.f32.mxu1 %v10434_v40  ;;  %v12753_v40 = vld [vmem:[#allocation18_spill] sm:$0xff] }
 0x586   : > { %4274 = vmatmul.mubr.f32.gmra.mrb[54].mxu1 %v10432_v26  ;;  %v12754_v26 = vld [vmem:[#allocation39_spill] sm:$0xff] }
 0x587   : > { %4279 = vmatprep.mubr.f32.mxu1 %v10465_v51  ;;  %v12755_v51 = vld [vmem:[#allocation13_spill] sm:$0xff] }
 0x58a   : > { %4281 = vmatmul.mubr.f32.gmra.mrb[56].mxu1 %v12751_v54  ;;  %v12762_v54 = vld [vmem:[#allocation35_spill] sm:$0xff] }
 0x58b   : > { %4286 = vmatprep.mubr.f32.mxu1 %v10487_v23  ;;  %v12756_v23 = vld [vmem:[#allocation21_spill] sm:$0xff] }
 0x58e   : > { %4288 = vmatmul.mubr.f32.gmra.mrb[58].mxu1 %v10485_v3  ;;  %v12757_v3 = vld [vmem:[#allocation27_spill] sm:$0xff] }
 0x58f   : > { %4293 = vmatprep.mubr.f32.mxu1 %v10507_v6  ;;  %v12758_v6 = vld [vmem:[#allocation29_spill] sm:$0xff] }
 0x592   : > { %4295 = vmatmul.mubr.f32.gmra.mrb[60].mxu1 %v10520_v11  ;;  %v12761_v11 = vld [vmem:[#allocation45_spill] sm:$0xff] }
 0x593   : > { %4300 = vmatprep.mubr.f32.mxu1 %v10537_v5  ;;  %v12759_v5 = vld [vmem:[#allocation41_spill] sm:$0xff] }
 0x596   : > { %4302 = vmatmul.mubr.f32.gmra.mrb[62].mxu1 %v10535_v28  ;;  %v12760_v28 = vld [vmem:[#allocation33_spill] sm:$0xff] }
 0x597   : > { %4437 = vmatprep.mubr.f32.mxu1 %v12752_v45 }
 0x59a   : > { %4440 = vmatmul.mubr.f32.vlgmr.msra.gmra.mrb[64].mxu1 %v12753_v40 }
 0x59b   : > { %4446 = vmatprep.mubr.f32.mxu1 %v12754_v26  ;;  %6524 = vmatpush1.bf16.msra.mxu1 %v12755_v51  ;;  %v12777_v51 = vld [vmem:[#allocation79_spill] sm:$0xff] }
 0x59c   : > { %6525 = vmatprep.subr.bf16.mxu1 %v12470_v56 }
 0x59e   : > { %4449 = vmatmul.mubr.f32.gmra.mrb[66].mxu1 %v12756_v23 }
 0x59f   : > { %4455 = vmatprep.mubr.f32.mxu1 %v12757_v3  ;;  %6527 = vmatpush1.bf16.msra.mxu1 %v12758_v6  ;;  %v12776_v6 = vld [vmem:[#allocation80_spill] sm:$0xff] }
 0x5a0   : > { %6528 = vmatprep.subr.bf16.mxu1 %v12470_v56 }
 0x5a2   : > { %4458 = vmatmul.mubr.f32.gmra.mrb[68].mxu1 %v12759_v5 }
 0x5a3   : > { %4464 = vmatprep.mubr.f32.mxu1 %v12760_v28  ;;  %6530 = vmatpush1.bf16.msra.mxu1 %v12761_v11  ;;  %v12774_v11 = vld [vmem:[#allocation71_spill] sm:$0xff] }
 0x5a4   : > { %6531 = vmatprep.subr.bf16.mxu1 %v12470_v56 }
 0x5a6   : > { %4467 = vmatmul.mubr.f32.gmra.mrb[70].mxu1 %v12762_v54 }
 0x5a7   : > { %4473 = vmatprep.mubr.f32.mxu1 %v12763_v29  ;;  %6533 = vmatpush1.bf16.msra.mxu1 %v12764_v59  ;;  %v12773_v59 = vld [vmem:[#allocation78_spill] sm:$0xff] }
 0x5a8   : > { %6534 = vmatprep.subr.bf16.mxu1 %v12470_v56 }
 0x5aa   : > { %4476 = vmatmul.mubr.f32.gmra.mrb[0].mxu1 %v12765_v36 }
 0x5ab   : > { %4482 = vmatprep.mubr.f32.mxu1 %v12766_v50  ;;  %6536 = vmatpush1.bf16.msra.mxu1 %v12767_v43  ;;  %v12775_v43 = vld [vmem:[#allocation84_spill] sm:$0xff] }
 0x5ac   : > { %6537 = vmatprep.subr.bf16.mxu1 %v12470_v56 }
 0x5ae   : > { %4485 = vmatmul.mubr.f32.gmra.mrb[2].mxu1 %v12768_v12 }
 0x5af   : > { %4491 = vmatprep.mubr.f32.mxu1 %v12769_v47  ;;  %6539 = vmatpush1.bf16.msra.mxu1 %v12770_v62  ;;  %v12778_v62 = vld [vmem:[#allocation91_spill] sm:$0xff] }
 0x5b0   : > { %6540 = vmatprep.subr.bf16.mxu1 %v12470_v56 }
 0x5b2   : > { %4494 = vmatmul.mubr.f32.gmra.mrb[4].mxu1 %v12771_v48 }
 0x5b3   : > { %4500 = vmatprep.mubr.f32.mxu1 %v12772_v57  ;;  %6542 = vmatpush1.bf16.msra.mxu1 %v12773_v59  ;;  %v12781_v59 = vld [vmem:[#allocation99_spill] sm:$0xff] }
 0x5b4   : > { %6543 = vmatprep.subr.bf16.mxu1 %v12470_v56 }
 0x5b6   : > { %4503 = vmatmul.mubr.f32.gmra.mrb[6].mxu1 %v12774_v11 }
 0x5b7   : > { %4509 = vmatprep.mubr.f32.mxu1 %v12775_v43  ;;  %6545 = vmatpush1.bf16.msra.mxu1 %v12776_v6  ;;  %v12784_v6 = vld [vmem:[#allocation104_spill] sm:$0xff] }
 0x5b8   : > { %6546 = vmatprep.subr.bf16.mxu1 %v12470_v56 }
 0x5ba   : > { %4512 = vmatmul.mubr.f32.gmra.mrb[8].mxu1 %v12777_v51 }
 0x5bb   : > { %4518 = vmatprep.mubr.f32.mxu1 %v12778_v62  ;;  %6548 = vmatpush1.bf16.msra.mxu1 %v12779_v7  ;;  %v12787_v7 = vld [vmem:[#allocation107_spill] sm:$0xff] }
 0x5bc   : > { %6549 = vmatprep.subr.bf16.mxu1 %v12470_v56 }
 0x5be   : > { %4521 = vmatmul.mubr.f32.gmra.mrb[10].mxu1 %v12780_v1 }
 0x5bf   : > { %4527 = vmatprep.mubr.f32.mxu1 %v12781_v59  ;;  %6551 = vmatpush1.bf16.msra.mxu1 %v12782_v35  ;;  %v12790_v35 = vld [vmem:[#allocation111_spill] sm:$0xff] }
 0x5c0   : > { %6552 = vmatprep.subr.bf16.mxu1 %v12470_v56 }
 0x5c2   : > { %4530 = vmatmul.mubr.f32.gmra.mrb[12].mxu1 %v12783_v53 }
 0x5c3   : > { %4536 = vmatprep.mubr.f32.mxu1 %v12784_v6  ;;  %6554 = vmatpush1.bf16.msra.mxu1 %v12785_v42  ;;  %v12793_v42 = vld [vmem:[#allocation114_spill] sm:$0xff]  ;;  %v12811_v6 = vld [vmem:[#allocation140_spill] sm:$0xff] }
 0x5c4   : > { %6555 = vmatprep.subr.bf16.mxu1 %v12470_v56 }
 0x5c6   : > { %4539 = vmatmul.mubr.f32.gmra.mrb[14].mxu1 %v12786_v9  ;;  %v12797_v9 = vld [vmem:[#allocation94_spill] sm:$0xff] }
 0x5c7   : > { %4545 = vmatprep.mubr.f32.mxu1 %v12787_v7  ;;  %6557 = vmatpush1.bf16.msra.mxu1 %v12788_v30  ;;  %v12795_v7 = vld [vmem:[#allocation113_spill] sm:$0xff]  ;;  %v12796_v30 = vld [vmem:[#allocation120_spill] sm:$0xff] }
 0x5c8   : > { %6558 = vmatprep.subr.bf16.mxu1 %v12470_v56 }
 0x5ca   : > { %4548 = vmatmul.mubr.f32.gmra.mrb[16].mxu1 %v12789_v13  ;;  %v12800_v13 = vld [vmem:[#allocation96_spill] sm:$0xff] }
 0x5cb   : > { %4554 = vmatprep.mubr.f32.mxu1 %v12790_v35  ;;  %6560 = vmatpush1.bf16.msra.mxu1 %v12791_v38  ;;  %v12798_v35 = vld [vmem:[#allocation116_spill] sm:$0xff]  ;;  %v12799_v38 = vld [vmem:[#allocation123_spill] sm:$0xff] }
 0x5cc   : > { %6561 = vmatprep.subr.bf16.mxu1 %v12470_v56 }
 0x5ce   : > { %4557 = vmatmul.mubr.f32.gmra.mrb[18].mxu1 %v12792_v46  ;;  %v12803_v46 = vld [vmem:[#allocation125_spill] sm:$0xff] }
 0x5cf   : > { %4563 = vmatprep.mubr.f32.mxu1 %v12793_v42  ;;  %6563 = vmatpush1.bf16.msra.mxu1 %v12794_v0  ;;  %v12801_v42 = vld [vmem:[#allocation121_spill] sm:$0xff]  ;;  %v12802_v0 = vld [vmem:[#allocation128_spill] sm:$0xff] }
 0x5d0   : > { %6564 = vmatprep.subr.bf16.mxu1 %v12470_v56 }
 0x5d2   : > { %4566 = vmatmul.mubr.f32.gmra.mrb[20].mxu1 %v12795_v7  ;;  %v12804_v7 = vld [vmem:[#allocation131_spill] sm:$0xff] }
 0x5d3   : > { %4572 = vmatprep.mubr.f32.mxu1 %v12796_v30  ;;  %6566 = vmatpush1.bf16.msra.mxu1 %v12797_v9  ;;  %v12805_v30 = vld [vmem:[#allocation129_spill] sm:$0xff]  ;;  %v12806_v9 = vld [vmem:[#allocation135_spill] sm:$0xff] }
 0x5d4   : > { %6567 = vmatprep.subr.bf16.mxu1 %v12470_v56 }
 0x5d6   : > { %4575 = vmatmul.mubr.f32.gmra.mrb[22].mxu1 %v12798_v35  ;;  %v12808_v35 = vld [vmem:[#allocation138_spill] sm:$0xff] }
 0x5d7   : > { %4581 = vmatprep.mubr.f32.mxu1 %v12799_v38  ;;  %6569 = vmatpush1.bf16.msra.mxu1 %v12800_v13  ;;  %v12809_v38 = vld [vmem:[#allocation137_spill] sm:$0xff]  ;;  %v12810_v13 = vld [vmem:[#allocation144_spill] sm:$0xff] }
 0x5d8   : > { %6570 = vmatprep.subr.bf16.mxu1 %v12470_v56 }
 0x5da   : > { %4584 = vmatmul.mubr.f32.gmra.mrb[24].mxu1 %v12801_v42  ;;  %v12812_v42 = vld [vmem:[#allocation147_spill] sm:$0xff] }
 0x5db   : > { %4590 = vmatprep.mubr.f32.mxu1 %v12802_v0  ;;  %v12813_v0 = vld [vmem:[#allocation145_spill] sm:$0xff] }
 0x5de   : > { %4593 = vmatmul.mubr.f32.gmra.mrb[26].mxu1 %v12803_v46  ;;  %v12814_v46 = vld [vmem:[#allocation152_spill] sm:$0xff] }
 0x5df   : > { %4599 = vmatprep.mubr.f32.mxu1 %v12804_v7  ;;  %v12815_v7 = vld [vmem:[#allocation149_spill] sm:$0xff] }
 0x5e2   : > { %4602 = vmatmul.mubr.f32.gmra.mrb[28].mxu1 %v12805_v30  ;;  %v12816_v30 = vld [vmem:[#allocation155_spill] sm:$0xff] }
 0x5e3   : > { %4608 = vmatprep.mubr.f32.mxu1 %v12806_v9  ;;  %v12817_v9 = vld [vmem:[#allocation153_spill] sm:$0xff] }
 0x5e6   : > { %4611 = vmatmul.mubr.f32.gmra.mrb[30].mxu1 %v12807_v55  ;;  %v12818_v55 = vld [vmem:[#allocation160_spill] sm:$0xff] }
 0x5e7   : > { %4617 = vmatprep.mubr.f32.mxu1 %v12808_v35  ;;  %v12819_v35 = vld [vmem:[#allocation157_spill] sm:$0xff] }
 0x5ea   : > { %4620 = vmatmul.mubr.f32.gmra.mrb[32].mxu1 %v12809_v38  ;;  %v12820_v38 = vld [vmem:[#allocation164_spill] sm:$0xff] }
 0x5eb   : > { %4626 = vmatprep.mubr.f32.mxu1 %v12810_v13  ;;  %v12821_v13 = vld [vmem:[#allocation161_spill] sm:$0xff] }
 0x5ee   : > { %4629 = vmatmul.mubr.f32.gmra.mrb[34].mxu1 %v12811_v6  ;;  %v12822_v6 = vld [vmem:[#allocation166_spill] sm:$0xff] }
 0x5ef   : > { %4635 = vmatprep.mubr.f32.mxu1 %v12812_v42  ;;  %v12823_v42 = vld [vmem:[#allocation165_spill] sm:$0xff] }
 0x5f2   : > { %4638 = vmatmul.mubr.f32.gmra.mrb[36].mxu1 %v12813_v0  ;;  %v12824_v0 = vld [vmem:[#allocation172_spill] sm:$0xff] }
 0x5f3   : > { %4644 = vmatprep.mubr.f32.mxu1 %v12814_v46  ;;  %v12825_v46 = vld [vmem:[#allocation168_spill] sm:$0xff] }
 0x5f6   : > { %4647 = vmatmul.mubr.f32.gmra.mrb[38].mxu1 %v12815_v7  ;;  %v12826_v7 = vld [vmem:[#allocation174_spill] sm:$0xff] }
 0x5f7   : > { %4653 = vmatprep.mubr.f32.mxu1 %v12816_v30 }
 0x5fa   : > { %4656 = vmatmul.mubr.f32.gmra.mrb[40].mxu1 %v12817_v9  ;;  %v12827_v9 = vld [vmem:[#allocation179_spill] sm:$0xff] }
 0x5fb   : > { %4662 = vmatprep.mubr.f32.mxu1 %v12818_v55  ;;  %v12828_v55 = vld [vmem:[#allocation176_spill] sm:$0xff] }
 0x5fe   : > { %4665 = vmatmul.mubr.f32.gmra.mrb[42].mxu1 %v12819_v35 }
 0x5ff   : > { %4671 = vmatprep.mubr.f32.mxu1 %v12820_v38 }
 0x602   : > { %4674 = vmatmul.mubr.f32.gmra.mrb[44].mxu1 %v12821_v13 }
 0x603   : > { %4680 = vmatprep.mubr.f32.mxu1 %v12822_v6  ;;  %v12829_v6 = vld [vmem:[#allocation184_spill] sm:$0xff] }
 0x606   : > { %4683 = vmatmul.mubr.f32.gmra.mrb[46].mxu1 %v12823_v42 }
 0x607   : > { %4689 = vmatprep.mubr.f32.mxu1 %v12824_v0  ;;  %v12830_v0 = vld [vmem:[#allocation188_spill] sm:$0xff] }
 0x60a   : > { %4692 = vmatmul.mubr.f32.gmra.mrb[48].mxu1 %v12825_v46  ;;  %v12831_v46 = vld [vmem:[#allocation192_spill] sm:$0xff] }
 0x60b   : > { %4698 = vmatprep.mubr.f32.mxu1 %v12826_v7 }
 0x60e   : > { %4701 = vmatmul.mubr.f32.gmra.mrb[50].mxu1 %v10386_v63 }
 0x60f   : > { %4707 = vmatprep.mubr.f32.mxu1 %v12827_v9 }
 0x612   : > { %4710 = vmatmul.mubr.f32.gmra.mrb[52].mxu1 %v12828_v55 }
 0x613   : > { %4716 = vmatprep.mubr.f32.mxu1 %v10455_v27  ;;  %v12832_v27 = vand.u32 4294901760, %v12752_v45  ;;  %v12839_v45 = vand.u32 4294901760, %v12756_v23  ;;  %v12850_v23 = vand.u32 4294901760, %v12682_v4 }
 0x616   : > { %4719 = vmatmul.mubr.f32.gmra.mrb[54].mxu1 %v10443_v14  ;;  %v12833_v14 = vand.u32 4294901760, %v9354_v16  ;;  %v12840_v16 = vand.u32 4294901760, %v12757_v3  ;;  %v12846_v3 = vand.u32 4294901760, %v12678_v61  ;;  %v12859_v61 = vand.u32 4294901760, %v12771_v48 }
 0x617   : > { %4725 = vmatprep.mubr.f32.mxu1 %v10493_v24  ;;  %v12834_v24 = vand.u32 4294901760, %v9356_v18  ;;  %v12841_v18 = vand.u32 4294901760, %v12509_v52  ;;  %v12847_v52 = vand.u32 4294901760, %v12762_v54  ;;  %v12853_v54 = vand.u32 4294901760, %v12685_v34 }
 0x618   : > { %v12863_v34 = vand.u32 4294901760, %v12774_v11  ;;  %v12869_v11 = vand.u32 4294901760, %v12699_v41  ;;  %v12870_v48 = vand.u32 4294901760, %v12700_v60  ;;  %v12875_v41 = vand.u32 4294901760, %v12783_v53  ;;  %v12876_v60 = vld [vmem:[#allocation104_spill] sm:$0xff]  ;;  %v12886_v53 = vld [vmem:[#allocation98_spill] sm:$0xff] }
 0x61a   : > { %4728 = vmatmul.mubr.f32.gmra.mrb[56].mxu1 %v12829_v6  ;;  %v6571_v6 = vpack.c.bf16 %v12834_v24, %v12833_v14 }
 0x61b   : > { %4734 = vmatprep.mubr.f32.mxu1 %v10505_v22  ;;  %v12835_v22 = vand.u32 4294901760, %v12753_v40  ;;  %v12842_v40 = vand.u32 4294901760, %v12510_v44  ;;  %v12848_v44 = vand.u32 4294901760, %v12763_v29  ;;  %v12854_v29 = vand.u32 4294901760, %v12686_v21 }
 0x61c   : > { %v12860_v21 = vand.u32 4294901760, %v12772_v57  ;;  %v12866_v57 = vand.u32 4294901760, %v12697_v31  ;;  %v12872_v31 = vand.u32 4294901760, %v12781_v59 }
 0x61e   : > { %4737 = vmatmul.mubr.f32.gmra.mrb[58].mxu1 %v12830_v0  ;;  %v12836_v0 = vand.u32 4294901760, %v12754_v26  ;;  %v12845_v26 = vand.u32 4294901760, %v12677_v17 }
 0x61f   : > { %4743 = vmatprep.mubr.f32.mxu1 %v12831_v46 }
 0x620   : > { %v6580_v14 = vpack.c.bf16 %v12846_v3, %v12845_v26 }
 0x622   : > { %4746 = vmatmul.mubr.f32.gmra.mrb[60].mxu1 %v10549_v58  ;;  %v12837_v58 = vand.u32 4294901760, %v9358_v2  ;;  %v12843_v2 = vand.u32 4294901760, %v12759_v5  ;;  %v12855_v5 = vand.u32 4294901760, %v12768_v12  ;;  %v12861_v12 = vand.u32 4294901760, %v12693_v33 }
 0x623   : > { %4752 = vmatprep.mubr.f32.mxu1 %v10558_v8  ;;  %v12838_v8 = vand.u32 4294901760, %v9369_v19  ;;  %v12844_v19 = vand.u32 4294901760, %v12760_v28  ;;  %v6586_v28 = vpack.c.bf16 %v12854_v29, %v12853_v54  ;;  %v12867_v33 = vand.u32 4294901760, %v12777_v51  ;;  %v12898_v29 = vld [vmem:[#allocation109_spill] sm:$0xff] }
 0x624   : > { %v12873_v51 = vand.u32 4294901760, %v12702_v37  ;;  %v12882_v37 = vld [vmem:[#allocation32_spill] sm:$0xff] }
 0x626   : > { %4755 = vmatmul.mubr.f32.gmra.mrb[62].mxu1 %v10555_v25  ;;  %v6574_v25 = vpack.c.bf16 %v12838_v8, %v12837_v58  ;;  %v12856_v58 = vand.u32 4294901760, %v12769_v47  ;;  %v12858_v8 = vand.u32 4294901760, %v12690_v32  ;;  %v12864_v32 = vand.u32 4294901760, %v12775_v43 }
 0x627   : > { %4859 = vmatprep.mubr.f32.mxu1 %v12832_v27  ;;  %v12849_v27 = vand.u32 4294901760, %v12681_v15  ;;  %v12862_v15 = vand.u32 4294901760, %v12694_v49  ;;  %v12868_v49 = vand.u32 4294901760, %v12778_v62  ;;  %v6598_v43 = vpack.c.bf16 %v12870_v48, %v12869_v11  ;;  %v12916_v48 = vld [vmem:[#allocation123_spill] sm:$0xff] }
 0x628   : > { %v12874_v62 = vand.u32 4294901760, %v12703_v20  ;;  %v12877_v47 = vand.u32 4294901760, %v12876_v60  ;;  %v12884_v20 = vld [vmem:[#allocation107_spill] sm:$0xff] }
 0x629   : > { %v6583_v24 = vpack.c.bf16 %v12850_v23, %v12849_v27  ;;  %v6592_v4 = vpack.c.bf16 %v12862_v15, %v12861_v12  ;;  %v12894_v23 = vld [vmem:[#allocation102_spill] sm:$0xff]  ;;  %v12906_v12 = vld [vmem:[#allocation113_spill] sm:$0xff]  ;;  %v12924_v60 = vld [vmem:[#allocation131_spill] sm:$0xff] }
 0x62a   : > { %4863 = vmatmul.mubr.f32.vlgmr.msra.gmra.mrb[64].mxu1 %v12835_v22  ;;  %v12851_v22 = vand.u32 4294901760, %v12765_v36  ;;  %v12907_v15 = vand.u32 4294901760, %v12906_v12  ;;  %v12959_v12 = vld [vmem:[#allocation172_spill] sm:$0xff] }
 0x62b   : > { %4870 = vmatprep.mubr.f32.mxu1 %v12836_v0  ;;  %6572 = vmatpush1.bf16.msra.mxu1 %v6571_v6  ;;  %v6577_v0 = vpack.c.bf16 %v12842_v40, %v12841_v18  ;;  %v12852_v6 = vand.u32 4294901760, %v12766_v50  ;;  %v6601_v50 = vpack.c.bf16 %v12874_v62, %v12873_v51  ;;  %v12883_v40 = vand.u32 4294901760, %v12882_v37  ;;  %v12920_v51 = vld [vmem:[#allocation128_spill] sm:$0xff] }
 0x62c   : > { %6573 = vmatprep.subr.bf16.mxu1 %v12470_v56  ;;  %v12921_v62 = vand.u32 4294901760, %v12920_v51  ;;  %v12982_v51 = vld [vmem:[#allocation197_spill] sm:$0xff] }
 0x62e   : > { %4874 = vmatmul.mubr.f32.gmra.mrb[66].mxu1 %v12839_v45 }
 0x62f   : > { %4881 = vmatprep.mubr.f32.mxu1 %v12840_v16  ;;  %6575 = vmatpush1.bf16.msra.mxu1 %v6574_v25  ;;  %v12857_v25 = vand.u32 4294901760, %v12689_v10  ;;  %v12865_v10 = vand.u32 4294901760, %v12696_v39  ;;  %v12871_v39 = vand.u32 4294901760, %v12780_v1  ;;  %v12878_v1 = vld [vmem:[#allocation70_spill] sm:$0xff]  ;;  %v12880_v16 = vld [vmem:[#allocation75_spill] sm:$0xff] }
 0x630   : > { %6576 = vmatprep.subr.bf16.mxu1 %v12470_v56  ;;  %v12879_v45 = vand.u32 4294901760, %v12878_v1  ;;  %v12881_v59 = vand.u32 4294901760, %v12880_v16  ;;  %v12926_v1 = vld [vmem:[#allocation129_spill] sm:$0xff]  ;;  %v12928_v16 = vld [vmem:[#allocation135_spill] sm:$0xff] }
 0x631   : > { %v6589_v17 = vpack.c.bf16 %v12858_v8, %v12857_v25  ;;  %v6595_v36 = vpack.c.bf16 %v12866_v57, %v12865_v10  ;;  %v12902_v25 = vld [vmem:[#allocation14_spill] sm:$0xff]  ;;  %v12912_v57 = vld [vmem:[#allocation16_spill] sm:$0xff] }
 0x632   : > { %4885 = vmatmul.mubr.f32.gmra.mrb[68].mxu1 %v12843_v2  ;;  %v6604_v18 = vpack.c.bf16 %v12881_v59, %v12879_v45  ;;  %v12887_v2 = vand.u32 4294901760, %v12886_v53  ;;  %v12903_v8 = vand.u32 4294901760, %v12902_v25  ;;  %v12927_v45 = vand.u32 4294901760, %v12926_v1  ;;  %v12988_v1 = vld [vmem:[#allocation20_spill] sm:$0xff] }
 0x633   : > { %4892 = vmatprep.mubr.f32.mxu1 %v12844_v19  ;;  %6578 = vmatpush1.bf16.msra.mxu1 %v6577_v0  ;;  %v12885_v0 = vand.u32 4294901760, %v12884_v20  ;;  %v12888_v19 = vld [vmem:[#allocation100_spill] sm:$0xff]  ;;  %v12929_v59 = vand.u32 4294901760, %v12928_v16  ;;  %v12953_v25 = vand.u32 4294901760, %v12819_v35  ;;  %v12963_v35 = vand.u32 4294901760, %v12826_v7  ;;  %v12991_v16 = vld [vmem:[#allocation25_spill] sm:$0xff] }
 0x634   : > { %6579 = vmatprep.subr.bf16.mxu1 %v12470_v56  ;;  %v12889_v26 = vand.u32 4294901760, %v12888_v19  ;;  %v12973_v7 = vld [vmem:[#allocation184_spill] sm:$0xff] }
 0x636   : > { %4896 = vmatmul.mubr.f32.gmra.mrb[70].mxu1 %v12847_v52  ;;  %v6607_v3 = vpack.c.bf16 %v12889_v26, %v12887_v2  ;;  %v12936_v2 = vld [vmem:[#allocation144_spill] sm:$0xff] }
 0x637   : > { %4903 = vmatprep.mubr.f32.mxu1 %v12848_v44  ;;  %6581 = vmatpush1.bf16.msra.mxu1 %v6580_v14  ;;  %v12890_v14 = vld [vmem:[#allocation105_spill] sm:$0xff]  ;;  %v12892_v44 = vld [vmem:[#allocation111_spill] sm:$0xff]  ;;  %v12937_v19 = vand.u32 4294901760, %v12936_v2  ;;  %v12938_v26 = vld [vmem:[#allocation140_spill] sm:$0xff] }
 0x638   : > { %6582 = vmatprep.subr.bf16.mxu1 %v12470_v56  ;;  %v12891_v52 = vand.u32 4294901760, %v12890_v14  ;;  %v12893_v27 = vand.u32 4294901760, %v12892_v44  ;;  %v12940_v14 = vld [vmem:[#allocation147_spill] sm:$0xff]  ;;  %v12942_v44 = vld [vmem:[#allocation145_spill] sm:$0xff]  ;;  %v12999_v2 = vld [vmem:[#allocation44_spill] sm:$0xff] }
 0x63a   : > { %4907 = vmatmul.mubr.f32.gmra.mrb[0].mxu1 %v12851_v22  ;;  %v12896_v22 = vld [vmem:[#allocation26_spill] sm:$0xff] }
 0x63b   : > { %4914 = vmatprep.mubr.f32.mxu1 %v12852_v6  ;;  %6584 = vmatpush1.bf16.msra.mxu1 %v6583_v24  ;;  %v12895_v24 = vand.u32 4294901760, %v12894_v23  ;;  %v12897_v6 = vand.u32 4294901760, %v12896_v22  ;;  %v12944_v23 = vld [vmem:[#allocation152_spill] sm:$0xff]  ;;  %v12946_v22 = vld [vmem:[#allocation149_spill] sm:$0xff] }
 0x63c   : > { %6585 = vmatprep.subr.bf16.mxu1 %v12470_v56 }
 0x63d   : > { %v6610_v54 = vpack.c.bf16 %v12897_v6, %v12895_v24  ;;  %v12945_v24 = vand.u32 4294901760, %v12944_v23  ;;  %v12947_v6 = vand.u32 4294901760, %v12946_v22  ;;  %v13007_v23 = vld [vmem:[#allocation78_spill] sm:$0xff]  ;;  %v13009_v22 = vld [vmem:[#allocation77_spill] sm:$0xff] }
 0x63e   : > { %4918 = vmatmul.mubr.f32.gmra.mrb[2].mxu1 %v12855_v5  ;;  %v12900_v5 = vld [vmem:[#allocation114_spill] sm:$0xff] }
 0x63f   : > { %4925 = vmatprep.mubr.f32.mxu1 %v12856_v58  ;;  %6587 = vmatpush1.bf16.msra.mxu1 %v6586_v28  ;;  %v12899_v28 = vand.u32 4294901760, %v12898_v29  ;;  %v12901_v58 = vand.u32 4294901760, %v12900_v5  ;;  %v12949_v29 = vld [vmem:[#allocation153_spill] sm:$0xff]  ;;  %v12951_v5 = vld [vmem:[#allocation160_spill] sm:$0xff] }
 0x640   : > { %6588 = vmatprep.subr.bf16.mxu1 %v12470_v56 }
 0x642   : > { %4929 = vmatmul.mubr.f32.gmra.mrb[4].mxu1 %v12859_v61 }
 0x643   : > { %4936 = vmatprep.mubr.f32.mxu1 %v12860_v21  ;;  %6590 = vmatpush1.bf16.msra.mxu1 %v6589_v17  ;;  %v12904_v17 = vld [vmem:[#allocation15_spill] sm:$0xff] }
 0x644   : > { %6591 = vmatprep.subr.bf16.mxu1 %v12470_v56  ;;  %v12905_v61 = vand.u32 4294901760, %v12904_v17  ;;  %v12955_v17 = vand.u32 4294901760, %v12821_v13  ;;  %v12965_v13 = vand.u32 4294901760, %v12827_v9  ;;  %v12977_v9 = vld [vmem:[#allocation188_spill] sm:$0xff] }
 0x646   : > { %4940 = vmatmul.mubr.f32.gmra.mrb[6].mxu1 %v12863_v34  ;;  %v6613_v21 = vpack.c.bf16 %v12905_v61, %v12903_v8  ;;  %v12954_v8 = vand.u32 4294901760, %v12820_v38  ;;  %v12956_v61 = vld [vmem:[#allocation166_spill] sm:$0xff]  ;;  %v12964_v38 = vand.u32 4294901760, %v10386_v63  ;;  %v12975_v63 = vld [vmem:[#allocation189_spill] sm:$0xff] }
 0x647   : > { %4947 = vmatprep.mubr.f32.mxu1 %v12864_v32  ;;  %6593 = vmatpush1.bf16.msra.mxu1 %v6592_v4  ;;  %v12908_v4 = vld [vmem:[#allocation120_spill] sm:$0xff]  ;;  %v12910_v32 = vld [vmem:[#allocation30_spill] sm:$0xff] }
 0x648   : > { %6594 = vmatprep.subr.bf16.mxu1 %v12470_v56  ;;  %v12909_v34 = vand.u32 4294901760, %v12908_v4  ;;  %v12911_v10 = vand.u32 4294901760, %v12910_v32  ;;  %v12961_v4 = vld [vmem:[#allocation168_spill] sm:$0xff]  ;;  %v12966_v32 = vand.u32 4294901760, %v12828_v55  ;;  %v12979_v55 = vand.u32 4294901760, %v12831_v46  ;;  %v12990_v46 = vld [vmem:[#allocation34_spill] sm:$0xff] }
 0x64a   : > { %4951 = vmatmul.mubr.f32.gmra.mrb[8].mxu1 %v12867_v33 }
 0x64b   : > { %4958 = vmatprep.mubr.f32.mxu1 %v12868_v49  ;;  %6596 = vmatpush1.bf16.msra.mxu1 %v6595_v36  ;;  %v12913_v36 = vand.u32 4294901760, %v12912_v57  ;;  %v12914_v49 = vld [vmem:[#allocation116_spill] sm:$0xff] }
 0x64c   : > { %6597 = vmatprep.subr.bf16.mxu1 %v12470_v56  ;;  %v12915_v11 = vand.u32 4294901760, %v12914_v49  ;;  %v12969_v57 = vld [vmem:[#allocation180_spill] sm:$0xff] }
 0x64d   : > { %v6616_v33 = vpack.c.bf16 %v12913_v36, %v12911_v10  ;;  %v12970_v36 = vand.u32 4294901760, %v12969_v57  ;;  %v13032_v57 = vld [vmem:[#allocation115_spill] sm:$0xff] }
 0x64e   : > { %4962 = vmatmul.mubr.f32.gmra.mrb[10].mxu1 %v12871_v39  ;;  %v12918_v39 = vld [vmem:[#allocation121_spill] sm:$0xff] }
 0x64f   : > { %4969 = vmatprep.mubr.f32.mxu1 %v12872_v31  ;;  %6599 = vmatpush1.bf16.msra.mxu1 %v6598_v43  ;;  %v12917_v43 = vand.u32 4294901760, %v12916_v48  ;;  %v12919_v31 = vand.u32 4294901760, %v12918_v39  ;;  %v12976_v48 = vand.u32 4294901760, %v12975_v63  ;;  %v12980_v39 = vld [vmem:[#allocation195_spill] sm:$0xff] }
 0x650   : > { %6600 = vmatprep.subr.bf16.mxu1 %v12470_v56  ;;  %v13038_v63 = vld [vmem:[#allocation127_spill] sm:$0xff] }
 0x652   : > { %4973 = vmatmul.mubr.f32.gmra.mrb[12].mxu1 %v12875_v41 }
 0x653   : > { %4980 = vmatprep.mubr.f32.mxu1 %v12877_v47  ;;  %6602 = vmatpush1.bf16.msra.mxu1 %v6601_v50  ;;  %v12922_v50 = vld [vmem:[#allocation125_spill] sm:$0xff]  ;;  %v12925_v47 = vand.u32 4294901760, %v12924_v60  ;;  %v12986_v60 = vld [vmem:[#allocation31_spill] sm:$0xff] }
 0x654   : > { %6603 = vmatprep.subr.bf16.mxu1 %v12470_v56  ;;  %v12923_v41 = vand.u32 4294901760, %v12922_v50  ;;  %v12984_v50 = vld [vmem:[#allocation196_spill] sm:$0xff] }
 0x656   : > { %4984 = vmatmul.mubr.f32.gmra.mrb[14].mxu1 %v12883_v40  ;;  %v12932_v40 = vld [vmem:[#allocation138_spill] sm:$0xff] }
 0x657   : > { %4991 = vmatprep.mubr.f32.mxu1 %v12885_v0  ;;  %6605 = vmatpush1.bf16.msra.mxu1 %v6604_v18  ;;  %v12930_v18 = vld [vmem:[#allocation133_spill] sm:$0xff]  ;;  %v12933_v20 = vand.u32 4294901760, %v12932_v40 }
 0x658   : > { %6606 = vmatprep.subr.bf16.mxu1 %v12470_v56  ;;  %v12931_v37 = vand.u32 4294901760, %v12930_v18  ;;  %v12934_v0 = vld [vmem:[#allocation137_spill] sm:$0xff]  ;;  %v12993_v18 = vld [vmem:[#allocation24_spill] sm:$0xff] }
 0x659   : > { %v12935_v53 = vand.u32 4294901760, %v12934_v0  ;;  %v12995_v40 = vld [vmem:[#allocation45_spill] sm:$0xff]  ;;  %v12997_v0 = vld [vmem:[#allocation36_spill] sm:$0xff] }
 0x65a   : > { %4995 = vmatmul.mubr.f32.gmra.mrb[16].mxu1 %v12891_v52  ;;  %v12941_v52 = vand.u32 4294901760, %v12940_v14  ;;  %v13003_v14 = vld [vmem:[#allocation59_spill] sm:$0xff] }
 0x65b   : > { %5002 = vmatprep.mubr.f32.mxu1 %v12893_v27  ;;  %6608 = vmatpush1.bf16.msra.mxu1 %v6607_v3  ;;  %v12939_v3 = vand.u32 4294901760, %v12938_v26  ;;  %v12943_v27 = vand.u32 4294901760, %v12942_v44  ;;  %v13001_v26 = vld [vmem:[#allocation72_spill] sm:$0xff]  ;;  %v13005_v44 = vld [vmem:[#allocation54_spill] sm:$0xff] }
 0x65c   : > { %6609 = vmatprep.subr.bf16.mxu1 %v12470_v56 }
 0x65e   : > { %5006 = vmatmul.mubr.f32.gmra.mrb[18].mxu1 %v12899_v28  ;;  %v12950_v28 = vand.u32 4294901760, %v12949_v29  ;;  %v13012_v29 = vld [vmem:[#allocation83_spill] sm:$0xff] }
 0x65f   : > { %5013 = vmatprep.mubr.f32.mxu1 %v12901_v58  ;;  %6611 = vmatpush1.bf16.msra.mxu1 %v6610_v54  ;;  %v12948_v54 = vand.u32 4294901760, %v12816_v30  ;;  %v12952_v58 = vand.u32 4294901760, %v12951_v5  ;;  %v12958_v30 = vand.u32 4294901760, %v12823_v42  ;;  %v12967_v42 = vld [vmem:[#allocation182_spill] sm:$0xff]  ;;  %v13014_v5 = vld [vmem:[#allocation81_spill] sm:$0xff] }
 0x660   : > { %6612 = vmatprep.subr.bf16.mxu1 %v12470_v56  ;;  %v12968_v10 = vand.u32 4294901760, %v12967_v42  ;;  %v13030_v42 = vld [vmem:[#allocation117_spill] sm:$0xff] }
 0x662   : > { %5017 = vmatmul.mubr.f32.gmra.mrb[20].mxu1 %v12907_v15  ;;  %v12960_v15 = vand.u32 4294901760, %v12959_v12  ;;  %v13022_v12 = vld [vmem:[#allocation88_spill] sm:$0xff] }
 0x663   : > { %5024 = vmatprep.mubr.f32.mxu1 %v12909_v34  ;;  %6614 = vmatpush1.bf16.msra.mxu1 %v6613_v21  ;;  %v12957_v21 = vand.u32 4294901760, %v12956_v61  ;;  %v12962_v34 = vand.u32 4294901760, %v12961_v4  ;;  %v13019_v61 = vld [vmem:[#allocation86_spill] sm:$0xff]  ;;  %v13024_v4 = vld [vmem:[#allocation108_spill] sm:$0xff] }
 0x664   : > { %6615 = vmatprep.subr.bf16.mxu1 %v12470_v56 }
 0x666   : > { %5028 = vmatmul.mubr.f32.gmra.mrb[22].mxu1 %v12915_v11  ;;  %v12974_v11 = vand.u32 4294901760, %v12973_v7  ;;  %v13036_v7 = vld [vmem:[#allocation124_spill] sm:$0xff] }
 0x667   : > { %5035 = vmatprep.mubr.f32.mxu1 %v12917_v43  ;;  %6617 = vmatpush1.bf16.msra.mxu1 %v6616_v33  ;;  %v12971_v33 = vld [vmem:[#allocation187_spill] sm:$0xff]  ;;  %v12978_v43 = vand.u32 4294901760, %v12977_v9  ;;  %v13040_v9 = vld [vmem:[#allocation132_spill] sm:$0xff] }
 0x668   : > { %6618 = vmatprep.subr.bf16.mxu1 %v12470_v56  ;;  %v12972_v49 = vand.u32 4294901760, %v12971_v33  ;;  %v13034_v33 = vld [vmem:[#allocation96_spill] sm:$0xff] }
 0x66a   : > { %5039 = vmatmul.mubr.f32.gmra.mrb[24].mxu1 %v12919_v31  ;;  %v12981_v31 = vand.u32 4294901760, %v12980_v39  ;;  %v13044_v39 = vld [vmem:[#allocation141_spill] sm:$0xff] }
 0x66b   : > { %5046 = vmatprep.mubr.f32.mxu1 %v12921_v62  ;;  %v12983_v62 = vand.u32 4294901760, %v12982_v51  ;;  %v13046_v51 = vld [vmem:[#allocation143_spill] sm:$0xff] }
 0x66e   : > { %5050 = vmatmul.mubr.f32.gmra.mrb[26].mxu1 %v12923_v41  ;;  %v12985_v41 = vand.u32 4294901760, %v12984_v50  ;;  %v13048_v50 = vld [vmem:[#allocation148_spill] sm:$0xff] }
 0x66f   : > { %5057 = vmatprep.mubr.f32.mxu1 %v12925_v47  ;;  %v12987_v47 = vld [vmem:[#allocation17_spill] sm:$0xff] }
 0x672   : > { %5061 = vmatmul.mubr.f32.gmra.mrb[28].mxu1 %v12927_v45  ;;  %v12989_v45 = vld [vmem:[#allocation13_spill] sm:$0xff] }
 0x673   : > { %5068 = vmatprep.mubr.f32.mxu1 %v12929_v59  ;;  %v12992_v59 = vld [vmem:[#allocation29_spill] sm:$0xff] }
 0x676   : > { %5072 = vmatmul.mubr.f32.gmra.mrb[30].mxu1 %v12931_v37  ;;  %v12994_v37 = vld [vmem:[#allocation43_spill] sm:$0xff] }
 0x677   : > { %5079 = vmatprep.mubr.f32.mxu1 %v12933_v20  ;;  %v12996_v20 = vld [vmem:[#allocation28_spill] sm:$0xff] }
 0x67a   : > { %5083 = vmatmul.mubr.f32.gmra.mrb[32].mxu1 %v12935_v53  ;;  %v12998_v53 = vld [vmem:[#allocation58_spill] sm:$0xff] }
 0x67b   : > { %5090 = vmatprep.mubr.f32.mxu1 %v12937_v19  ;;  %v13000_v19 = vld [vmem:[#allocation49_spill] sm:$0xff] }
 0x67e   : > { %5094 = vmatmul.mubr.f32.gmra.mrb[34].mxu1 %v12939_v3  ;;  %v13002_v3 = vld [vmem:[#allocation46_spill] sm:$0xff] }
 0x67f   : > { %5101 = vmatprep.mubr.f32.mxu1 %v12941_v52  ;;  %v13004_v52 = vld [vmem:[#allocation76_spill] sm:$0xff] }
 0x682   : > { %5105 = vmatmul.mubr.f32.gmra.mrb[36].mxu1 %v12943_v27  ;;  %v13006_v27 = vld [vmem:[#allocation67_spill] sm:$0xff] }
 0x683   : > { %5112 = vmatprep.mubr.f32.mxu1 %v12945_v24  ;;  %v13008_v24 = vld [vmem:[#allocation64_spill] sm:$0xff] }
 0x686   : > { %5116 = vmatmul.mubr.f32.gmra.mrb[38].mxu1 %v12947_v6  ;;  %v13010_v6 = vld [vmem:[#allocation80_spill] sm:$0xff] }
 0x687   : > { %5123 = vmatprep.mubr.f32.mxu1 %v12948_v54  ;;  %v13011_v54 = vld [vmem:[#allocation73_spill] sm:$0xff] }
 0x68a   : > { %5127 = vmatmul.mubr.f32.gmra.mrb[40].mxu1 %v12950_v28  ;;  %v13013_v28 = vld [vmem:[#allocation82_spill] sm:$0xff] }
 0x68b   : > { %5134 = vmatprep.mubr.f32.mxu1 %v12952_v58  ;;  %v13015_v58 = vld [vmem:[#allocation92_spill] sm:$0xff] }
 0x68e   : > { %5138 = vmatmul.mubr.f32.gmra.mrb[42].mxu1 %v12953_v25  ;;  %v13016_v25 = vld [vmem:[#allocation85_spill] sm:$0xff] }
 0x68f   : > { %5145 = vmatprep.mubr.f32.mxu1 %v12954_v8  ;;  %v13017_v8 = vld [vmem:[#allocation89_spill] sm:$0xff] }
 0x692   : > { %5149 = vmatmul.mubr.f32.gmra.mrb[44].mxu1 %v12955_v17  ;;  %v13018_v17 = vld [vmem:[#allocation101_spill] sm:$0xff] }
 0x693   : > { %5156 = vmatprep.mubr.f32.mxu1 %v12957_v21  ;;  %v13020_v21 = vld [vmem:[#allocation97_spill] sm:$0xff] }
 0x696   : > { %5160 = vmatmul.mubr.f32.gmra.mrb[46].mxu1 %v12958_v30  ;;  %v13021_v30 = vld [vmem:[#allocation103_spill] sm:$0xff] }
 0x697   : > { %5167 = vmatprep.mubr.f32.mxu1 %v12960_v15  ;;  %v13023_v15 = vld [vmem:[#allocation37_spill] sm:$0xff] }
 0x69a   : > { %5171 = vmatmul.mubr.f32.gmra.mrb[48].mxu1 %v12962_v34  ;;  %v13025_v34 = vld [vmem:[#allocation90_spill] sm:$0xff] }
 0x69b   : > { %5178 = vmatprep.mubr.f32.mxu1 %v12963_v35  ;;  %v13026_v35 = vld [vmem:[#allocation106_spill] sm:$0xff] }
 0x69e   : > { %5182 = vmatmul.mubr.f32.gmra.mrb[50].mxu1 %v12964_v38  ;;  %v13027_v38 = vld [vmem:[#allocation112_spill] sm:$0xff] }
 0x69f   : > { %5189 = vmatprep.mubr.f32.mxu1 %v12965_v13  ;;  %v13028_v13 = vld [vmem:[#allocation93_spill] sm:$0xff] }
 0x6a2   : > { %5193 = vmatmul.mubr.f32.gmra.mrb[52].mxu1 %v12966_v32  ;;  %v13029_v32 = vld [vmem:[#allocation110_spill] sm:$0xff] }
 0x6a3   : > { %5200 = vmatprep.mubr.f32.mxu1 %v12968_v10  ;;  %v13031_v10 = vld [vmem:[#allocation94_spill] sm:$0xff] }
 0x6a6   : > { %5204 = vmatmul.mubr.f32.gmra.mrb[54].mxu1 %v12970_v36  ;;  %v13033_v36 = vld [vmem:[#allocation119_spill] sm:$0xff] }
 0x6a7   : > { %5211 = vmatprep.mubr.f32.mxu1 %v12972_v49  ;;  %v13035_v49 = vld [vmem:[#allocation118_spill] sm:$0xff] }
 0x6aa   : > { %5215 = vmatmul.mubr.f32.gmra.mrb[56].mxu1 %v12974_v11  ;;  %v13037_v11 = vld [vmem:[#allocation122_spill] sm:$0xff] }
 0x6ab   : > { %5222 = vmatprep.mubr.f32.mxu1 %v12976_v48  ;;  %v13039_v48 = vld [vmem:[#allocation126_spill] sm:$0xff] }
 0x6ae   : > { %5226 = vmatmul.mubr.f32.gmra.mrb[58].mxu1 %v12978_v43  ;;  %v13041_v43 = vld [vmem:[#allocation130_spill] sm:$0xff] }
 0x6af   : > { %5233 = vmatprep.mubr.f32.mxu1 %v12979_v55  ;;  %v13043_v55 = vld [vmem:[#allocation134_spill] sm:$0xff] }
 0x6b2   : > { %5237 = vmatmul.mubr.f32.gmra.mrb[60].mxu1 %v12981_v31  ;;  %v13045_v31 = vld [vmem:[#allocation139_spill] sm:$0xff] }
 0x6b3   : > { %5244 = vmatprep.mubr.f32.mxu1 %v12983_v62  ;;  %v13047_v62 = vld [vmem:[#allocation142_spill] sm:$0xff] }
 0x6b6   : > { %5248 = vmatmul.mubr.f32.gmra.mrb[62].mxu1 %v12985_v41  ;;  %v13049_v41 = vld [vmem:[#allocation146_spill] sm:$0xff] }
 0x6b7   : > { %5414 = vmatprep.mubr.f32.mxu1 %v12986_v60 }
 0x6ba   : > { %5416 = vmatmul.mubr.f32.vlgmr.msra.gmra.mrb[64].mxu1 %v12987_v47 }
 0x6bb   : > { %5421 = vmatprep.mubr.f32.mxu1 %v12988_v1  ;;  %6620 = vmatpush1.bf16.msra.mxu1 %v12989_v45  ;;  %v13050_v45 = vld [vmem:[#allocation151_spill] sm:$0xff] }
 0x6bc   : > { %6621 = vmatprep.subr.bf16.mxu1 %v12470_v56 }
 0x6be   : > { %5423 = vmatmul.mubr.f32.gmra.mrb[66].mxu1 %v12990_v46 }
 0x6bf   : > { %5428 = vmatprep.mubr.f32.mxu1 %v12991_v16  ;;  %6623 = vmatpush1.bf16.msra.mxu1 %v12992_v59  ;;  %v13051_v59 = vld [vmem:[#allocation150_spill] sm:$0xff] }
 0x6c0   : > { %6624 = vmatprep.subr.bf16.mxu1 %v12470_v56 }
 0x6c2   : > { %5430 = vmatmul.mubr.f32.gmra.mrb[68].mxu1 %v12993_v18 }
 0x6c3   : > { %5435 = vmatprep.mubr.f32.mxu1 %v12994_v37  ;;  %6626 = vmatpush1.bf16.msra.mxu1 %v12995_v40  ;;  %v13052_v40 = vld [vmem:[#allocation156_spill] sm:$0xff] }
 0x6c4   : > { %6627 = vmatprep.subr.bf16.mxu1 %v12470_v56 }
 0x6c6   : > { %5437 = vmatmul.mubr.f32.gmra.mrb[70].mxu1 %v12996_v20 }
 0x6c7   : > { %5442 = vmatprep.mubr.f32.mxu1 %v12997_v0  ;;  %6629 = vmatpush1.bf16.msra.mxu1 %v12998_v53  ;;  %v13053_v53 = vld [vmem:[#allocation154_spill] sm:$0xff] }
 0x6c8   : > { %6630 = vmatprep.subr.bf16.mxu1 %v12470_v56 }
 0x6ca   : > { %5444 = vmatmul.mubr.f32.gmra.mrb[0].mxu1 %v12999_v2 }
 0x6cb   : > { %5449 = vmatprep.mubr.f32.mxu1 %v13000_v19  ;;  %6632 = vmatpush1.bf16.msra.mxu1 %v13001_v26  ;;  %v13054_v26 = vld [vmem:[#allocation159_spill] sm:$0xff] }
 0x6cc   : > { %6633 = vmatprep.subr.bf16.mxu1 %v12470_v56 }
 0x6ce   : > { %5451 = vmatmul.mubr.f32.gmra.mrb[2].mxu1 %v13002_v3 }
 0x6cf   : > { %5456 = vmatprep.mubr.f32.mxu1 %v13003_v14  ;;  %6635 = vmatpush1.bf16.msra.mxu1 %v13004_v52  ;;  %v13055_v52 = vld [vmem:[#allocation158_spill] sm:$0xff] }
 0x6d0   : > { %6636 = vmatprep.subr.bf16.mxu1 %v12470_v56 }
 0x6d2   : > { %5458 = vmatmul.mubr.f32.gmra.mrb[4].mxu1 %v13005_v44 }
 0x6d3   : > { %5463 = vmatprep.mubr.f32.mxu1 %v13006_v27  ;;  %6638 = vmatpush1.bf16.msra.mxu1 %v13007_v23  ;;  %v13056_v23 = vld [vmem:[#allocation163_spill] sm:$0xff] }
 0x6d4   : > { %6639 = vmatprep.subr.bf16.mxu1 %v12470_v56 }
 0x6d6   : > { %5465 = vmatmul.mubr.f32.gmra.mrb[6].mxu1 %v13008_v24 }
 0x6d7   : > { %5470 = vmatprep.mubr.f32.mxu1 %v13009_v22  ;;  %6641 = vmatpush1.bf16.msra.mxu1 %v13010_v6  ;;  %v13057_v6 = vld [vmem:[#allocation162_spill] sm:$0xff] }
 0x6d8   : > { %6642 = vmatprep.subr.bf16.mxu1 %v12470_v56 }
 0x6da   : > { %5472 = vmatmul.mubr.f32.gmra.mrb[8].mxu1 %v13011_v54 }
 0x6db   : > { %5477 = vmatprep.mubr.f32.mxu1 %v13012_v29  ;;  %6644 = vmatpush1.bf16.msra.mxu1 %v13013_v28  ;;  %v13058_v28 = vld [vmem:[#allocation169_spill] sm:$0xff] }
 0x6dc   : > { %6645 = vmatprep.subr.bf16.mxu1 %v12470_v56 }
 0x6de   : > { %5479 = vmatmul.mubr.f32.gmra.mrb[10].mxu1 %v13014_v5 }
 0x6df   : > { %5484 = vmatprep.mubr.f32.mxu1 %v13015_v58  ;;  %6647 = vmatpush1.bf16.msra.mxu1 %v13016_v25  ;;  %v13059_v25 = vld [vmem:[#allocation167_spill] sm:$0xff] }
 0x6e0   : > { %6648 = vmatprep.subr.bf16.mxu1 %v12470_v56 }
 0x6e2   : > { %5486 = vmatmul.mubr.f32.gmra.mrb[12].mxu1 %v13017_v8 }
 0x6e3   : > { %5491 = vmatprep.mubr.f32.mxu1 %v13018_v17  ;;  %6650 = vmatpush1.bf16.msra.mxu1 %v13019_v61  ;;  %v13060_v61 = vld [vmem:[#allocation171_spill] sm:$0xff] }
 0x6e4   : > { %6651 = vmatprep.subr.bf16.mxu1 %v12470_v56 }
 0x6e6   : > { %5493 = vmatmul.mubr.f32.gmra.mrb[14].mxu1 %v13020_v21 }
 0x6e7   : > { %5498 = vmatprep.mubr.f32.mxu1 %v13021_v30  ;;  %6653 = vmatpush1.bf16.msra.mxu1 %v13022_v12  ;;  %v13061_v12 = vld [vmem:[#allocation170_spill] sm:$0xff] }
 0x6e8   : > { %6654 = vmatprep.subr.bf16.mxu1 %v12470_v56 }
 0x6ea   : > { %5500 = vmatmul.mubr.f32.gmra.mrb[16].mxu1 %v13023_v15 }
 0x6eb   : > { %5505 = vmatprep.mubr.f32.mxu1 %v13024_v4  ;;  %6656 = vmatpush1.bf16.msra.mxu1 %v13025_v34  ;;  %v13062_v34 = vld [vmem:[#allocation175_spill] sm:$0xff] }
 0x6ec   : > { %6657 = vmatprep.subr.bf16.mxu1 %v12470_v56 }
 0x6ee   : > { %5507 = vmatmul.mubr.f32.gmra.mrb[18].mxu1 %v13026_v35 }
 0x6ef   : > { %5512 = vmatprep.mubr.f32.mxu1 %v13027_v38  ;;  %6659 = vmatpush1.bf16.msra.mxu1 %v13028_v13  ;;  %v13063_v13 = vld [vmem:[#allocation173_spill] sm:$0xff] }
 0x6f0   : > { %6660 = vmatprep.subr.bf16.mxu1 %v12470_v56 }
 0x6f2   : > { %5514 = vmatmul.mubr.f32.gmra.mrb[20].mxu1 %v13029_v32 }
 0x6f3   : > { %5519 = vmatprep.mubr.f32.mxu1 %v13030_v42  ;;  %6662 = vmatpush1.bf16.msra.mxu1 %v13031_v10  ;;  %v13064_v10 = vld [vmem:[#allocation178_spill] sm:$0xff] }
 0x6f4   : > { %6663 = vmatprep.subr.bf16.mxu1 %v12470_v56  ;;  %v13042_v56 = vld [vmem:[#allocation136_spill] sm:$0xff] }
 0x6f6   : > { %5521 = vmatmul.mubr.f32.gmra.mrb[22].mxu1 %v13032_v57 }
 0x6f7   : > { %5526 = vmatprep.mubr.f32.mxu1 %v13033_v36  ;;  %6665 = vmatpush1.bf16.msra.mxu1 %v13034_v33  ;;  %v13065_v33 = vld [vmem:[#allocation177_spill] sm:$0xff] }
 0x6fa   : > { %5528 = vmatmul.mubr.f32.gmra.mrb[24].mxu1 %v13035_v49 }
 0x6fb   : > { %5533 = vmatprep.mubr.f32.mxu1 %v13036_v7 }
 0x6fe   : > { %5535 = vmatmul.mubr.f32.gmra.mrb[26].mxu1 %v13037_v11 }
 0x6ff   : > { %5540 = vmatprep.mubr.f32.mxu1 %v13038_v63 }
 0x702   : > { %5542 = vmatmul.mubr.f32.gmra.mrb[28].mxu1 %v13039_v48 }
 0x703   : > { %5547 = vmatprep.mubr.f32.mxu1 %v13040_v9 }
 0x706   : > { %5549 = vmatmul.mubr.f32.gmra.mrb[30].mxu1 %v13041_v43 }
 0x707   : > { %5554 = vmatprep.mubr.f32.mxu1 %v13042_v56 }
 0x70a   : > { %5556 = vmatmul.mubr.f32.gmra.mrb[32].mxu1 %v13043_v55 }
 0x70b   : > { %5561 = vmatprep.mubr.f32.mxu1 %v13044_v39 }
 0x70e   : > { %5563 = vmatmul.mubr.f32.gmra.mrb[34].mxu1 %v13045_v31 }
 0x70f   : > { %5568 = vmatprep.mubr.f32.mxu1 %v13046_v51 }
 0x712   : > { %5570 = vmatmul.mubr.f32.gmra.mrb[36].mxu1 %v13047_v62 }
 0x713   : > { %5575 = vmatprep.mubr.f32.mxu1 %v13048_v50 }
 0x716   : > { %5577 = vmatmul.mubr.f32.gmra.mrb[38].mxu1 %v13049_v41 }
 0x717   : > { %5582 = vmatprep.mubr.f32.mxu1 %v13050_v45 }
 0x71a   : > { %5584 = vmatmul.mubr.f32.gmra.mrb[40].mxu1 %v13051_v59 }
 0x71b   : > { %5589 = vmatprep.mubr.f32.mxu1 %v13052_v40 }
 0x71e   : > { %5591 = vmatmul.mubr.f32.gmra.mrb[42].mxu1 %v13053_v53 }
 0x71f   : > { %5596 = vmatprep.mubr.f32.mxu1 %v13054_v26 }
 0x722   : > { %5598 = vmatmul.mubr.f32.gmra.mrb[44].mxu1 %v13055_v52  ;;  %v13066_v52 = vld [vmem:[#allocation183_spill] sm:$0xff] }
 0x723   : > { %5603 = vmatprep.mubr.f32.mxu1 %v13056_v23  ;;  %v13067_v23 = vld [vmem:[#allocation181_spill] sm:$0xff] }
 0x726   : > { %5605 = vmatmul.mubr.f32.gmra.mrb[46].mxu1 %v13057_v6  ;;  %v13068_v6 = vld [vmem:[#allocation186_spill] sm:$0xff] }
 0x727   : > { %5610 = vmatprep.mubr.f32.mxu1 %v13058_v28  ;;  %v13069_v28 = vld [vmem:[#allocation185_spill] sm:$0xff] }
 0x72a   : > { %5612 = vmatmul.mubr.f32.gmra.mrb[48].mxu1 %v13059_v25  ;;  %v13070_v25 = vld [vmem:[#allocation190_spill] sm:$0xff] }
 0x72b   : > { %5617 = vmatprep.mubr.f32.mxu1 %v13060_v61  ;;  %v13071_v61 = vld [vmem:[#allocation191_spill] sm:$0xff] }
 0x72e   : > { %5619 = vmatmul.mubr.f32.gmra.mrb[50].mxu1 %v13061_v12  ;;  %v13072_v12 = vld [vmem:[#allocation194_spill] sm:$0xff] }
 0x72f   : > { %5624 = vmatprep.mubr.f32.mxu1 %v13062_v34  ;;  %v13073_v34 = vld [vmem:[#allocation193_spill] sm:$0xff] }
 0x732   : > { %5626 = vmatmul.mubr.f32.gmra.mrb[52].mxu1 %v13063_v13 }
 0x733   : > { %5631 = vmatprep.mubr.f32.mxu1 %v13064_v10 }
 0x736   : > { %5633 = vmatmul.mubr.f32.gmra.mrb[54].mxu1 %v13065_v33 }
 0x737   : > { %5638 = vmatprep.mubr.f32.mxu1 %v13066_v52 }
 0x73a   : > { %5640 = vmatmul.mubr.f32.gmra.mrb[56].mxu1 %v13067_v23 }
 0x73b   : > { %5645 = vmatprep.mubr.f32.mxu1 %v13068_v6 }
 0x73e   : > { %5647 = vmatmul.mubr.f32.gmra.mrb[58].mxu1 %v13069_v28 }
 0x73f   : > { %5652 = vmatprep.mubr.f32.mxu1 %v13070_v25 }
 0x742   : > { %5654 = vmatmul.mubr.f32.gmra.mrb[60].mxu1 %v13071_v61 }
 0x743   : > { %5659 = vmatprep.mubr.f32.mxu1 %v13072_v12 }
 0x746   : > { %5661 = vmatmul.mubr.f32.gmra.mrb[62].mxu1 %v13073_v34 }
 0x747   : > { %5763 = vmatprep.mubr.f32.mxu1 %v12986_v60  ;;  %v13074_v60 = vld [vmem:[#allocation158_spill] sm:$0xff] }
 0x74a   : > { %5765 = vmatmul.mubr.f32.vlgmr.msra.gmra.mrb[64].mxu1 %v12987_v47  ;;  %v13075_v47 = vld [vmem:[#allocation163_spill] sm:$0xff] }
 0x74b   : > { %5770 = vmatprep.mubr.f32.mxu1 %v12988_v1  ;;  %v13076_v1 = vld [vmem:[#allocation162_spill] sm:$0xff] }
 0x74e   : > { %5772 = vmatmul.mubr.f32.gmra.mrb[66].mxu1 %v12990_v46  ;;  %v13077_v46 = vld [vmem:[#allocation169_spill] sm:$0xff] }
 0x74f   : > { %5777 = vmatprep.mubr.f32.mxu1 %v12991_v16  ;;  %v13078_v16 = vld [vmem:[#allocation167_spill] sm:$0xff] }
 0x752   : > { %5779 = vmatmul.mubr.f32.gmra.mrb[68].mxu1 %v12993_v18  ;;  %v13079_v18 = vld [vmem:[#allocation171_spill] sm:$0xff] }
 0x753   : > { %5784 = vmatprep.mubr.f32.mxu1 %v12994_v37  ;;  %v13080_v37 = vld [vmem:[#allocation170_spill] sm:$0xff] }
 0x756   : > { %5786 = vmatmul.mubr.f32.gmra.mrb[70].mxu1 %v12996_v20  ;;  %v13081_v20 = vld [vmem:[#allocation175_spill] sm:$0xff] }
 0x757   : > { %5791 = vmatprep.mubr.f32.mxu1 %v12997_v0  ;;  %v11249_v0 = vld [vmem:[%s11398_s4] ss:$0 sm:$0xff] }
 0x75a   : > { %5793 = vmatmul.mubr.f32.gmra.mrb[0].mxu1 %v12999_v2  ;;  %v13082_v2 = vld [vmem:[#allocation38_spill] sm:$0xff] }
 0x75b   : > { %5798 = vmatprep.mubr.f32.mxu1 %v13000_v19  ;;  %v3302_v19 = vadd.f32 %v11249_v0, %v13082_v2 }
 0x75e   : > { %5800 = vmatmul.mubr.f32.gmra.mrb[2].mxu1 %v13002_v3 }
 0x75f   : > { %5805 = vmatprep.mubr.f32.mxu1 %v13003_v14 }
 0x762   : > { %5807 = vmatmul.mubr.f32.gmra.mrb[4].mxu1 %v13005_v44 }
 0x763   : > { %5812 = vmatprep.mubr.f32.mxu1 %v13006_v27  ;;  %v13083_v27 = vld [vmem:[#allocation40_spill] sm:$0xff] }
 0x766   : > { %5814 = vmatmul.mubr.f32.gmra.mrb[6].mxu1 %v13008_v24  ;;  %v3317_v24 = vadd.f32 %v11249_v0, %v13083_v27 }
 0x767   : > { %5819 = vmatprep.mubr.f32.mxu1 %v13009_v22 }
 0x76a   : > { %5821 = vmatmul.mubr.f32.gmra.mrb[8].mxu1 %v13011_v54 }
 0x76b   : > { %5826 = vmatprep.mubr.f32.mxu1 %v13012_v29 }
 0x76e   : > { %5828 = vmatmul.mubr.f32.gmra.mrb[10].mxu1 %v13014_v5  ;;  %v13084_v5 = vld [vmem:[#allocation42_spill] sm:$0xff] }
 0x76f   : > { %5833 = vmatprep.mubr.f32.mxu1 %v13015_v58  ;;  %v3332_v58 = vadd.f32 %v11249_v0, %v13084_v5 }
 0x772   : > { %5835 = vmatmul.mubr.f32.gmra.mrb[12].mxu1 %v13017_v8 }
 0x773   : > { %5840 = vmatprep.mubr.f32.mxu1 %v13018_v17 }
 0x776   : > { %5842 = vmatmul.mubr.f32.gmra.mrb[14].mxu1 %v13020_v21 }
 0x777   : > { %5847 = vmatprep.mubr.f32.mxu1 %v13021_v30  ;;  %v13085_v30 = vld [vmem:[#allocation22_spill] sm:$0xff] }
 0x77a   : > { %5849 = vmatmul.mubr.f32.gmra.mrb[16].mxu1 %v13023_v15  ;;  %v3347_v15 = vadd.f32 %v11249_v0, %v13085_v30 }
 0x77b   : > { %5854 = vmatprep.mubr.f32.mxu1 %v13024_v4 }
 0x77e   : > { %5856 = vmatmul.mubr.f32.gmra.mrb[18].mxu1 %v13026_v35 }
 0x77f   : > { %5861 = vmatprep.mubr.f32.mxu1 %v13027_v38 }
 0x782   : > { %5863 = vmatmul.mubr.f32.gmra.mrb[20].mxu1 %v13029_v32 }
 0x783   : > { %5868 = vmatprep.mubr.f32.mxu1 %v13030_v42 }
 0x786   : > { %5870 = vmatmul.mubr.f32.gmra.mrb[22].mxu1 %v13032_v57 }
 0x787   : > { %5875 = vmatprep.mubr.f32.mxu1 %v13033_v36 }
 0x78a   : > { %5877 = vmatmul.mubr.f32.gmra.mrb[24].mxu1 %v13035_v49 }
 0x78b   : > { %5882 = vmatprep.mubr.f32.mxu1 %v13036_v7 }
 0x78e   : > { %5884 = vmatmul.mubr.f32.gmra.mrb[26].mxu1 %v13037_v11 }
 0x78f   : > { %5889 = vmatprep.mubr.f32.mxu1 %v13038_v63 }
 0x792   : > { %5891 = vmatmul.mubr.f32.gmra.mrb[28].mxu1 %v13039_v48 }
 0x793   : > { %5896 = vmatprep.mubr.f32.mxu1 %v13040_v9 }
 0x796   : > { %5898 = vmatmul.mubr.f32.gmra.mrb[30].mxu1 %v13041_v43 }
 0x797   : > { %5903 = vmatprep.mubr.f32.mxu1 %v13042_v56 }
 0x79a   : > { %5905 = vmatmul.mubr.f32.gmra.mrb[32].mxu1 %v13043_v55 }
 0x79b   : > { %5910 = vmatprep.mubr.f32.mxu1 %v13044_v39 }
 0x79e   : > { %5912 = vmatmul.mubr.f32.gmra.mrb[34].mxu1 %v13045_v31 }
 0x79f   : > { %5917 = vmatprep.mubr.f32.mxu1 %v13046_v51 }
 0x7a2   : > { %5919 = vmatmul.mubr.f32.gmra.mrb[36].mxu1 %v13047_v62 }
 0x7a3   : > { %5924 = vmatprep.mubr.f32.mxu1 %v13048_v50 }
 0x7a6   : > { %5926 = vmatmul.mubr.f32.gmra.mrb[38].mxu1 %v13049_v41 }
 0x7a7   : > { %5931 = vmatprep.mubr.f32.mxu1 %v13050_v45 }
 0x7aa   : > { %5933 = vmatmul.mubr.f32.gmra.mrb[40].mxu1 %v13051_v59 }
 0x7ab   : > { %5938 = vmatprep.mubr.f32.mxu1 %v13052_v40 }
 0x7ae   : > { %5940 = vmatmul.mubr.f32.gmra.mrb[42].mxu1 %v13053_v53 }
 0x7af   : > { %5945 = vmatprep.mubr.f32.mxu1 %v13054_v26 }
 0x7b2   : > { %5947 = vmatmul.mubr.f32.gmra.mrb[44].mxu1 %v13074_v60 }
 0x7b3   : > { %5952 = vmatprep.mubr.f32.mxu1 %v13075_v47 }
 0x7b6   : > { %5954 = vmatmul.mubr.f32.gmra.mrb[46].mxu1 %v13076_v1 }
 0x7b7   : > { %5959 = vmatprep.mubr.f32.mxu1 %v13077_v46 }
 0x7ba   : > { %5961 = vmatmul.mubr.f32.gmra.mrb[48].mxu1 %v13078_v16 }
 0x7bb   : > { %5966 = vmatprep.mubr.f32.mxu1 %v13079_v18 }
 0x7be   : > { %5968 = vmatmul.mubr.f32.gmra.mrb[50].mxu1 %v13080_v37 }
 0x7bf   : > { %5973 = vmatprep.mubr.f32.mxu1 %v13081_v20 }
 0x7c2   : > { %5975 = vmatmul.mubr.f32.gmra.mrb[52].mxu1 %v13063_v13 }
 0x7c3   : > { %5980 = vmatprep.mubr.f32.mxu1 %v13064_v10 }
 0x7c6   : > { %5982 = vmatmul.mubr.f32.gmra.mrb[54].mxu1 %v13065_v33 }
 0x7c7   : > { %5987 = vmatprep.mubr.f32.mxu1 %v13066_v52 }
 0x7ca   : > { %5989 = vmatmul.mubr.f32.gmra.mrb[56].mxu1 %v13067_v23 }
 0x7cb   : > { %5994 = vmatprep.mubr.f32.mxu1 %v13068_v6 }
 0x7ce   : > { %5996 = vmatmul.mubr.f32.gmra.mrb[58].mxu1 %v13069_v28 }
 0x7cf   : > { %6001 = vmatprep.mubr.f32.mxu1 %v13070_v25 }
 0x7d2   : > { %6003 = vmatmul.mubr.f32.gmra.mrb[60].mxu1 %v13071_v61 }
 0x7d3   : > { %6008 = vmatprep.mubr.f32.mxu1 %v13072_v12 }
 0x7d6   : > { %6010 = vmatmul.mubr.f32.gmra.mrb[62].mxu1 %v13073_v34 }
 0x81d   : > { %v5766_v3 = vpop.f32.mrb[64].mxu1 }
 0x81e   : > { %v6771_v14 = vadd.f32 %v5766_v3, %v3302_v19  ;;  %v5768_v44 = vpop.f32.mrb[65].mxu1 }
 0x820   : > { %6015 = vst [vmem:[%s11257_s26] sm:$0xff] %v6771_v14 }
 0x821   : > { %v5773_v22 = vpop.f32.mrb[66].mxu1 }
 0x822   : > { %v6773_v54 = vadd.f32 %v5773_v22, %v3317_v24  ;;  %v5775_v29 = vpop.f32.mrb[67].mxu1 }
 0x824   : > { %6016 = vst [vmem:[%s11257_s26 + $0x8] sm:$0xff] %v6773_v54 }
 0x825   : > { %v5780_v8 = vpop.f32.mrb[68].mxu1 }
 0x826   : > { %v6775_v17 = vadd.f32 %v5780_v8, %v3332_v58  ;;  %v5782_v21 = vpop.f32.mrb[69].mxu1 }
 0x828   : > { %6017 = vst [vmem:[%s11257_s26 + $0x10] sm:$0xff] %v6775_v17 }
 0x829   : > { %v5787_v4 = vpop.f32.mrb[70].mxu1 }
 0x82a   : > { %v6777_v35 = vadd.f32 %v5787_v4, %v3347_v15  ;;  %v5789_v38 = vpop.f32.mrb[71].mxu1 }
 0x82c   : > { %6018 = vst [vmem:[%s11257_s26 + $0x18] sm:$0xff] %v6777_v35 }
 0x82d   : > { %v5794_v32 = vpop.f32.mrb[0].mxu1 }
 0x82e   : > { %v6778_v42 = vadd.f32 %v11249_v0, %v5794_v32  ;;  %v5796_v57 = vpop.f32.mrb[1].mxu1 }
 0x830   : > { %6019 = vst [vmem:[%s11257_s26 + $0x20] sm:$0xff] %v6778_v42 }
 0x831   : > { %v5801_v36 = vpop.f32.mrb[2].mxu1 }
 0x832   : > { %v6779_v49 = vadd.f32 %v11249_v0, %v5801_v36  ;;  %v5803_v7 = vpop.f32.mrb[3].mxu1 }
 0x834   : > { %6020 = vst [vmem:[%s11257_s26 + $0x28] sm:$0xff] %v6779_v49 }
 0x835   : > { %v5808_v11 = vpop.f32.mrb[4].mxu1 }
 0x836   : > { %v6780_v63 = vadd.f32 %v11249_v0, %v5808_v11  ;;  %v5810_v48 = vpop.f32.mrb[5].mxu1 }
 0x838   : > { %6021 = vst [vmem:[%s11257_s26 + $0x30] sm:$0xff] %v6780_v63 }
 0x839   : > { %v5815_v9 = vpop.f32.mrb[6].mxu1 }
 0x83a   : > { %v6781_v43 = vadd.f32 %v11249_v0, %v5815_v9  ;;  %v5817_v56 = vpop.f32.mrb[7].mxu1 }
 0x83c   : > { %6022 = vst [vmem:[%s11257_s26 + $0x38] sm:$0xff] %v6781_v43 }
 0x83d   : > { %v5822_v55 = vpop.f32.mrb[8].mxu1 }
 0x83e   : > { %v6782_v39 = vadd.f32 %v11249_v0, %v5822_v55  ;;  %v5824_v31 = vpop.f32.mrb[9].mxu1 }
 0x840   : > { %6023 = vst [vmem:[%s11257_s26 + $0x40] sm:$0xff] %v6782_v39 }
 0x841   : > { %v5829_v51 = vpop.f32.mrb[10].mxu1 }
 0x842   : > { %v6783_v62 = vadd.f32 %v11249_v0, %v5829_v51  ;;  %v5831_v50 = vpop.f32.mrb[11].mxu1 }
 0x844   : > { %6024 = vst [vmem:[%s11257_s26 + $0x48] sm:$0xff] %v6783_v62 }
 0x845   : > { %v5836_v41 = vpop.f32.mrb[12].mxu1 }
 0x846   : > { %v6784_v45 = vadd.f32 %v11249_v0, %v5836_v41  ;;  %v5838_v59 = vpop.f32.mrb[13].mxu1 }
 0x848   : > { %6025 = vst [vmem:[%s11257_s26 + $0x50] sm:$0xff] %v6784_v45 }
 0x849   : > { %v5843_v40 = vpop.f32.mrb[14].mxu1 }
 0x84a   : > { %v6785_v53 = vadd.f32 %v11249_v0, %v5843_v40  ;;  %v5845_v26 = vpop.f32.mrb[15].mxu1 }
 0x84c   : > { %6026 = vst [vmem:[%s11257_s26 + $0x58] sm:$0xff] %v6785_v53 }
 0x84d   : > { %v5850_v52 = vpop.f32.mrb[16].mxu1 }
 0x84e   : > { %v6786_v23 = vadd.f32 %v11249_v0, %v5850_v52  ;;  %v5852_v6 = vpop.f32.mrb[17].mxu1 }
 0x850   : > { %6027 = vst [vmem:[%s11257_s26 + $0x60] sm:$0xff] %v6786_v23 }
 0x851   : > { %v5857_v28 = vpop.f32.mrb[18].mxu1 }
 0x852   : > { %v6787_v25 = vadd.f32 %v11249_v0, %v5857_v28  ;;  %v5859_v61 = vpop.f32.mrb[19].mxu1 }
 0x854   : > { %6028 = vst [vmem:[%s11257_s26 + $0x68] sm:$0xff] %v6787_v25 }
 0x855   : > { %v5864_v12 = vpop.f32.mrb[20].mxu1 }
 0x856   : > { %v6788_v34 = vadd.f32 %v11249_v0, %v5864_v12  ;;  %v5866_v13 = vpop.f32.mrb[21].mxu1 }
 0x858   : > { %6029 = vst [vmem:[%s11257_s26 + $0x70] sm:$0xff] %v6788_v34 }
 0x859   : > { %v5871_v10 = vpop.f32.mrb[22].mxu1 }
 0x85a   : > { %v6789_v33 = vadd.f32 %v11249_v0, %v5871_v10  ;;  %v5873_v60 = vpop.f32.mrb[23].mxu1 }
 0x85c   : > { %6030 = vst [vmem:[%s11257_s26 + $0x78] sm:$0xff] %v6789_v33 }
 0x85d   : > { %v5878_v47 = vpop.f32.mrb[24].mxu1 }
 0x85e   : > { %v6790_v1 = vadd.f32 %v11249_v0, %v5878_v47  ;;  %v5880_v46 = vpop.f32.mrb[25].mxu1 }
 0x860   : > { %6031 = vst [vmem:[%s11257_s26 + $0x80] sm:$0xff] %v6790_v1 }
 0x861   : > { %v5885_v16 = vpop.f32.mrb[26].mxu1 }
 0x862   : > { %v6791_v18 = vadd.f32 %v11249_v0, %v5885_v16  ;;  %v5887_v37 = vpop.f32.mrb[27].mxu1 }
 0x864   : > { %6032 = vst [vmem:[%s11257_s26 + $0x88] sm:$0xff] %v6791_v18 }
 0x865   : > { %v5892_v20 = vpop.f32.mrb[28].mxu1 }
 0x866   : > { %v6792_v2 = vadd.f32 %v11249_v0, %v5892_v20  ;;  %v5894_v19 = vpop.f32.mrb[29].mxu1 }
 0x868   : > { %6033 = vst [vmem:[%s11257_s26 + $0x90] sm:$0xff] %v6792_v2 }
 0x869   : > { %v5899_v3 = vpop.f32.mrb[30].mxu1 }
 0x86a   : > { %v6793_v14 = vadd.f32 %v11249_v0, %v5899_v3  ;;  %v5901_v44 = vpop.f32.mrb[31].mxu1 }
 0x86c   : > { %6034 = vst [vmem:[%s11257_s26 + $0x98] sm:$0xff] %v6793_v14 }
 0x86d   : > { %v5906_v27 = vpop.f32.mrb[32].mxu1 }
 0x86e   : > { %v6794_v24 = vadd.f32 %v11249_v0, %v5906_v27  ;;  %v5908_v22 = vpop.f32.mrb[33].mxu1 }
 0x870   : > { %6035 = vst [vmem:[%s11257_s26 + $0xa0] sm:$0xff] %v6794_v24 }
 0x871   : > { %v5913_v54 = vpop.f32.mrb[34].mxu1 }
 0x872   : > { %v6795_v29 = vadd.f32 %v11249_v0, %v5913_v54  ;;  %v5915_v5 = vpop.f32.mrb[35].mxu1 }
 0x874   : > { %6036 = vst [vmem:[%s11257_s26 + $0xa8] sm:$0xff] %v6795_v29 }
 0x875   : > { %v5920_v58 = vpop.f32.mrb[36].mxu1 }
 0x876   : > { %v6796_v8 = vadd.f32 %v11249_v0, %v5920_v58  ;;  %v5922_v17 = vpop.f32.mrb[37].mxu1 }
 0x878   : > { %6037 = vst [vmem:[%s11257_s26 + $0xb0] sm:$0xff] %v6796_v8 }
 0x879   : > { %v5927_v21 = vpop.f32.mrb[38].mxu1 }
 0x87a   : > { %v6797_v30 = vadd.f32 %v11249_v0, %v5927_v21  ;;  %v5929_v15 = vpop.f32.mrb[39].mxu1 }
 0x87c   : > { %6038 = vst [vmem:[%s11257_s26 + $0xb8] sm:$0xff] %v6797_v30 }
 0x87d   : > { %v5934_v4 = vpop.f32.mrb[40].mxu1 }
 0x87e   : > { %v6798_v35 = vadd.f32 %v11249_v0, %v5934_v4  ;;  %v5936_v38 = vpop.f32.mrb[41].mxu1 }
 0x880   : > { %6039 = vst [vmem:[%s11257_s26 + $0xc0] sm:$0xff] %v6798_v35 }
 0x881   : > { %v5941_v32 = vpop.f32.mrb[42].mxu1 }
 0x882   : > { %v6799_v42 = vadd.f32 %v11249_v0, %v5941_v32  ;;  %v5943_v57 = vpop.f32.mrb[43].mxu1 }
 0x884   : > { %6040 = vst [vmem:[%s11257_s26 + $0xc8] sm:$0xff] %v6799_v42 }
 0x885   : > { %v5948_v36 = vpop.f32.mrb[44].mxu1 }
 0x886   : > { %v6800_v49 = vadd.f32 %v11249_v0, %v5948_v36  ;;  %v5950_v7 = vpop.f32.mrb[45].mxu1 }
 0x888   : > { %6041 = vst [vmem:[%s11257_s26 + $0xd0] sm:$0xff] %v6800_v49 }
 0x889   : > { %v5955_v11 = vpop.f32.mrb[46].mxu1 }
 0x88a   : > { %v6801_v63 = vadd.f32 %v11249_v0, %v5955_v11  ;;  %v5957_v48 = vpop.f32.mrb[47].mxu1 }
 0x88c   : > { %6042 = vst [vmem:[%s11257_s26 + $0xd8] sm:$0xff] %v6801_v63 }
 0x88d   : > { %v5962_v9 = vpop.f32.mrb[48].mxu1 }
 0x88e   : > { %v6802_v43 = vadd.f32 %v11249_v0, %v5962_v9  ;;  %v5964_v56 = vpop.f32.mrb[49].mxu1 }
 0x890   : > { %6043 = vst [vmem:[%s11257_s26 + $0xe0] sm:$0xff] %v6802_v43 }
 0x891   : > { %v5969_v55 = vpop.f32.mrb[50].mxu1 }
 0x892   : > { %v6803_v39 = vadd.f32 %v11249_v0, %v5969_v55  ;;  %v5971_v31 = vpop.f32.mrb[51].mxu1 }
 0x894   : > { %6044 = vst [vmem:[%s11257_s26 + $0xe8] sm:$0xff] %v6803_v39 }
 0x895   : > { %v5976_v51 = vpop.f32.mrb[52].mxu1 }
 0x896   : > { %v6804_v62 = vadd.f32 %v11249_v0, %v5976_v51  ;;  %v5978_v50 = vpop.f32.mrb[53].mxu1 }
 0x898   : > { %6045 = vst [vmem:[%s11257_s26 + $0xf0] sm:$0xff] %v6804_v62 }
 0x899   : > { %v5983_v41 = vpop.f32.mrb[54].mxu1 }
 0x89a   : > { %v6805_v45 = vadd.f32 %v11249_v0, %v5983_v41  ;;  %v5985_v59 = vpop.f32.mrb[55].mxu1 }
 0x89c   : > { %6046 = vst [vmem:[%s11257_s26 + $0xf8] sm:$0xff] %v6805_v45 }
 0x89d   : > { %v5990_v40 = vpop.f32.mrb[56].mxu1 }
 0x89e   : > { %v6806_v53 = vadd.f32 %v11249_v0, %v5990_v40  ;;  %v5992_v26 = vpop.f32.mrb[57].mxu1 }
 0x8a0   : > { %6047 = vst [vmem:[%s11257_s26 + $0x100] sm:$0xff] %v6806_v53 }
 0x8a1   : > { %v5997_v52 = vpop.f32.mrb[58].mxu1 }
 0x8a2   : > { %v6807_v23 = vadd.f32 %v11249_v0, %v5997_v52  ;;  %v5999_v6 = vpop.f32.mrb[59].mxu1 }
 0x8a4   : > { %6048 = vst [vmem:[%s11257_s26 + $0x108] sm:$0xff] %v6807_v23 }
 0x8a5   : > { %v6004_v28 = vpop.f32.mrb[60].mxu1 }
 0x8a6   : > { %v6808_v25 = vadd.f32 %v11249_v0, %v6004_v28  ;;  %v6006_v61 = vpop.f32.mrb[61].mxu1  ;;  %6058 = sbr.rel (!%p13086_p9) target bundleno = 2249 (0x8c9), region = 56 }
 0x8a8   : > { %6049 = vst [vmem:[%s11257_s26 + $0x110] sm:$0xff] %v6808_v25 }
 0x8a9   : > { %v6011_v12 = vpop.f32.mrb[62].mxu1 }
 0x8aa   : > { %v6809_v34 = vadd.f32 %v11249_v0, %v6011_v12  ;;  %v6013_v13 = vpop.f32.mrb[63].mxu1 }
 0x8ac   : > { %6050 = vst [vmem:[%s11257_s26 + $0x118] sm:$0xff] %v6809_v34 }
 0x8ad   : > { %s13096_s12 = smov (!%p6061_p10, %s6060_s12), 36 }
 0x8ae   : > { %s11335_s25 = sshll.u32 %s13096_s12, 7 }
 0x8af   : > { %s6065_s28 = ssub.s32 4608, %s11335_s25 }
 0x8b0   : > { %6066 = vsyncadd %s6052_s8, %s6065_s28  ;;  %p6178_p1 = scmp.ne.s32.totalorder %s11335_s25, 0  ;;  %s6185_s30 = smul.u32 4608, %s7815_s22 }
 0x8b1   : > { %s6071_s9 = sshll.u32 %s11257_s26, 4  ;;  %s7761_s16 = smov [#allocation8]   ;;  %s11348_s9 = int_to_ptr.vmem [resolvable:$true] %s6071_s9 }
 0x8b2   : > { %s11346_s14 = scalar_lea.hbm %s11399_s5, %s6185_s30  ;;  %s7678_s15 = scalar_lea.vmem %s11348_s9, %s11335_s25 }
 0x8b3   : > { %p7679_p3 = scmp.ne.s32.totalorder %s11348_s9, %s7678_s15  ;;  %s7682_s29 = sshll.u32 %s7761_s16, 4  ;;  %s7683_s29 = int_to_ptr.vmem [resolvable:$false] %s7682_s29 }
 0x8b4   : > { %s7684_s22 = scalar_lea.vmem %s7683_s29, 9216  ;;  %p7685_p11 = scmp.lt.s32.totalorder %s11348_s9, %s7683_s29 }
 0x8b5   : > { %p7680_p5 = pnand %p7679_p3, %p6178_p1  ;;  %p7686_p13 = scmp.lt.s32.totalorder %s7684_s22, %s7678_s15 }
 0x8b7   : > { %p7681_p6 = pneg %p7680_p5  ;;  %p7687_p0 = por %p7686_p13, %p7685_p11 }
 0x8b9   : > { %p7688_p12 = pnand %p7687_p0, %p7681_p6 }
 0x8bb   : > { %7691 = shalt.err (!%p7688_p12)
}
 0x8bc   : > { %s7692_s7 = scalar_lea.hbm %s11346_s14, %s11335_s25  ;;  %s7696_s26 = scalar_lea.hbm %s11399_s5, 8320 }
 0x8bd   : > { %p7693_p7 = scmp.ne.s32.totalorder %s11346_s14, %s7692_s7  ;;  %p7697_p9 = scmp.lt.u32.totalorder %s11346_s14, %s11399_s5 }
 0x8be   : > { %p7698_p10 = scmp.lt.u32.totalorder %s7696_s26, %s7692_s7  ;;  %p7700_p5 = scmp.lt.u32.totalorder %s7692_s7, %s11346_s14 }
 0x8bf   : > { %p7694_p2 = pnand %p7693_p7, %p6178_p1 }
 0x8c0   : > { %p7699_p3 = por %p7698_p10, %p7697_p9 }
 0x8c1   : > { %p7695_p8 = pneg %p7694_p2 }
 0x8c2   : > { %p7701_p6 = por %p7700_p5, %p7699_p3 }
 0x8c4   : > { %p7702_p11 = pnand %p7701_p6, %p7695_p8 }
 0x8c6   : > { %7705 = shalt.err (!%p7702_p11)
}
 0x8c7   : > { %s7762_s28 = smov 128   ;;  %s7763_s30 = smov 8  }
 0x8c8   : > { %6077 = dma.vmem_to_hbm [thread:$0]  (%p6178_p1), %s11348_s9, %s11335_s25, %s11346_s14, %s6052_s8, %s7762_s28, %s7762_s28, %s7763_s30  }
 0x8c9 PF: > { %s6086_s27 = sand.u32 1, %s7736_s18   ;;  %p13087_p13 = scmp.ne.s32.totalorder %s12112_s6, 0 }
 0x8ca   : > { %s6087_s11 = scalar_lea.sflag [#allocation4], %s6086_s27 }
 0x8cb   : > { %p7542_p0 = pnand %p6167_p4, %p13087_p13 }
 0x8cd   : > { %7731 = dma.done.wait (!%p7542_p0), %s6087_s11, 4608  }
 0x8ce   : > { %7733 = vsyncadd (!%p7542_p0), %s6087_s11, 4294962688  ;;  %s13088_s15 = sld [smem:[#allocation12_spill]]  ;;  %p19_p12 = scmp.ge.s32.totalorder %s7819_s24, 4  }
 0x8cf   : > { %s13089_s18 = smov %s7740_s19  ;;  %s13090_s19 = smov %s7744_s20 }
 0x8d0   : > { %s13092_s21 = smov %s7819_s24  ;;  %21 = sbr.rel (!%p19_p12) target bundleno = 6 (0x6), region = 93 }
 0x8d4   : > { %s13091_s20 = smov %s13088_s15 }
 0x8d7   :  { %6092 = vsyncpa [#allocation3], 1 }
 0x8d8   :  { %6094 = vsyncpa [#allocation3 + $0x1], 1 }
 0x8d9   :  { %6095 = vsyncpa [#allocation6], 1 }
 0x8da   :  { %6096 = vsyncpa [#allocation4], 1 }
 0x8db   :  { %6098 = vsyncpa [#allocation4 + $0x1], 1 }

</bundles_post_ra>
